<compile_context>
chip_gen: v7x
topology: tpu7x:2x2x1
jax: 0.10.0
libtpu: 0.0.40
codegen_flags: <defaults>
</compile_context>

<pallas_src>
import functools

import jax
import jax.numpy as jnp
from jax.experimental import pallas as pl
from jax.experimental.pallas import tpu as pltpu

FEATURE_DIM = 64
NUM_HEADS = 4          # does not enter the math: seq_len == 1 => softmax == 1
NUM_LAYERS = 2
NUM_CLASSES = 100
PADDED_CLASSES = 128   # lane-dense classifier / output width
FFN_DIM = 2048         # nn.TransformerEncoderLayer default dim_feedforward
LN_EPS = 1e-5          # nn.LayerNorm default eps
ROW_TILE_BF16 = 1024   # v6e/v7x: bf16 FFN hidden -> 1024-row tile fits easily
ROW_TILE_F32 = 512     # v5-class: f32 FFN hidden -> cap the row tile at 512
VMEM_LIMIT_BYTES = 48 * 1024 * 1024


def _device_kind():
    try:
        return jax.devices()[0].device_kind.lower()
    except Exception:
        return ""


def _round_up(x, m):
    return (x + m - 1) // m * m


def _layer_norm(x, gamma, beta):
    mu = jnp.mean(x, axis=-1, keepdims=True)
    xc = x - mu
    var = jnp.mean(xc * xc, axis=-1, keepdims=True)
    return xc * jax.lax.rsqrt(var + LN_EPS) * gamma + beta


def forgetting_predictor_kernel(
        x_ref,            # (tile_n, D)     f32   input rows (streamed)
        wattn_ref,        # (L, D, D)       bf16  folded I + Wv @ Wo
        vecs_ref,         # (L, 8, D)       f32   rows: b_attn, g1, be1, b2, g2, be2, 0, 0
        w1_ref,           # (L, D, F)       bf16  FFN linear1
        b1_ref,           # (L, 1, F)       f32
        w2_ref,           # (L, F, D)       bf16  FFN linear2
        wc_ref,           # (D, C_pad)      bf16  classifier (lane-padded)
        bc_ref,           # (1, C_pad)      f32
        out_ref,          # (tile_n, C_pad) bf16  lane-dense logits
        *, bf16_hidden):
    x = x_ref[...]
    for l in range(NUM_LAYERS):        # static unroll over the 2 encoder layers
        vecs = vecs_ref[l]             # (8, D): one VMEM load, sliced in vregs
        b_attn, g1, be1 = vecs[0:1], vecs[1:2], vecs[2:3]
        b2, g2, be2 = vecs[3:4], vecs[4:5], vecs[5:6]

        # --- self-attention + residual (seq_len == 1), folded into one matmul:
        #     x + attn(x) == x @ (I + Wv Wo) + (bv Wo + bo)
        pre = jnp.dot(x.astype(jnp.bfloat16), wattn_ref[l],
                      preferred_element_type=jnp.float32) + b_attn
        x = _layer_norm(pre, g1, be1)                   # post-norm

        # --- feed-forward block ---
        if bf16_hidden:
            # v6e/v7x: bf16 hidden halves the dominant (tile_n, 2048) path
            h = jnp.dot(x.astype(jnp.bfloat16), w1_ref[l],
                        preferred_element_type=jnp.bfloat16)
            h = jnp.maximum(h + b1_ref[l].astype(jnp.bfloat16), 0.0)
            ff = jnp.dot(h, w2_ref[l],
                         preferred_element_type=jnp.float32) + b2
        else:
            # v5-class: no bf16 VPU -> keep bias+relu in f32, cast once
            h = jnp.dot(x.astype(jnp.bfloat16), w1_ref[l],
                        preferred_element_type=jnp.float32) + b1_ref[l]
            h = jnp.maximum(h, 0.0)
            ff = jnp.dot(h.astype(jnp.bfloat16), w2_ref[l],
                         preferred_element_type=jnp.float32) + b2
        x = _layer_norm(x + ff, g2, be2)

    logits = jnp.dot(x.astype(jnp.bfloat16), wc_ref[...],
                     preferred_element_type=jnp.float32) + bc_ref[...]
    out_ref[...] = logits.astype(out_ref.dtype)


def init_params(key):
    """Synthetic parameters with the PyTorch module's shapes, pre-folded.

    Returns (kernel_params, f32_params): the first is what the Pallas kernel
    consumes (large weights in bf16); the second is an f32 copy used by the
    pure-JAX reference."""
    D, F, C, L = FEATURE_DIM, FFN_DIM, NUM_CLASSES, NUM_LAYERS
    ks = jax.random.split(key, 10)
    s = 0.05

    def rnd(k, shape):
        return s * jax.random.normal(k, shape, jnp.float32)

    # nn.MultiheadAttention in_proj_weight is (3D, D); only the V rows can
    # reach the output when seq_len == 1.
    in_proj_w = rnd(ks[0], (L, 3 * D, D))
    in_proj_b = rnd(ks[1], (L, 3 * D))
    wv_t = jnp.transpose(in_proj_w[:, 2 * D:, :], (0, 2, 1))   # for x @ Wv^T
    bv = in_proj_b[:, 2 * D:]                                  # (L, D)
    wo_t = jnp.transpose(rnd(ks[2], (L, D, D)), (0, 2, 1))     # for v @ Wo^T
    bo = rnd(ks[3], (L, D))
    # Exact fold incl. the residual:
    #   x + ((x Wv^T + bv) Wo^T + bo) == x (I + Wv^T Wo^T) + (bv Wo^T + bo)
    w_attn = (jnp.einsum('lij,ljk->lik', wv_t, wo_t)
              + jnp.eye(D, dtype=jnp.float32)[None])            # (L, D, D)
    b_attn = jnp.einsum('lj,ljk->lk', bv, wo_t) + bo            # (L, D)

    g1 = jnp.ones((L, D), jnp.float32)
    be1 = jnp.zeros((L, D), jnp.float32)
    w1 = jnp.transpose(rnd(ks[4], (L, F, D)), (0, 2, 1))        # (L, D, F)
    b1 = rnd(ks[5], (L, F)).reshape(L, 1, F)
    w2 = jnp.transpose(rnd(ks[6], (L, D, F)), (0, 2, 1))        # (L, F, D)
    b2 = rnd(ks[7], (L, D))
    g2 = jnp.ones((L, D), jnp.float32)
    be2 = jnp.zeros((L, D), jnp.float32)
    wc = jnp.transpose(rnd(ks[8], (C, D)))                      # (D, C)
    bc = rnd(ks[9], (C,))

    # Pack the six per-layer D-vectors into one (L, 8, D) slab (one DMA).
    zero = jnp.zeros((L, D), jnp.float32)
    vecs = jnp.stack([b_attn, g1, be1, b2, g2, be2, zero, zero], axis=1)

    # Lane-dense classifier: pad C=100 -> 128 output lanes.
    wc_p = jnp.pad(wc, ((0, 0), (0, PADDED_CLASSES - C)))
    bc_p = jnp.pad(bc, (0, PADDED_CLASSES - C)).reshape(1, PADDED_CLASSES)

    f32_params = (w_attn, vecs, w1, b1, w2, wc_p, bc_p)
    kernel_params = (w_attn.astype(jnp.bfloat16), vecs,
                     w1.astype(jnp.bfloat16), b1,
                     w2.astype(jnp.bfloat16),
                     wc_p.astype(jnp.bfloat16), bc_p)
    return kernel_params, f32_params


def _resident_spec(shape, single_buffer):
    """Constant index-map (VMEM-resident) weight spec; optionally single-buffered."""
    zeros = (0,) * len(shape)
    if single_buffer:
        return pl.BlockSpec(shape, lambda i: zeros, pipeline_mode=pl.Buffered(1))
    return pl.BlockSpec(shape, lambda i: zeros)


def _run_pallas(x, kernel_params, tile_n, num_steps, bf16_hidden, single_buffer):
    D, L, F, CP = FEATURE_DIM, NUM_LAYERS, FFN_DIM, PADDED_CLASSES
    n_pad = tile_n * num_steps

    in_specs = [
        pl.BlockSpec((tile_n, D), lambda i: (i, 0)),            # x row tile (streamed)
        _resident_spec((L, D, D), single_buffer),               # folded I + Wv Wo
        _resident_spec((L, 8, D), single_buffer),               # packed per-layer vectors
        _resident_spec((L, D, F), single_buffer),               # W1
        _resident_spec((L, 1, F), single_buffer),               # b1
        _resident_spec((L, F, D), single_buffer),               # W2
        _resident_spec((D, CP), single_buffer),                 # Wc (lane-padded)
        _resident_spec((1, CP), single_buffer),                 # bc (lane-padded)
    ]

    kernel = functools.partial(forgetting_predictor_kernel, bf16_hidden=bf16_hidden)
    out = pl.pallas_call(
        kernel,
        out_shape=jax.ShapeDtypeStruct((n_pad, CP), jnp.bfloat16),
        grid=(num_steps,),
        in_specs=in_specs,
        out_specs=pl.BlockSpec((tile_n, CP), lambda i: (i, 0)),
        compiler_params=pltpu.CompilerParams(
            dimension_semantics=("parallel",),
            vmem_limit_bytes=VMEM_LIMIT_BYTES),
    )(x, *kernel_params)
    return jax.block_until_ready(out)


def forgetting_predictor(features, kernel_params):
    """features: [B, T, D] f32  ->  logits: [B, T, NUM_CLASSES] f32"""
    B, T, D = features.shape
    assert D == FEATURE_DIM
    N = B * T
    x = features.reshape(N, D).astype(jnp.float32)

    kind = _device_kind()
    # bf16 VALU exists on v6e/v7x only; keep the FFN hidden f32 on older chips.
    bf16_hidden = not (("v5" in kind) or ("v4" in kind) or ("v3" in kind))
    row_tile = ROW_TILE_BF16 if bf16_hidden else ROW_TILE_F32
    # v7x has two TensorCores: give the "parallel" grid axis >= 2 steps so both
    # cores get work even at small N (one extra ~0.35 us step is negligible).
    min_steps = 2 if ("v7" in kind or "7x" in kind) else 1

    # Minimal-padding tiling: spread N over the fewest steps, 8-row aligned,
    # so the last tile is never mostly zeros (N=300 -> 304 rows, not 512).
    num_steps = max(pl.cdiv(N, row_tile), min_steps)
    tile_n = _round_up(pl.cdiv(N, num_steps), 8)
    num_steps = pl.cdiv(N, tile_n)
    n_pad = tile_n * num_steps
    if n_pad != N:
        x = jnp.pad(x, ((0, n_pad - N), (0, 0)))

    # Try the most aggressive configuration first; fall back if this JAX build
    # rejects single-buffered resident weights (pl.Buffered(1)) or bf16 matmul
    # outputs.  Every configuration is numerically valid.
    configs = []
    for bh in ([True, False] if bf16_hidden else [False]):
        for sb in (True, False):
            configs.append((bh, sb))
    out, last_err = None, None
    for bh, sb in configs:
        try:
            out = _run_pallas(x, kernel_params, tile_n, num_steps, bh, sb)
            break
        except Exception as e:          # unsupported feature on this build
            last_err = e
    if out is None:
        raise last_err

    logits = out[:N, :NUM_CLASSES].astype(jnp.float32)
    return logits.reshape(B, T, NUM_CLASSES)


def reference_forward(features, f32_params):
    """Pure-JAX f32 reference (same folded algebra), for validation."""
    w_attn, vecs, w1, b1, w2, wc_p, bc_p = f32_params
    B, T, D = features.shape
    x = features.reshape(B * T, D).astype(jnp.float32)
    for l in range(NUM_LAYERS):
        b_attn, g1, be1 = vecs[l, 0:1], vecs[l, 1:2], vecs[l, 2:3]
        b2, g2, be2 = vecs[l, 3:4], vecs[l, 4:5], vecs[l, 5:6]
        # attention residual is folded into w_attn (= I + Wv Wo) in init_params
        x = _layer_norm(x @ w_attn[l] + b_attn, g1, be1)
        h = jnp.maximum(x @ w1[l] + b1[l], 0.0)
        x = _layer_norm(x + h @ w2[l] + b2, g2, be2)
    logits = x @ wc_p + bc_p
    return logits[:, :NUM_CLASSES].reshape(B, T, NUM_CLASSES)


if __name__ == "__main__":
    key = jax.random.PRNGKey(0)
    k_feat, k_par = jax.random.split(key)

    B, T = 2, 8
    features = jax.random.normal(k_feat, (B, T, FEATURE_DIM), jnp.float32)
    kernel_params, f32_params = init_params(k_par)

    logits = forgetting_predictor(features, kernel_params)
    jax.block_until_ready(logits)

    assert logits.shape == (B, T, NUM_CLASSES)
    assert bool(jnp.all(jnp.isfinite(logits)))

    ref = reference_forward(features, f32_params)
    max_err = float(jnp.max(jnp.abs(logits - ref)))
    assert max_err < 1e-1, f"kernel deviates from f32 reference: {max_err}"

    print("KERNEL_OK")
</pallas_src>

<mosaic_0001>
module attributes {stable_mosaic.version = 11 : i64} {
  func.func @forgetting_predictor_kernel(%arg0: i32, %arg1: memref<16x64xf32, #tpu.memory_space<vmem>>, %arg2: memref<2x64x64xbf16, #tpu.memory_space<vmem>>, %arg3: memref<2x8x64xf32, #tpu.memory_space<vmem>>, %arg4: memref<2x64x2048xbf16, #tpu.memory_space<vmem>>, %arg5: memref<2x1x2048xf32, #tpu.memory_space<vmem>>, %arg6: memref<2x2048x64xbf16, #tpu.memory_space<vmem>>, %arg7: memref<64x128xbf16, #tpu.memory_space<vmem>>, %arg8: memref<1x128xf32, #tpu.memory_space<vmem>>, %arg9: memref<16x128xbf16, #tpu.memory_space<vmem>>) attributes {dimension_semantics = [#tpu.dimension_semantics<parallel>], iteration_bounds = array<i64: 1>, scalar_prefetch = 0 : i64, scratch_operands = 0 : i64, tpu.core_type = #tpu.core_type<tc>, window_params = [{transform_indices = @transform_0, window_bounds = array<i64: 16, 64>}, {pipeline_mode = #tpu.pipeline_mode<synchronous>, transform_indices = @transform_1, window_bounds = array<i64: 2, 64, 64>}, {pipeline_mode = #tpu.pipeline_mode<synchronous>, transform_indices = @transform_2, window_bounds = array<i64: 2, 8, 64>}, {pipeline_mode = #tpu.pipeline_mode<synchronous>, transform_indices = @transform_3, window_bounds = array<i64: 2, 64, 2048>}, {pipeline_mode = #tpu.pipeline_mode<synchronous>, transform_indices = @transform_4, window_bounds = array<i64: 2, 1, 2048>}, {pipeline_mode = #tpu.pipeline_mode<synchronous>, transform_indices = @transform_5, window_bounds = array<i64: 2, 2048, 64>}, {pipeline_mode = #tpu.pipeline_mode<synchronous>, transform_indices = @transform_6, window_bounds = array<i64: 64, 128>}, {pipeline_mode = #tpu.pipeline_mode<synchronous>, transform_indices = @transform_7, window_bounds = array<i64: 1, 128>}, {transform_indices = @transform_8, window_bounds = array<i64: 16, 128>}]} {
    %c0 = arith.constant 0 : index
    %c0_0 = arith.constant 0 : index
    %0 = vector.load %arg1[%c0, %c0_0] : memref<16x64xf32, #tpu.memory_space<vmem>>, vector<16x64xf32>
    %c0_1 = arith.constant 0 : index
    %c0_2 = arith.constant 0 : index
    %c0_3 = arith.constant 0 : index
    %1 = vector.load %arg3[%c0_1, %c0_2, %c0_3] : memref<2x8x64xf32, #tpu.memory_space<vmem>>, vector<1x8x64xf32>
    %2 = vector.shape_cast %1 : vector<1x8x64xf32> to vector<8x64xf32>
    %3 = vector.extract_strided_slice %2 {offsets = [0, 0], sizes = [1, 64], strides = [1, 1]} : vector<8x64xf32> to vector<1x64xf32>
    %4 = vector.extract_strided_slice %2 {offsets = [1, 0], sizes = [1, 64], strides = [1, 1]} : vector<8x64xf32> to vector<1x64xf32>
    %5 = vector.extract_strided_slice %2 {offsets = [2, 0], sizes = [1, 64], strides = [1, 1]} : vector<8x64xf32> to vector<1x64xf32>
    %6 = vector.extract_strided_slice %2 {offsets = [3, 0], sizes = [1, 64], strides = [1, 1]} : vector<8x64xf32> to vector<1x64xf32>
    %7 = vector.extract_strided_slice %2 {offsets = [4, 0], sizes = [1, 64], strides = [1, 1]} : vector<8x64xf32> to vector<1x64xf32>
    %8 = vector.extract_strided_slice %2 {offsets = [5, 0], sizes = [1, 64], strides = [1, 1]} : vector<8x64xf32> to vector<1x64xf32>
    %9 = arith.truncf %0 : vector<16x64xf32> to vector<16x64xbf16>
    %c0_4 = arith.constant 0 : index
    %c0_5 = arith.constant 0 : index
    %c0_6 = arith.constant 0 : index
    %10 = vector.load %arg2[%c0_4, %c0_5, %c0_6] : memref<2x64x64xbf16, #tpu.memory_space<vmem>>, vector<1x64x64xbf16>
    %11 = vector.shape_cast %10 : vector<1x64x64xbf16> to vector<64x64xbf16>
    %cst = arith.constant dense<0.000000e+00> : vector<16x64xf32>
    %12 = tpu.matmul %9, %11, %cst {dimension_numbers = #tpu.dot_dimension_numbers<[1], [0], [0], [1], [0, 0, 1, 1], [], []>} : vector<16x64xbf16>, vector<64x64xbf16>, vector<16x64xf32> -> vector<16x64xf32>
    %13 = vector.broadcast %3 : vector<1x64xf32> to vector<16x64xf32>
    %14 = arith.addf %12, %13 : vector<16x64xf32>
    %cst_7 = arith.constant dense<0.000000e+00> : vector<16xf32>
    %15 = vector.multi_reduction <add>, %14, %cst_7 [1] : vector<16x64xf32> to vector<16xf32>
    %16 = vector.shape_cast %15 : vector<16xf32> to vector<16x1xf32>
    %cst_8 = arith.constant 6.400000e+01 : f32
    %17 = vector.broadcast %cst_8 : f32 to vector<16x1xf32>
    %18 = arith.divf %16, %17 : vector<16x1xf32>
    %19 = vector.broadcast %18 : vector<16x1xf32> to vector<16x64xf32>
    %20 = arith.subf %14, %19 : vector<16x64xf32>
    %21 = arith.mulf %20, %20 : vector<16x64xf32>
    %cst_9 = arith.constant dense<0.000000e+00> : vector<16xf32>
    %22 = vector.multi_reduction <add>, %21, %cst_9 [1] : vector<16x64xf32> to vector<16xf32>
    %23 = vector.shape_cast %22 : vector<16xf32> to vector<16x1xf32>
    %cst_10 = arith.constant 6.400000e+01 : f32
    %24 = vector.broadcast %cst_10 : f32 to vector<16x1xf32>
    %25 = arith.divf %23, %24 : vector<16x1xf32>
    %cst_11 = arith.constant 9.99999974E-6 : f32
    %26 = vector.broadcast %cst_11 : f32 to vector<16x1xf32>
    %27 = arith.addf %25, %26 : vector<16x1xf32>
    %28 = math.rsqrt %27 : vector<16x1xf32>
    %29 = vector.broadcast %28 : vector<16x1xf32> to vector<16x64xf32>
    %30 = arith.mulf %20, %29 : vector<16x64xf32>
    %31 = vector.broadcast %4 : vector<1x64xf32> to vector<16x64xf32>
    %32 = arith.mulf %30, %31 : vector<16x64xf32>
    %33 = vector.broadcast %5 : vector<1x64xf32> to vector<16x64xf32>
    %34 = arith.addf %32, %33 : vector<16x64xf32>
    %35 = arith.truncf %34 : vector<16x64xf32> to vector<16x64xbf16>
    %c0_12 = arith.constant 0 : index
    %c0_13 = arith.constant 0 : index
    %c0_14 = arith.constant 0 : index
    %36 = vector.load %arg4[%c0_12, %c0_13, %c0_14] : memref<2x64x2048xbf16, #tpu.memory_space<vmem>>, vector<1x64x2048xbf16>
    %37 = vector.shape_cast %36 : vector<1x64x2048xbf16> to vector<64x2048xbf16>
    %cst_15 = arith.constant dense<0.000000e+00> : vector<16x2048xf32>
    %38 = tpu.matmul %35, %37, %cst_15 {dimension_numbers = #tpu.dot_dimension_numbers<[1], [0], [0], [1], [0, 0, 1, 1], [], []>} : vector<16x64xbf16>, vector<64x2048xbf16>, vector<16x2048xf32> -> vector<16x2048xf32>
    %c0_16 = arith.constant 0 : index
    %c0_17 = arith.constant 0 : index
    %c0_18 = arith.constant 0 : index
    %39 = vector.load %arg5[%c0_16, %c0_17, %c0_18] : memref<2x1x2048xf32, #tpu.memory_space<vmem>>, vector<1x1x2048xf32>
    %40 = vector.shape_cast %39 : vector<1x1x2048xf32> to vector<1x2048xf32>
    %41 = vector.broadcast %40 : vector<1x2048xf32> to vector<16x2048xf32>
    %42 = arith.addf %38, %41 : vector<16x2048xf32>
    %cst_19 = arith.constant 0.000000e+00 : f32
    %43 = vector.broadcast %cst_19 : f32 to vector<16x2048xf32>
    %44 = arith.maximumf %42, %43 : vector<16x2048xf32>
    %45 = arith.truncf %44 : vector<16x2048xf32> to vector<16x2048xbf16>
    %c0_20 = arith.constant 0 : index
    %c0_21 = arith.constant 0 : index
    %c0_22 = arith.constant 0 : index
    %46 = vector.load %arg6[%c0_20, %c0_21, %c0_22] : memref<2x2048x64xbf16, #tpu.memory_space<vmem>>, vector<1x2048x64xbf16>
    %47 = vector.shape_cast %46 : vector<1x2048x64xbf16> to vector<2048x64xbf16>
    %cst_23 = arith.constant dense<0.000000e+00> : vector<16x64xf32>
    %48 = tpu.matmul %45, %47, %cst_23 {dimension_numbers = #tpu.dot_dimension_numbers<[1], [0], [0], [1], [0, 0, 1, 1], [], []>} : vector<16x2048xbf16>, vector<2048x64xbf16>, vector<16x64xf32> -> vector<16x64xf32>
    %49 = vector.broadcast %6 : vector<1x64xf32> to vector<16x64xf32>
    %50 = arith.addf %48, %49 : vector<16x64xf32>
    %51 = arith.addf %34, %50 : vector<16x64xf32>
    %cst_24 = arith.constant dense<0.000000e+00> : vector<16xf32>
    %52 = vector.multi_reduction <add>, %51, %cst_24 [1] : vector<16x64xf32> to vector<16xf32>
    %53 = vector.shape_cast %52 : vector<16xf32> to vector<16x1xf32>
    %cst_25 = arith.constant 6.400000e+01 : f32
    %54 = vector.broadcast %cst_25 : f32 to vector<16x1xf32>
    %55 = arith.divf %53, %54 : vector<16x1xf32>
    %56 = vector.broadcast %55 : vector<16x1xf32> to vector<16x64xf32>
    %57 = arith.subf %51, %56 : vector<16x64xf32>
    %58 = arith.mulf %57, %57 : vector<16x64xf32>
    %cst_26 = arith.constant dense<0.000000e+00> : vector<16xf32>
    %59 = vector.multi_reduction <add>, %58, %cst_26 [1] : vector<16x64xf32> to vector<16xf32>
    %60 = vector.shape_cast %59 : vector<16xf32> to vector<16x1xf32>
    %cst_27 = arith.constant 6.400000e+01 : f32
    %61 = vector.broadcast %cst_27 : f32 to vector<16x1xf32>
    %62 = arith.divf %60, %61 : vector<16x1xf32>
    %cst_28 = arith.constant 9.99999974E-6 : f32
    %63 = vector.broadcast %cst_28 : f32 to vector<16x1xf32>
    %64 = arith.addf %62, %63 : vector<16x1xf32>
    %65 = math.rsqrt %64 : vector<16x1xf32>
    %66 = vector.broadcast %65 : vector<16x1xf32> to vector<16x64xf32>
    %67 = arith.mulf %57, %66 : vector<16x64xf32>
    %68 = vector.broadcast %7 : vector<1x64xf32> to vector<16x64xf32>
    %69 = arith.mulf %67, %68 : vector<16x64xf32>
    %70 = vector.broadcast %8 : vector<1x64xf32> to vector<16x64xf32>
    %71 = arith.addf %69, %70 : vector<16x64xf32>
    %c1 = arith.constant 1 : index
    %c0_29 = arith.constant 0 : index
    %c0_30 = arith.constant 0 : index
    %72 = vector.load %arg3[%c1, %c0_29, %c0_30] : memref<2x8x64xf32, #tpu.memory_space<vmem>>, vector<1x8x64xf32>
    %73 = vector.shape_cast %72 : vector<1x8x64xf32> to vector<8x64xf32>
    %74 = vector.extract_strided_slice %73 {offsets = [0, 0], sizes = [1, 64], strides = [1, 1]} : vector<8x64xf32> to vector<1x64xf32>
    %75 = vector.extract_strided_slice %73 {offsets = [1, 0], sizes = [1, 64], strides = [1, 1]} : vector<8x64xf32> to vector<1x64xf32>
    %76 = vector.extract_strided_slice %73 {offsets = [2, 0], sizes = [1, 64], strides = [1, 1]} : vector<8x64xf32> to vector<1x64xf32>
    %77 = vector.extract_strided_slice %73 {offsets = [3, 0], sizes = [1, 64], strides = [1, 1]} : vector<8x64xf32> to vector<1x64xf32>
    %78 = vector.extract_strided_slice %73 {offsets = [4, 0], sizes = [1, 64], strides = [1, 1]} : vector<8x64xf32> to vector<1x64xf32>
    %79 = vector.extract_strided_slice %73 {offsets = [5, 0], sizes = [1, 64], strides = [1, 1]} : vector<8x64xf32> to vector<1x64xf32>
    %80 = arith.truncf %71 : vector<16x64xf32> to vector<16x64xbf16>
    %c1_31 = arith.constant 1 : index
    %c0_32 = arith.constant 0 : index
    %c0_33 = arith.constant 0 : index
    %81 = vector.load %arg2[%c1_31, %c0_32, %c0_33] : memref<2x64x64xbf16, #tpu.memory_space<vmem>>, vector<1x64x64xbf16>
    %82 = vector.shape_cast %81 : vector<1x64x64xbf16> to vector<64x64xbf16>
    %cst_34 = arith.constant dense<0.000000e+00> : vector<16x64xf32>
    %83 = tpu.matmul %80, %82, %cst_34 {dimension_numbers = #tpu.dot_dimension_numbers<[1], [0], [0], [1], [0, 0, 1, 1], [], []>} : vector<16x64xbf16>, vector<64x64xbf16>, vector<16x64xf32> -> vector<16x64xf32>
    %84 = vector.broadcast %74 : vector<1x64xf32> to vector<16x64xf32>
    %85 = arith.addf %83, %84 : vector<16x64xf32>
    %cst_35 = arith.constant dense<0.000000e+00> : vector<16xf32>
    %86 = vector.multi_reduction <add>, %85, %cst_35 [1] : vector<16x64xf32> to vector<16xf32>
    %87 = vector.shape_cast %86 : vector<16xf32> to vector<16x1xf32>
    %cst_36 = arith.constant 6.400000e+01 : f32
    %88 = vector.broadcast %cst_36 : f32 to vector<16x1xf32>
    %89 = arith.divf %87, %88 : vector<16x1xf32>
    %90 = vector.broadcast %89 : vector<16x1xf32> to vector<16x64xf32>
    %91 = arith.subf %85, %90 : vector<16x64xf32>
    %92 = arith.mulf %91, %91 : vector<16x64xf32>
    %cst_37 = arith.constant dense<0.000000e+00> : vector<16xf32>
    %93 = vector.multi_reduction <add>, %92, %cst_37 [1] : vector<16x64xf32> to vector<16xf32>
    %94 = vector.shape_cast %93 : vector<16xf32> to vector<16x1xf32>
    %cst_38 = arith.constant 6.400000e+01 : f32
    %95 = vector.broadcast %cst_38 : f32 to vector<16x1xf32>
    %96 = arith.divf %94, %95 : vector<16x1xf32>
    %cst_39 = arith.constant 9.99999974E-6 : f32
    %97 = vector.broadcast %cst_39 : f32 to vector<16x1xf32>
    %98 = arith.addf %96, %97 : vector<16x1xf32>
    %99 = math.rsqrt %98 : vector<16x1xf32>
    %100 = vector.broadcast %99 : vector<16x1xf32> to vector<16x64xf32>
    %101 = arith.mulf %91, %100 : vector<16x64xf32>
    %102 = vector.broadcast %75 : vector<1x64xf32> to vector<16x64xf32>
    %103 = arith.mulf %101, %102 : vector<16x64xf32>
    %104 = vector.broadcast %76 : vector<1x64xf32> to vector<16x64xf32>
    %105 = arith.addf %103, %104 : vector<16x64xf32>
    %106 = arith.truncf %105 : vector<16x64xf32> to vector<16x64xbf16>
    %c1_40 = arith.constant 1 : index
    %c0_41 = arith.constant 0 : index
    %c0_42 = arith.constant 0 : index
    %107 = vector.load %arg4[%c1_40, %c0_41, %c0_42] : memref<2x64x2048xbf16, #tpu.memory_space<vmem>>, vector<1x64x2048xbf16>
    %108 = vector.shape_cast %107 : vector<1x64x2048xbf16> to vector<64x2048xbf16>
    %cst_43 = arith.constant dense<0.000000e+00> : vector<16x2048xf32>
    %109 = tpu.matmul %106, %108, %cst_43 {dimension_numbers = #tpu.dot_dimension_numbers<[1], [0], [0], [1], [0, 0, 1, 1], [], []>} : vector<16x64xbf16>, vector<64x2048xbf16>, vector<16x2048xf32> -> vector<16x2048xf32>
    %c1_44 = arith.constant 1 : index
    %c0_45 = arith.constant 0 : index
    %c0_46 = arith.constant 0 : index
    %110 = vector.load %arg5[%c1_44, %c0_45, %c0_46] : memref<2x1x2048xf32, #tpu.memory_space<vmem>>, vector<1x1x2048xf32>
    %111 = vector.shape_cast %110 : vector<1x1x2048xf32> to vector<1x2048xf32>
    %112 = vector.broadcast %111 : vector<1x2048xf32> to vector<16x2048xf32>
    %113 = arith.addf %109, %112 : vector<16x2048xf32>
    %cst_47 = arith.constant 0.000000e+00 : f32
    %114 = vector.broadcast %cst_47 : f32 to vector<16x2048xf32>
    %115 = arith.maximumf %113, %114 : vector<16x2048xf32>
    %116 = arith.truncf %115 : vector<16x2048xf32> to vector<16x2048xbf16>
    %c1_48 = arith.constant 1 : index
    %c0_49 = arith.constant 0 : index
    %c0_50 = arith.constant 0 : index
    %117 = vector.load %arg6[%c1_48, %c0_49, %c0_50] : memref<2x2048x64xbf16, #tpu.memory_space<vmem>>, vector<1x2048x64xbf16>
    %118 = vector.shape_cast %117 : vector<1x2048x64xbf16> to vector<2048x64xbf16>
    %cst_51 = arith.constant dense<0.000000e+00> : vector<16x64xf32>
    %119 = tpu.matmul %116, %118, %cst_51 {dimension_numbers = #tpu.dot_dimension_numbers<[1], [0], [0], [1], [0, 0, 1, 1], [], []>} : vector<16x2048xbf16>, vector<2048x64xbf16>, vector<16x64xf32> -> vector<16x64xf32>
    %120 = vector.broadcast %77 : vector<1x64xf32> to vector<16x64xf32>
    %121 = arith.addf %119, %120 : vector<16x64xf32>
    %122 = arith.addf %105, %121 : vector<16x64xf32>
    %cst_52 = arith.constant dense<0.000000e+00> : vector<16xf32>
    %123 = vector.multi_reduction <add>, %122, %cst_52 [1] : vector<16x64xf32> to vector<16xf32>
    %124 = vector.shape_cast %123 : vector<16xf32> to vector<16x1xf32>
    %cst_53 = arith.constant 6.400000e+01 : f32
    %125 = vector.broadcast %cst_53 : f32 to vector<16x1xf32>
    %126 = arith.divf %124, %125 : vector<16x1xf32>
    %127 = vector.broadcast %126 : vector<16x1xf32> to vector<16x64xf32>
    %128 = arith.subf %122, %127 : vector<16x64xf32>
    %129 = arith.mulf %128, %128 : vector<16x64xf32>
    %cst_54 = arith.constant dense<0.000000e+00> : vector<16xf32>
    %130 = vector.multi_reduction <add>, %129, %cst_54 [1] : vector<16x64xf32> to vector<16xf32>
    %131 = vector.shape_cast %130 : vector<16xf32> to vector<16x1xf32>
    %cst_55 = arith.constant 6.400000e+01 : f32
    %132 = vector.broadcast %cst_55 : f32 to vector<16x1xf32>
    %133 = arith.divf %131, %132 : vector<16x1xf32>
    %cst_56 = arith.constant 9.99999974E-6 : f32
    %134 = vector.broadcast %cst_56 : f32 to vector<16x1xf32>
    %135 = arith.addf %133, %134 : vector<16x1xf32>
    %136 = math.rsqrt %135 : vector<16x1xf32>
    %137 = vector.broadcast %136 : vector<16x1xf32> to vector<16x64xf32>
    %138 = arith.mulf %128, %137 : vector<16x64xf32>
    %139 = vector.broadcast %78 : vector<1x64xf32> to vector<16x64xf32>
    %140 = arith.mulf %138, %139 : vector<16x64xf32>
    %141 = vector.broadcast %79 : vector<1x64xf32> to vector<16x64xf32>
    %142 = arith.addf %140, %141 : vector<16x64xf32>
    %143 = arith.truncf %142 : vector<16x64xf32> to vector<16x64xbf16>
    %c0_57 = arith.constant 0 : index
    %c0_58 = arith.constant 0 : index
    %144 = vector.load %arg7[%c0_57, %c0_58] : memref<64x128xbf16, #tpu.memory_space<vmem>>, vector<64x128xbf16>
    %cst_59 = arith.constant dense<0.000000e+00> : vector<16x128xf32>
    %145 = tpu.matmul %143, %144, %cst_59 {dimension_numbers = #tpu.dot_dimension_numbers<[1], [0], [0], [1], [0, 0, 1, 1], [], []>} : vector<16x64xbf16>, vector<64x128xbf16>, vector<16x128xf32> -> vector<16x128xf32>
    %c0_60 = arith.constant 0 : index
    %c0_61 = arith.constant 0 : index
    %146 = vector.load %arg8[%c0_60, %c0_61] : memref<1x128xf32, #tpu.memory_space<vmem>>, vector<1x128xf32>
    %147 = vector.broadcast %146 : vector<1x128xf32> to vector<16x128xf32>
    %148 = arith.addf %145, %147 : vector<16x128xf32>
    %149 = arith.truncf %148 : vector<16x128xf32> to vector<16x128xbf16>
    %c0_62 = arith.constant 0 : index
    %c0_63 = arith.constant 0 : index
    %150 = vector.load %arg9[%c0_62, %c0_63] : memref<16x128xbf16, #tpu.memory_space<vmem>>, vector<16x128xbf16>
    tpu.vector_store %arg9[%c0_62, %c0_63], %149 {strides = array<i32>} : memref<16x128xbf16, #tpu.memory_space<vmem>>, vector<16x128xbf16>,
    return
  }
  func.func @transform_0(%arg0: i32) -> (i32, i32) {
    %c0_i32 = arith.constant 0 : i32
    %c0_i32_0 = arith.constant 0 : i32
    return %arg0, %c0_i32 : i32, i32
  }
  func.func @transform_1(%arg0: i32) -> (i32, i32, i32) {
    %c0_i32 = arith.constant 0 : i32
    %c0_i32_0 = arith.constant 0 : i32
    %c0_i32_1 = arith.constant 0 : i32
    %c0_i32_2 = arith.constant 0 : i32
    return %c0_i32, %c0_i32_0, %c0_i32_1 : i32, i32, i32
  }
  func.func @transform_2(%arg0: i32) -> (i32, i32, i32) {
    %c0_i32 = arith.constant 0 : i32
    %c0_i32_0 = arith.constant 0 : i32
    %c0_i32_1 = arith.constant 0 : i32
    %c0_i32_2 = arith.constant 0 : i32
    return %c0_i32, %c0_i32_0, %c0_i32_1 : i32, i32, i32
  }
  func.func @transform_3(%arg0: i32) -> (i32, i32, i32) {
    %c0_i32 = arith.constant 0 : i32
    %c0_i32_0 = arith.constant 0 : i32
    %c0_i32_1 = arith.constant 0 : i32
    %c0_i32_2 = arith.constant 0 : i32
    return %c0_i32, %c0_i32_0, %c0_i32_1 : i32, i32, i32
  }
  func.func @transform_4(%arg0: i32) -> (i32, i32, i32) {
    %c0_i32 = arith.constant 0 : i32
    %c0_i32_0 = arith.constant 0 : i32
    %c0_i32_1 = arith.constant 0 : i32
    %c0_i32_2 = arith.constant 0 : i32
    return %c0_i32, %c0_i32_0, %c0_i32_1 : i32, i32, i32
  }
  func.func @transform_5(%arg0: i32) -> (i32, i32, i32) {
    %c0_i32 = arith.constant 0 : i32
    %c0_i32_0 = arith.constant 0 : i32
    %c0_i32_1 = arith.constant 0 : i32
    %c0_i32_2 = arith.constant 0 : i32
    return %c0_i32, %c0_i32_0, %c0_i32_1 : i32, i32, i32
  }
  func.func @transform_6(%arg0: i32) -> (i32, i32) {
    %c0_i32 = arith.constant 0 : i32
    %c0_i32_0 = arith.constant 0 : i32
    %c0_i32_1 = arith.constant 0 : i32
    return %c0_i32, %c0_i32_0 : i32, i32
  }
  func.func @transform_7(%arg0: i32) -> (i32, i32) {
    %c0_i32 = arith.constant 0 : i32
    %c0_i32_0 = arith.constant 0 : i32
    %c0_i32_1 = arith.constant 0 : i32
    return %c0_i32, %c0_i32_0 : i32, i32
  }
  func.func @transform_8(%arg0: i32) -> (i32, i32) {
    %c0_i32 = arith.constant 0 : i32
    %c0_i32_0 = arith.constant 0 : i32
    return %arg0, %c0_i32 : i32, i32
  }
}

module attributes {stable_mosaic.version = 11 : i64} {
  func.func @forgetting_predictor_kernel(%arg0: i32, %arg1: memref<16x64xf32, #tpu.memory_space<vmem>>, %arg2: memref<2x64x64xbf16, #tpu.memory_space<vmem>>, %arg3: memref<2x8x64xf32, #tpu.memory_space<vmem>>, %arg4: memref<2x64x2048xbf16, #tpu.memory_space<vmem>>, %arg5: memref<2x1x2048xf32, #tpu.memory_space<vmem>>, %arg6: memref<2x2048x64xbf16, #tpu.memory_space<vmem>>, %arg7: memref<64x128xbf16, #tpu.memory_space<vmem>>, %arg8: memref<1x128xf32, #tpu.memory_space<vmem>>, %arg9: memref<16x128xbf16, #tpu.memory_space<vmem>>) attributes {dimension_semantics = [#tpu.dimension_semantics<parallel>], iteration_bounds = array<i64: 1>, scalar_prefetch = 0 : i64, scratch_operands = 0 : i64, tpu.core_type = #tpu.core_type<tc>, window_params = [{transform_indices = @transform_0, window_bounds = array<i64: 16, 64>}, {pipeline_mode = #tpu.pipeline_mode<synchronous>, transform_indices = @transform_1, window_bounds = array<i64: 2, 64, 64>}, {pipeline_mode = #tpu.pipeline_mode<synchronous>, transform_indices = @transform_2, window_bounds = array<i64: 2, 8, 64>}, {pipeline_mode = #tpu.pipeline_mode<synchronous>, transform_indices = @transform_3, window_bounds = array<i64: 2, 64, 2048>}, {pipeline_mode = #tpu.pipeline_mode<synchronous>, transform_indices = @transform_4, window_bounds = array<i64: 2, 1, 2048>}, {pipeline_mode = #tpu.pipeline_mode<synchronous>, transform_indices = @transform_5, window_bounds = array<i64: 2, 2048, 64>}, {pipeline_mode = #tpu.pipeline_mode<synchronous>, transform_indices = @transform_6, window_bounds = array<i64: 64, 128>}, {pipeline_mode = #tpu.pipeline_mode<synchronous>, transform_indices = @transform_7, window_bounds = array<i64: 1, 128>}, {transform_indices = @transform_8, window_bounds = array<i64: 16, 128>}]} {
    %c0 = arith.constant 0 : index
    %c0_0 = arith.constant 0 : index
    %0 = vector.load %arg1[%c0, %c0_0] : memref<16x64xf32, #tpu.memory_space<vmem>>, vector<16x64xf32>
    %c0_1 = arith.constant 0 : index
    %c0_2 = arith.constant 0 : index
    %c0_3 = arith.constant 0 : index
    %1 = vector.load %arg3[%c0_1, %c0_2, %c0_3] : memref<2x8x64xf32, #tpu.memory_space<vmem>>, vector<1x8x64xf32>
    %2 = vector.shape_cast %1 : vector<1x8x64xf32> to vector<8x64xf32>
    %3 = vector.extract_strided_slice %2 {offsets = [0, 0], sizes = [1, 64], strides = [1, 1]} : vector<8x64xf32> to vector<1x64xf32>
    %4 = vector.extract_strided_slice %2 {offsets = [1, 0], sizes = [1, 64], strides = [1, 1]} : vector<8x64xf32> to vector<1x64xf32>
    %5 = vector.extract_strided_slice %2 {offsets = [2, 0], sizes = [1, 64], strides = [1, 1]} : vector<8x64xf32> to vector<1x64xf32>
    %6 = vector.extract_strided_slice %2 {offsets = [3, 0], sizes = [1, 64], strides = [1, 1]} : vector<8x64xf32> to vector<1x64xf32>
    %7 = vector.extract_strided_slice %2 {offsets = [4, 0], sizes = [1, 64], strides = [1, 1]} : vector<8x64xf32> to vector<1x64xf32>
    %8 = vector.extract_strided_slice %2 {offsets = [5, 0], sizes = [1, 64], strides = [1, 1]} : vector<8x64xf32> to vector<1x64xf32>
    %9 = arith.truncf %0 : vector<16x64xf32> to vector<16x64xbf16>
    %c0_4 = arith.constant 0 : index
    %c0_5 = arith.constant 0 : index
    %c0_6 = arith.constant 0 : index
    %10 = vector.load %arg2[%c0_4, %c0_5, %c0_6] : memref<2x64x64xbf16, #tpu.memory_space<vmem>>, vector<1x64x64xbf16>
    %11 = vector.shape_cast %10 : vector<1x64x64xbf16> to vector<64x64xbf16>
    %cst = arith.constant dense<0.000000e+00> : vector<16x64xf32>
    %12 = tpu.matmul %9, %11, %cst {dimension_numbers = #tpu.dot_dimension_numbers<[1], [0], [0], [1], [0, 0, 1, 1], [], []>} : vector<16x64xbf16>, vector<64x64xbf16>, vector<16x64xf32> -> vector<16x64xf32>
    %13 = vector.broadcast %3 : vector<1x64xf32> to vector<16x64xf32>
    %14 = arith.addf %12, %13 : vector<16x64xf32>
    %cst_7 = arith.constant dense<0.000000e+00> : vector<16xf32>
    %15 = vector.multi_reduction <add>, %14, %cst_7 [1] : vector<16x64xf32> to vector<16xf32>
    %16 = vector.shape_cast %15 : vector<16xf32> to vector<16x1xf32>
    %cst_8 = arith.constant 6.400000e+01 : f32
    %17 = vector.broadcast %cst_8 : f32 to vector<16x1xf32>
    %18 = arith.divf %16, %17 : vector<16x1xf32>
    %19 = vector.broadcast %18 : vector<16x1xf32> to vector<16x64xf32>
    %20 = arith.subf %14, %19 : vector<16x64xf32>
    %21 = arith.mulf %20, %20 : vector<16x64xf32>
    %cst_9 = arith.constant dense<0.000000e+00> : vector<16xf32>
    %22 = vector.multi_reduction <add>, %21, %cst_9 [1] : vector<16x64xf32> to vector<16xf32>
    %23 = vector.shape_cast %22 : vector<16xf32> to vector<16x1xf32>
    %cst_10 = arith.constant 6.400000e+01 : f32
    %24 = vector.broadcast %cst_10 : f32 to vector<16x1xf32>
    %25 = arith.divf %23, %24 : vector<16x1xf32>
    %cst_11 = arith.constant 9.99999974E-6 : f32
    %26 = vector.broadcast %cst_11 : f32 to vector<16x1xf32>
    %27 = arith.addf %25, %26 : vector<16x1xf32>
    %28 = math.rsqrt %27 : vector<16x1xf32>
    %29 = vector.broadcast %28 : vector<16x1xf32> to vector<16x64xf32>
    %30 = arith.mulf %20, %29 : vector<16x64xf32>
    %31 = vector.broadcast %4 : vector<1x64xf32> to vector<16x64xf32>
    %32 = arith.mulf %30, %31 : vector<16x64xf32>
    %33 = vector.broadcast %5 : vector<1x64xf32> to vector<16x64xf32>
    %34 = arith.addf %32, %33 : vector<16x64xf32>
    %35 = arith.truncf %34 : vector<16x64xf32> to vector<16x64xbf16>
    %c0_12 = arith.constant 0 : index
    %c0_13 = arith.constant 0 : index
    %c0_14 = arith.constant 0 : index
    %36 = vector.load %arg4[%c0_12, %c0_13, %c0_14] : memref<2x64x2048xbf16, #tpu.memory_space<vmem>>, vector<1x64x2048xbf16>
    %37 = vector.shape_cast %36 : vector<1x64x2048xbf16> to vector<64x2048xbf16>
    %cst_15 = arith.constant dense<0.000000e+00> : vector<16x2048xf32>
    %38 = tpu.matmul %35, %37, %cst_15 {dimension_numbers = #tpu.dot_dimension_numbers<[1], [0], [0], [1], [0, 0, 1, 1], [], []>} : vector<16x64xbf16>, vector<64x2048xbf16>, vector<16x2048xf32> -> vector<16x2048xf32>
    %c0_16 = arith.constant 0 : index
    %c0_17 = arith.constant 0 : index
    %c0_18 = arith.constant 0 : index
    %39 = vector.load %arg5[%c0_16, %c0_17, %c0_18] : memref<2x1x2048xf32, #tpu.memory_space<vmem>>, vector<1x1x2048xf32>
    %40 = vector.shape_cast %39 : vector<1x1x2048xf32> to vector<1x2048xf32>
    %41 = vector.broadcast %40 : vector<1x2048xf32> to vector<16x2048xf32>
    %42 = arith.addf %38, %41 : vector<16x2048xf32>
    %cst_19 = arith.constant 0.000000e+00 : f32
    %43 = vector.broadcast %cst_19 : f32 to vector<16x2048xf32>
    %44 = arith.maximumf %42, %43 : vector<16x2048xf32>
    %45 = arith.truncf %44 : vector<16x2048xf32> to vector<16x2048xbf16>
    %c0_20 = arith.constant 0 : index
    %c0_21 = arith.constant 0 : index
    %c0_22 = arith.constant 0 : index
    %46 = vector.load %arg6[%c0_20, %c0_21, %c0_22] : memref<2x2048x64xbf16, #tpu.memory_space<vmem>>, vector<1x2048x64xbf16>
    %47 = vector.shape_cast %46 : vector<1x2048x64xbf16> to vector<2048x64xbf16>
    %cst_23 = arith.constant dense<0.000000e+00> : vector<16x64xf32>
    %48 = tpu.matmul %45, %47, %cst_23 {dimension_numbers = #tpu.dot_dimension_numbers<[1], [0], [0], [1], [0, 0, 1, 1], [], []>} : vector<16x2048xbf16>, vector<2048x64xbf16>, vector<16x64xf32> -> vector<16x64xf32>
    %49 = vector.broadcast %6 : vector<1x64xf32> to vector<16x64xf32>
    %50 = arith.addf %48, %49 : vector<16x64xf32>
    %51 = arith.addf %34, %50 : vector<16x64xf32>
    %cst_24 = arith.constant dense<0.000000e+00> : vector<16xf32>
    %52 = vector.multi_reduction <add>, %51, %cst_24 [1] : vector<16x64xf32> to vector<16xf32>
    %53 = vector.shape_cast %52 : vector<16xf32> to vector<16x1xf32>
    %cst_25 = arith.constant 6.400000e+01 : f32
    %54 = vector.broadcast %cst_25 : f32 to vector<16x1xf32>
    %55 = arith.divf %53, %54 : vector<16x1xf32>
    %56 = vector.broadcast %55 : vector<16x1xf32> to vector<16x64xf32>
    %57 = arith.subf %51, %56 : vector<16x64xf32>
    %58 = arith.mulf %57, %57 : vector<16x64xf32>
    %cst_26 = arith.constant dense<0.000000e+00> : vector<16xf32>
    %59 = vector.multi_reduction <add>, %58, %cst_26 [1] : vector<16x64xf32> to vector<16xf32>
    %60 = vector.shape_cast %59 : vector<16xf32> to vector<16x1xf32>
    %cst_27 = arith.constant 6.400000e+01 : f32
    %61 = vector.broadcast %cst_27 : f32 to vector<16x1xf32>
    %62 = arith.divf %60, %61 : vector<16x1xf32>
    %cst_28 = arith.constant 9.99999974E-6 : f32
    %63 = vector.broadcast %cst_28 : f32 to vector<16x1xf32>
    %64 = arith.addf %62, %63 : vector<16x1xf32>
    %65 = math.rsqrt %64 : vector<16x1xf32>
    %66 = vector.broadcast %65 : vector<16x1xf32> to vector<16x64xf32>
    %67 = arith.mulf %57, %66 : vector<16x64xf32>
    %68 = vector.broadcast %7 : vector<1x64xf32> to vector<16x64xf32>
    %69 = arith.mulf %67, %68 : vector<16x64xf32>
    %70 = vector.broadcast %8 : vector<1x64xf32> to vector<16x64xf32>
    %71 = arith.addf %69, %70 : vector<16x64xf32>
    %c1 = arith.constant 1 : index
    %c0_29 = arith.constant 0 : index
    %c0_30 = arith.constant 0 : index
    %72 = vector.load %arg3[%c1, %c0_29, %c0_30] : memref<2x8x64xf32, #tpu.memory_space<vmem>>, vector<1x8x64xf32>
    %73 = vector.shape_cast %72 : vector<1x8x64xf32> to vector<8x64xf32>
    %74 = vector.extract_strided_slice %73 {offsets = [0, 0], sizes = [1, 64], strides = [1, 1]} : vector<8x64xf32> to vector<1x64xf32>
    %75 = vector.extract_strided_slice %73 {offsets = [1, 0], sizes = [1, 64], strides = [1, 1]} : vector<8x64xf32> to vector<1x64xf32>
    %76 = vector.extract_strided_slice %73 {offsets = [2, 0], sizes = [1, 64], strides = [1, 1]} : vector<8x64xf32> to vector<1x64xf32>
    %77 = vector.extract_strided_slice %73 {offsets = [3, 0], sizes = [1, 64], strides = [1, 1]} : vector<8x64xf32> to vector<1x64xf32>
    %78 = vector.extract_strided_slice %73 {offsets = [4, 0], sizes = [1, 64], strides = [1, 1]} : vector<8x64xf32> to vector<1x64xf32>
    %79 = vector.extract_strided_slice %73 {offsets = [5, 0], sizes = [1, 64], strides = [1, 1]} : vector<8x64xf32> to vector<1x64xf32>
    %80 = arith.truncf %71 : vector<16x64xf32> to vector<16x64xbf16>
    %c1_31 = arith.constant 1 : index
    %c0_32 = arith.constant 0 : index
    %c0_33 = arith.constant 0 : index
    %81 = vector.load %arg2[%c1_31, %c0_32, %c0_33] : memref<2x64x64xbf16, #tpu.memory_space<vmem>>, vector<1x64x64xbf16>
    %82 = vector.shape_cast %81 : vector<1x64x64xbf16> to vector<64x64xbf16>
    %cst_34 = arith.constant dense<0.000000e+00> : vector<16x64xf32>
    %83 = tpu.matmul %80, %82, %cst_34 {dimension_numbers = #tpu.dot_dimension_numbers<[1], [0], [0], [1], [0, 0, 1, 1], [], []>} : vector<16x64xbf16>, vector<64x64xbf16>, vector<16x64xf32> -> vector<16x64xf32>
    %84 = vector.broadcast %74 : vector<1x64xf32> to vector<16x64xf32>
    %85 = arith.addf %83, %84 : vector<16x64xf32>
    %cst_35 = arith.constant dense<0.000000e+00> : vector<16xf32>
    %86 = vector.multi_reduction <add>, %85, %cst_35 [1] : vector<16x64xf32> to vector<16xf32>
    %87 = vector.shape_cast %86 : vector<16xf32> to vector<16x1xf32>
    %cst_36 = arith.constant 6.400000e+01 : f32
    %88 = vector.broadcast %cst_36 : f32 to vector<16x1xf32>
    %89 = arith.divf %87, %88 : vector<16x1xf32>
    %90 = vector.broadcast %89 : vector<16x1xf32> to vector<16x64xf32>
    %91 = arith.subf %85, %90 : vector<16x64xf32>
    %92 = arith.mulf %91, %91 : vector<16x64xf32>
    %cst_37 = arith.constant dense<0.000000e+00> : vector<16xf32>
    %93 = vector.multi_reduction <add>, %92, %cst_37 [1] : vector<16x64xf32> to vector<16xf32>
    %94 = vector.shape_cast %93 : vector<16xf32> to vector<16x1xf32>
    %cst_38 = arith.constant 6.400000e+01 : f32
    %95 = vector.broadcast %cst_38 : f32 to vector<16x1xf32>
    %96 = arith.divf %94, %95 : vector<16x1xf32>
    %cst_39 = arith.constant 9.99999974E-6 : f32
    %97 = vector.broadcast %cst_39 : f32 to vector<16x1xf32>
    %98 = arith.addf %96, %97 : vector<16x1xf32>
    %99 = math.rsqrt %98 : vector<16x1xf32>
    %100 = vector.broadcast %99 : vector<16x1xf32> to vector<16x64xf32>
    %101 = arith.mulf %91, %100 : vector<16x64xf32>
    %102 = vector.broadcast %75 : vector<1x64xf32> to vector<16x64xf32>
    %103 = arith.mulf %101, %102 : vector<16x64xf32>
    %104 = vector.broadcast %76 : vector<1x64xf32> to vector<16x64xf32>
    %105 = arith.addf %103, %104 : vector<16x64xf32>
    %106 = arith.truncf %105 : vector<16x64xf32> to vector<16x64xbf16>
    %c1_40 = arith.constant 1 : index
    %c0_41 = arith.constant 0 : index
    %c0_42 = arith.constant 0 : index
    %107 = vector.load %arg4[%c1_40, %c0_41, %c0_42] : memref<2x64x2048xbf16, #tpu.memory_space<vmem>>, vector<1x64x2048xbf16>
    %108 = vector.shape_cast %107 : vector<1x64x2048xbf16> to vector<64x2048xbf16>
    %cst_43 = arith.constant dense<0.000000e+00> : vector<16x2048xf32>
    %109 = tpu.matmul %106, %108, %cst_43 {dimension_numbers = #tpu.dot_dimension_numbers<[1], [0], [0], [1], [0, 0, 1, 1], [], []>} : vector<16x64xbf16>, vector<64x2048xbf16>, vector<16x2048xf32> -> vector<16x2048xf32>
    %c1_44 = arith.constant 1 : index
    %c0_45 = arith.constant 0 : index
    %c0_46 = arith.constant 0 : index
    %110 = vector.load %arg5[%c1_44, %c0_45, %c0_46] : memref<2x1x2048xf32, #tpu.memory_space<vmem>>, vector<1x1x2048xf32>
    %111 = vector.shape_cast %110 : vector<1x1x2048xf32> to vector<1x2048xf32>
    %112 = vector.broadcast %111 : vector<1x2048xf32> to vector<16x2048xf32>
    %113 = arith.addf %109, %112 : vector<16x2048xf32>
    %cst_47 = arith.constant 0.000000e+00 : f32
    %114 = vector.broadcast %cst_47 : f32 to vector<16x2048xf32>
    %115 = arith.maximumf %113, %114 : vector<16x2048xf32>
    %116 = arith.truncf %115 : vector<16x2048xf32> to vector<16x2048xbf16>
    %c1_48 = arith.constant 1 : index
    %c0_49 = arith.constant 0 : index
    %c0_50 = arith.constant 0 : index
    %117 = vector.load %arg6[%c1_48, %c0_49, %c0_50] : memref<2x2048x64xbf16, #tpu.memory_space<vmem>>, vector<1x2048x64xbf16>
    %118 = vector.shape_cast %117 : vector<1x2048x64xbf16> to vector<2048x64xbf16>
    %cst_51 = arith.constant dense<0.000000e+00> : vector<16x64xf32>
    %119 = tpu.matmul %116, %118, %cst_51 {dimension_numbers = #tpu.dot_dimension_numbers<[1], [0], [0], [1], [0, 0, 1, 1], [], []>} : vector<16x2048xbf16>, vector<2048x64xbf16>, vector<16x64xf32> -> vector<16x64xf32>
    %120 = vector.broadcast %77 : vector<1x64xf32> to vector<16x64xf32>
    %121 = arith.addf %119, %120 : vector<16x64xf32>
    %122 = arith.addf %105, %121 : vector<16x64xf32>
    %cst_52 = arith.constant dense<0.000000e+00> : vector<16xf32>
    %123 = vector.multi_reduction <add>, %122, %cst_52 [1] : vector<16x64xf32> to vector<16xf32>
    %124 = vector.shape_cast %123 : vector<16xf32> to vector<16x1xf32>
    %cst_53 = arith.constant 6.400000e+01 : f32
    %125 = vector.broadcast %cst_53 : f32 to vector<16x1xf32>
    %126 = arith.divf %124, %125 : vector<16x1xf32>
    %127 = vector.broadcast %126 : vector<16x1xf32> to vector<16x64xf32>
    %128 = arith.subf %122, %127 : vector<16x64xf32>
    %129 = arith.mulf %128, %128 : vector<16x64xf32>
    %cst_54 = arith.constant dense<0.000000e+00> : vector<16xf32>
    %130 = vector.multi_reduction <add>, %129, %cst_54 [1] : vector<16x64xf32> to vector<16xf32>
    %131 = vector.shape_cast %130 : vector<16xf32> to vector<16x1xf32>
    %cst_55 = arith.constant 6.400000e+01 : f32
    %132 = vector.broadcast %cst_55 : f32 to vector<16x1xf32>
    %133 = arith.divf %131, %132 : vector<16x1xf32>
    %cst_56 = arith.constant 9.99999974E-6 : f32
    %134 = vector.broadcast %cst_56 : f32 to vector<16x1xf32>
    %135 = arith.addf %133, %134 : vector<16x1xf32>
    %136 = math.rsqrt %135 : vector<16x1xf32>
    %137 = vector.broadcast %136 : vector<16x1xf32> to vector<16x64xf32>
    %138 = arith.mulf %128, %137 : vector<16x64xf32>
    %139 = vector.broadcast %78 : vector<1x64xf32> to vector<16x64xf32>
    %140 = arith.mulf %138, %139 : vector<16x64xf32>
    %141 = vector.broadcast %79 : vector<1x64xf32> to vector<16x64xf32>
    %142 = arith.addf %140, %141 : vector<16x64xf32>
    %143 = arith.truncf %142 : vector<16x64xf32> to vector<16x64xbf16>
    %c0_57 = arith.constant 0 : index
    %c0_58 = arith.constant 0 : index
    %144 = vector.load %arg7[%c0_57, %c0_58] : memref<64x128xbf16, #tpu.memory_space<vmem>>, vector<64x128xbf16>
    %cst_59 = arith.constant dense<0.000000e+00> : vector<16x128xf32>
    %145 = tpu.matmul %143, %144, %cst_59 {dimension_numbers = #tpu.dot_dimension_numbers<[1], [0], [0], [1], [0, 0, 1, 1], [], []>} : vector<16x64xbf16>, vector<64x128xbf16>, vector<16x128xf32> -> vector<16x128xf32>
    %c0_60 = arith.constant 0 : index
    %c0_61 = arith.constant 0 : index
    %146 = vector.load %arg8[%c0_60, %c0_61] : memref<1x128xf32, #tpu.memory_space<vmem>>, vector<1x128xf32>
    %147 = vector.broadcast %146 : vector<1x128xf32> to vector<16x128xf32>
    %148 = arith.addf %145, %147 : vector<16x128xf32>
    %149 = arith.truncf %148 : vector<16x128xf32> to vector<16x128xbf16>
    %c0_62 = arith.constant 0 : index
    %c0_63 = arith.constant 0 : index
    %150 = vector.load %arg9[%c0_62, %c0_63] : memref<16x128xbf16, #tpu.memory_space<vmem>>, vector<16x128xbf16>
    tpu.vector_store %arg9[%c0_62, %c0_63], %149 {strides = array<i32>} : memref<16x128xbf16, #tpu.memory_space<vmem>>, vector<16x128xbf16>,
    return
  }
  func.func @transform_0(%arg0: i32) -> (i32, i32) {
    %c0_i32 = arith.constant 0 : i32
    %c0_i32_0 = arith.constant 0 : i32
    return %arg0, %c0_i32 : i32, i32
  }
  func.func @transform_1(%arg0: i32) -> (i32, i32, i32) {
    %c0_i32 = arith.constant 0 : i32
    %c0_i32_0 = arith.constant 0 : i32
    %c0_i32_1 = arith.constant 0 : i32
    %c0_i32_2 = arith.constant 0 : i32
    return %c0_i32, %c0_i32_0, %c0_i32_1 : i32, i32, i32
  }
  func.func @transform_2(%arg0: i32) -> (i32, i32, i32) {
    %c0_i32 = arith.constant 0 : i32
    %c0_i32_0 = arith.constant 0 : i32
    %c0_i32_1 = arith.constant 0 : i32
    %c0_i32_2 = arith.constant 0 : i32
    return %c0_i32, %c0_i32_0, %c0_i32_1 : i32, i32, i32
  }
  func.func @transform_3(%arg0: i32) -> (i32, i32, i32) {
    %c0_i32 = arith.constant 0 : i32
    %c0_i32_0 = arith.constant 0 : i32
    %c0_i32_1 = arith.constant 0 : i32
    %c0_i32_2 = arith.constant 0 : i32
    return %c0_i32, %c0_i32_0, %c0_i32_1 : i32, i32, i32
  }
  func.func @transform_4(%arg0: i32) -> (i32, i32, i32) {
    %c0_i32 = arith.constant 0 : i32
    %c0_i32_0 = arith.constant 0 : i32
    %c0_i32_1 = arith.constant 0 : i32
    %c0_i32_2 = arith.constant 0 : i32
    return %c0_i32, %c0_i32_0, %c0_i32_1 : i32, i32, i32
  }
  func.func @transform_5(%arg0: i32) -> (i32, i32, i32) {
    %c0_i32 = arith.constant 0 : i32
    %c0_i32_0 = arith.constant 0 : i32
    %c0_i32_1 = arith.constant 0 : i32
    %c0_i32_2 = arith.constant 0 : i32
    return %c0_i32, %c0_i32_0, %c0_i32_1 : i32, i32, i32
  }
  func.func @transform_6(%arg0: i32) -> (i32, i32) {
    %c0_i32 = arith.constant 0 : i32
    %c0_i32_0 = arith.constant 0 : i32
    %c0_i32_1 = arith.constant 0 : i32
    return %c0_i32, %c0_i32_0 : i32, i32
  }
  func.func @transform_7(%arg0: i32) -> (i32, i32) {
    %c0_i32 = arith.constant 0 : i32
    %c0_i32_0 = arith.constant 0 : i32
    %c0_i32_1 = arith.constant 0 : i32
    return %c0_i32, %c0_i32_0 : i32, i32
  }
  func.func @transform_8(%arg0: i32) -> (i32, i32) {
    %c0_i32 = arith.constant 0 : i32
    %c0_i32_0 = arith.constant 0 : i32
    return %arg0, %c0_i32 : i32, i32
  }
}

</mosaic_0001>

<bundles_post_ra>
// kernel: tpu_custom_call.1
= control target key start
LH: loop header
LB: loop body
LE: loop exit
PB: predicated region body
PF: predicated region fallthrough
CT: control target
= control target key end

     0   :  { %v6385_v1 = vmov 0.0   ;;  %vm6386_vm0 = vmmov 0   ;;  %vm71_vm1 = vcmask 523264   ;;  %s7940_s0 = inlined_call_operand.vmem [shape: f32[16,64], index: 0, kind: input, shape index: {}]   ;;  %s7941_s1 = inlined_call_operand.vmem [shape: bf16[2,64,64], index: 1, kind: input, shape index: {}]   ;;  %s7942_s2 = inlined_call_operand.vmem [shape: f32[2,8,64], index: 2, kind: input, shape index: {}]   ;;  %s7943_s3 = inlined_call_operand.vmem [shape: bf16[2,64,2048], index: 3, kind: input, shape index: {}]   ;;  %s7944_s4 = inlined_call_operand.vmem [shape: f32[2,1,2048], index: 4, kind: input, shape index: {}]   ;;  %s7945_s5 = inlined_call_operand.vmem [shape: bf16[2,2048,64], index: 5, kind: input, shape index: {}]   ;;  %s7946_s6 = inlined_call_operand.vmem [shape: bf16[64,128], index: 6, kind: input, shape index: {}]   ;;  %s7947_s7 = inlined_call_operand.vmem [shape: f32[1,128], index: 7, kind: input, shape index: {}]   ;;  %s7948_s8 = inlined_call_operand.hbm [shape: bf16[16,128], index: 8, kind: output, shape index: {}]  }
   0x1   :  { %v6075_v0 = vld [vmem:[%s7941_s1] sm:$0xff]   ;;  %6033 = vmatprep.subr.bf16.mxu0 %v6385_v1  ;;  %v6076_v2 = vld [vmem:[%s7941_s1 + $0x8] sm:$0xff]   ;;  %6041 = vmatprep.mubr.msk.bf16.mxu0 %vm6386_vm0, %v6385_v1  ;;  %v6077_v3 = vld [vmem:[%s7941_s1 + $0x10] sm:$0xff]  }
   0x2   :  { %6034 = vmatpush3.bf16.msra.mxu0 %v6075_v0  ;;  %v6078_v4 = vld [vmem:[%s7941_s1 + $0x18] sm:$0xff]   ;;  %v31_v5 = vld [vmem:[%s7940_s0] sm:$0xff]  ;;  %v32_v6 = vld [vmem:[%s7940_s0 + $0x8] sm:$0xff] }
   0x3   :  { %6035 = vmatprep.subr.bf16.mxu0 %v6385_v1  ;;  %v34_v7 = vpack.c.bf16 %v32_v6, %v31_v5 }
   0x6   :  { %6036 = vmatpush3.bf16.msra.mxu0 %v6076_v2 }
   0x7   :  { %6037 = vmatprep.subr.bf16.mxu0 %v6385_v1 }
   0xa   :  { %6038 = vmatpush3.bf16.msra.mxu0 %v6077_v3 }
   0xb   :  { %6039 = vmatprep.subr.bf16.mxu0 %v6385_v1 }
   0xe   :  { %6040 = vmatpush3.bf16.msra.mxu0 %v6078_v4 }
  0x11   :  { %6042 = vmatmul.mubr.msk.bf16.vlgmr.msra.gmra.mrb[0].mxu0 %vm71_vm1, %v34_v7 }
  0x12   :  { %13 = vsyncpa [#allocation3], 0  ;;  %v43_v8 = vlaneseq  ;;  %v6469_v11 = vld [vmem:[%s7942_s2] sm:$0xff]  ;;  %v157_v33 = vld [vmem:[%s7943_s3 + $0x8] sm:$0xff]  ;;  %s6388_s23 = smov [#allocation2]  }
  0x13   :  { %v156_v31 = vld [vmem:[%s7943_s3] sm:$0xff]  ;;  %v165_v35 = vld [vmem:[%s7943_s3 + $0x48] sm:$0xff]  ;;  %v158_v63 = vld [vmem:[%s7943_s3 + $0x10] sm:$0xff]  ;;  %s4899_s24 = sshll.u32 %s6388_s23, 4  ;;  %s4900_s24 = int_to_ptr.vmem [resolvable:$true] %s4899_s24 }
  0x14   :  { %v6461_v9 = vshrl.u32 %v43_v8, 7  ;;  %v164_v32 = vld [vmem:[%s7943_s3 + $0x40] sm:$0xff]  ;;  %v4917_v36 = vcombine.low %v157_v33, %v165_v35  ;;  %v4918_v37 = vcombine.high %v157_v33, %v165_v35  ;;  %v173_v41 = vld [vmem:[%s7943_s3 + $0x88] sm:$0xff]  ;;  %v166_v0 = vld [vmem:[%s7943_s3 + $0x50] sm:$0xff]  ;;  %v6387_v8 = vmov 0   ;;  %p6366_p1 = scmp.lt.s32.totalorder %s4900_s24, %s4900_s24 }
  0x15   :  { %v4916_v34 = vcombine.high %v156_v31, %v164_v32  ;;  %v4915_v38 = vcombine.low %v156_v31, %v164_v32  ;;  %v172_v39 = vld [vmem:[%s7943_s3 + $0x80] sm:$0xff]  ;;  %v181_v43 = vld [vmem:[%s7943_s3 + $0xc8] sm:$0xff]  ;;  %v159_v2 = vld [vmem:[%s7943_s3 + $0x18] sm:$0xff]  ;;  %v4920_v3 = vcombine.high %v158_v63, %v166_v0  ;;  %v4919_v5 = vcombine.low %v158_v63, %v166_v0  ;;  %659 = vmatprep.mubr.bf16.mxu1 %v6387_v8 }
  0x16   :  { %v6464_v10 = vsub.s32 0, %v6461_v9  ;;  %670 = vmatprep.subr.bf16.mxu0 %v4918_v37  ;;  %v180_v40 = vld [vmem:[%s7943_s3 + $0xc0] sm:$0xff]  ;;  %v4933_v44 = vcombine.low %v173_v41, %v181_v43  ;;  %v4934_v45 = vcombine.high %v173_v41, %v181_v43  ;;  %v189_v49 = vld [vmem:[%s7943_s3 + $0x108] sm:$0xff]  ;;  %v167_v4 = vld [vmem:[%s7943_s3 + $0x58] sm:$0xff]  ;;  %702 = vmatprep.mubr.bf16.mxu0 %v6387_v8 }
  0x17   :  { %627 = vmatprep.subr.bf16.mxu1 %v4916_v34  ;;  %671 = vmatpush1.bf16.msra.mxu0 %v4917_v36  ;;  %v4932_v42 = vcombine.high %v172_v39, %v180_v40  ;;  %v4931_v46 = vcombine.low %v172_v39, %v180_v40  ;;  %v188_v47 = vld [vmem:[%s7943_s3 + $0x100] sm:$0xff]  ;;  %v197_v51 = vld [vmem:[%s7943_s3 + $0x148] sm:$0xff]  ;;  %v4921_v6 = vcombine.low %v159_v2, %v167_v4  ;;  %v182_v31 = vld [vmem:[%s7943_s3 + $0xd0] sm:$0xff] }
  0x18   :  { %v46_v12 = vrot.slane %v6469_v11, %v6464_v10  ;;  %628 = vmatpush1.bf16.msra.mxu1 %v4915_v38  ;;  %672 = vmatprep.subr.bf16.mxu0 %v4934_v45  ;;  %v196_v48 = vld [vmem:[%s7943_s3 + $0x140] sm:$0xff]  ;;  %v4949_v52 = vcombine.low %v189_v49, %v197_v51  ;;  %v4950_v53 = vcombine.high %v189_v49, %v197_v51  ;;  %v205_v57 = vld [vmem:[%s7943_s3 + $0x188] sm:$0xff]  ;;  %v190_v36 = vld [vmem:[%s7943_s3 + $0x110] sm:$0xff] }
  0x19   :  { %629 = vmatprep.subr.bf16.mxu1 %v4932_v42  ;;  %v4948_v50 = vcombine.high %v188_v47, %v196_v48  ;;  %v4947_v54 = vcombine.low %v188_v47, %v196_v48  ;;  %v204_v55 = vld [vmem:[%s7943_s3 + $0x180] sm:$0xff]  ;;  %v213_v59 = vld [vmem:[%s7943_s3 + $0x1c8] sm:$0xff]  ;;  %v4922_v7 = vcombine.high %v159_v2, %v167_v4  ;;  %v198_v37 = vld [vmem:[%s7943_s3 + $0x150] sm:$0xff] }
  0x1a   :  { %v212_v56 = vld [vmem:[%s7943_s3 + $0x1c0] sm:$0xff]  ;;  %v4965_v60 = vcombine.low %v205_v57, %v213_v59  ;;  %v4966_v61 = vcombine.high %v205_v57, %v213_v59  ;;  %v191_v38 = vld [vmem:[%s7943_s3 + $0x118] sm:$0xff]  ;;  %v4952_v42 = vcombine.high %v190_v36, %v198_v37  ;;  %v214_v45 = vld [vmem:[%s7943_s3 + $0x1d0] sm:$0xff]  ;;  %v4951_v48 = vcombine.low %v190_v36, %v198_v37 }
  0x1b   :  { %673 = vmatpush1.bf16.msra.mxu0 %v4933_v44  ;;  %v4964_v58 = vcombine.high %v204_v55, %v212_v56  ;;  %v4963_v62 = vcombine.low %v204_v55, %v212_v56  ;;  %v199_v39 = vld [vmem:[%s7943_s3 + $0x158] sm:$0xff]  ;;  %v206_v44 = vld [vmem:[%s7943_s3 + $0x190] sm:$0xff]  ;;  %v169_v55 = vld [vmem:[%s7943_s3 + $0x68] sm:$0xff] }
  0x1c   :  { %630 = vmatpush1.bf16.msra.mxu1 %v4931_v46  ;;  %674 = vmatprep.subr.bf16.mxu0 %v4950_v53  ;;  %v4954_v43 = vcombine.high %v191_v38, %v199_v39  ;;  %v207_v46 = vld [vmem:[%s7943_s3 + $0x198] sm:$0xff]  ;;  %v4953_v49 = vcombine.low %v191_v38, %v199_v39  ;;  %v168_v53 = vld [vmem:[%s7943_s3 + $0x60] sm:$0xff]  ;;  %v4967_v56 = vcombine.low %v206_v44, %v214_v45  ;;  %v185_v63 = vld [vmem:[%s7943_s3 + $0xe8] sm:$0xff] }
  0x1d   :  { %631 = vmatprep.subr.bf16.mxu1 %v4948_v50  ;;  %v215_v47 = vld [vmem:[%s7943_s3 + $0x1d8] sm:$0xff]  ;;  %v4968_v50 = vcombine.high %v206_v44, %v214_v45  ;;  %v178_v37 = vld [vmem:[%s7943_s3 + $0xb0] sm:$0xff] }
  0x1e   :  { %v4970_v51 = vcombine.high %v207_v46, %v215_v47  ;;  %v4969_v57 = vcombine.low %v207_v46, %v215_v47  ;;  %v186_v38 = vld [vmem:[%s7943_s3 + $0xf0] sm:$0xff]  ;;  %v179_v39 = vld [vmem:[%s7943_s3 + $0xb8] sm:$0xff] }
  0x1f   :  { %675 = vmatpush1.bf16.msra.mxu0 %v4949_v52  ;;  %v160_v52 = vld [vmem:[%s7943_s3 + $0x20] sm:$0xff]  ;;  %v194_v45 = vld [vmem:[%s7943_s3 + $0x130] sm:$0xff]  ;;  %v195_v47 = vld [vmem:[%s7943_s3 + $0x138] sm:$0xff] }
  0x20   :  { %632 = vmatpush1.bf16.msra.mxu1 %v4947_v54  ;;  %676 = vmatprep.subr.bf16.mxu0 %v4966_v61  ;;  %v161_v54 = vld [vmem:[%s7943_s3 + $0x28] sm:$0xff]  ;;  %v184_v61 = vld [vmem:[%s7943_s3 + $0xe0] sm:$0xff]  ;;  %v4923_v0 = vcombine.low %v160_v52, %v168_v53  ;;  %v202_v46 = vld [vmem:[%s7943_s3 + $0x170] sm:$0xff] }
  0x21   :  { %633 = vmatprep.subr.bf16.mxu1 %v4964_v58  ;;  %v4924_v58 = vcombine.high %v160_v52, %v168_v53  ;;  %v4926_v59 = vcombine.high %v161_v54, %v169_v55  ;;  %v4925_v2 = vcombine.low %v161_v54, %v169_v55  ;;  %v210_v53 = vld [vmem:[%s7943_s3 + $0x1b0] sm:$0xff]  ;;  %v211_v55 = vld [vmem:[%s7943_s3 + $0x1b8] sm:$0xff] }
  0x22   :  { %v218_v54 = vld [vmem:[%s7943_s3 + $0x1f0] sm:$0xff] }
  0x23   :  { %677 = vmatpush1.bf16.msra.mxu0 %v4965_v60  ;;  %v176_v60 = vld [vmem:[%s7943_s3 + $0xa0] sm:$0xff] }
  0x24   :  { %634 = vmatpush1.bf16.msra.mxu1 %v4963_v62  ;;  %756 = vmatprep.subr.bf16.mxu0 %v4922_v7  ;;  %v177_v62 = vld [vmem:[%s7943_s3 + $0xa8] sm:$0xff] }
  0x25   :  { %713 = vmatprep.subr.bf16.mxu1 %v4920_v3  ;;  %v4940_v3 = vcombine.high %v176_v60, %v184_v61  ;;  %v4942_v4 = vcombine.high %v177_v62, %v185_v63  ;;  %v193_v7 = vld [vmem:[%s7943_s3 + $0x128] sm:$0xff] }
  0xe4   :  { %v109_v13 = vpop.f32.mrb[0].mxu0 }
  0xe5   :  { %v110_v14 = vadd.f32 %v109_v13, %v46_v12  ;;  %v6043_v15 = vpop.f32.mrb[1].mxu0 }
  0xe6   :  { %v112_v16 = vpop.f32.mrb[2].mxu0 }
  0xe7   :  { %v113_v17 = vadd.f32 %v112_v16, %v46_v12  ;;  %v6044_v18 = vpop.f32.mrb[3].mxu0  ;;  %v116_v19 = vsel %vm71_vm1, %v110_v14, 0.0 }
  0xe8   :  { %117 = vadd.xlane.f32.xlu0 %v116_v19  ;;  %v6548_v18 = vsub.s32 1, %v6461_v9 }
  0xe9   :  { %v119_v20 = vsel %vm71_vm1, %v113_v17, 0.0 }
  0xec   :  { %120 = vadd.xlane.f32.xlu0 %v119_v20  ;;  %v146_v20 = vrot.slane %v6469_v11, %v6548_v18 }
 0x175   :  { %v118_v21 = vpop.xlane.xlu0 %117 }
 0x176   :  { %v123_v22 = vmul.f32 0.015625, %v118_v21  ;;  %v6553_v21 = vsub.s32 2, %v6461_v9 }
 0x178   :  { %v6475_v23 = vsub.f32 %v110_v14, %v123_v22 }
 0x179   :  { %v121_v24 = vpop.xlane.xlu0 %120 }
 0x17a   :  { %v124_v25 = vmul.f32 0.015625, %v121_v24  ;;  %v127_v26 = vmul.f32 %v6475_v23, %v6475_v23 }
 0x17c   :  { %v6479_v27 = vsub.f32 %v113_v17, %v124_v25  ;;  %v129_v28 = vsel %vm71_vm1, %v127_v26, 0.0  ;;  %v152_v25 = vrot.slane %v6469_v11, %v6553_v21  ;;  %v183_v11 = vld [vmem:[%s7943_s3 + $0xd8] sm:$0xff] }
 0x17d   :  { %130 = vadd.xlane.f32.xlu1 %v129_v28 }
 0x17e   :  { %v128_v29 = vmul.f32 %v6479_v27, %v6479_v27 }
 0x180   :  { %v132_v30 = vsel %vm71_vm1, %v128_v29, 0.0 }
 0x181   :  { %133 = vadd.xlane.f32.xlu1 %v132_v30  ;;  %v174_v30 = vld [vmem:[%s7943_s3 + $0x90] sm:$0xff] }
 0x182   :  { %v4936_v34 = vcombine.high %v174_v30, %v182_v31  ;;  %v4935_v40 = vcombine.low %v174_v30, %v182_v31  ;;  %v170_v30 = vld [vmem:[%s7943_s3 + $0x70] sm:$0xff]  ;;  %v163_v31 = vld [vmem:[%s7943_s3 + $0x38] sm:$0xff] }
 0x20a   :  { %v131_v12 = vpop.xlane.xlu1 %130 }
 0x20b   :  { %v135_v13 = vmul.f32 0.015625, %v131_v12  ;;  %v201_v12 = vld [vmem:[%s7943_s3 + $0x168] sm:$0xff] }
 0x20d   :  { %v137_v14 = vadd.f32 1e-05, %v135_v13  ;;  %v4939_v13 = vcombine.low %v176_v60, %v184_v61  ;;  %v4975_v61 = vcombine.low %v210_v53, %v218_v54 }
 0x20e   :  { %v134_v15 = vpop.xlane.xlu1 %133 }
 0x20f   :  { %6343 = vrsqrt.f32 %v137_v14  ;;  %v136_v16 = vmul.f32 0.015625, %v134_v15  ;;  %v4941_v14 = vcombine.low %v177_v62, %v185_v63  ;;  %v6079_v63 = vld [vmem:[%s7945_s5 + $0x40] sm:$0xff]  }
 0x211   :  { %v138_v17 = vadd.f32 1e-05, %v136_v16  ;;  %v4958_v16 = vcombine.high %v193_v7, %v201_v12 }
 0x213   :  { %6345 = vrsqrt.f32 %v138_v17  ;;  %v208_v17 = vld [vmem:[%s7943_s3 + $0x1a0] sm:$0xff] }
 0x219   :  { %v6344_v19 = vpop.eup %6343 }
 0x21a   :  { %v141_v22 = vmul.f32 %v6344_v19, %v6475_v23  ;;  %v175_v23 = vld [vmem:[%s7943_s3 + $0x98] sm:$0xff]  ;;  %v216_v19 = vld [vmem:[%s7943_s3 + $0x1e0] sm:$0xff] }
 0x21b   :  { %v4938_v35 = vcombine.high %v175_v23, %v183_v11  ;;  %v4937_v41 = vcombine.low %v175_v23, %v183_v11  ;;  %v171_v23 = vld [vmem:[%s7943_s3 + $0x78] sm:$0xff]  ;;  %v4971_v11 = vcombine.low %v208_v17, %v216_v19 }
 0x21c   :  { %v147_v26 = vmul.f32 %v146_v20, %v141_v22  ;;  %v217_v22 = vld [vmem:[%s7943_s3 + $0x1e8] sm:$0xff]  ;;  %v4930_v36 = vcombine.high %v163_v31, %v171_v23 }
 0x21d   :  { %v6346_v24 = vpop.eup %6345 }
 0x21e   :  { %v142_v28 = vmul.f32 %v6346_v24, %v6479_v27  ;;  %v6571_v32 = vadd.f32 %v152_v25, %v147_v26  ;;  %v4972_v26 = vcombine.high %v208_v17, %v216_v19  ;;  %v6093_v17 = vld [vmem:[%s7945_s5 + $0x18] sm:$0xff]  }
 0x21f   :  { %v6094_v19 = vld [vmem:[%s7945_s5 + $0x98] sm:$0xff]  }
 0x220   :  { %v148_v29 = vmul.f32 %v146_v20, %v142_v28  ;;  %v209_v20 = vld [vmem:[%s7943_s3 + $0x1a8] sm:$0xff] }
 0x221   :  { %v4974_v28 = vcombine.high %v209_v20, %v217_v22 }
 0x222   :  { %v6573_v27 = vadd.f32 %v152_v25, %v148_v29  ;;  %v4957_v25 = vcombine.low %v193_v7, %v201_v12  ;;  %v162_v29 = vld [vmem:[%s7943_s3 + $0x30] sm:$0xff]  ;;  %v6086_v7 = vld [vmem:[%s7945_s5 + $0x88] sm:$0xff]  }
 0x223   :  { %v6087_v12 = vld [vmem:[%s7945_s5 + $0x50] sm:$0xff]  }
 0x224   :  { %v6577_v33 = vpack.c.bf16 %v6573_v27, %v6571_v32 }
 0x226   :  { %4979 = vmatmul.mubr.msk.bf16.vlgmr.msra.gmra.mrb[0].mxu1 %vm71_vm1, %v6577_v33  ;;  %4980 = vmatmul.mubr.msk.bf16.vlgmr.msra.gmra.mrb[4].mxu0 %vm71_vm1, %v6577_v33 }
 0x227   :  { %714 = vmatpush1.bf16.msra.mxu1 %v4919_v5  ;;  %757 = vmatpush1.bf16.msra.mxu0 %v4921_v6  ;;  %v192_v5 = vld [vmem:[%s7943_s3 + $0x120] sm:$0xff] }
 0x228   :  { %715 = vmatprep.subr.bf16.mxu1 %v4936_v34  ;;  %758 = vmatprep.subr.bf16.mxu0 %v4938_v35  ;;  %v200_v6 = vld [vmem:[%s7943_s3 + $0x160] sm:$0xff]  ;;  %v4973_v34 = vcombine.low %v209_v20, %v217_v22  ;;  %v4928_v35 = vcombine.high %v162_v29, %v170_v30 }
 0x229   :  { %745 = vmatprep.mubr.bf16.mxu1 %v6387_v8  ;;  %788 = vmatprep.mubr.bf16.mxu0 %v6387_v8  ;;  %v4956_v15 = vcombine.high %v192_v5, %v200_v6  ;;  %v4955_v24 = vcombine.low %v192_v5, %v200_v6  ;;  %v6084_v5 = vld [vmem:[%s7945_s5 + $0xc8] sm:$0xff]   ;;  %v6095_v20 = vld [vmem:[%s7945_s5 + $0x60] sm:$0xff]  }
 0x22a   :  { %v6085_v6 = vld [vmem:[%s7945_s5 + $0x8] sm:$0xff]   ;;  %v6096_v22 = vld [vmem:[%s7945_s5 + $0xe0] sm:$0xff]  }
 0x22b   :  { %716 = vmatpush1.bf16.msra.mxu1 %v4935_v40  ;;  %759 = vmatpush1.bf16.msra.mxu0 %v4937_v41  ;;  %v187_v40 = vld [vmem:[%s7943_s3 + $0xf8] sm:$0xff]  ;;  %v4927_v41 = vcombine.low %v162_v29, %v170_v30  ;;  %v6101_v29 = vld [vmem:[%s7945_s5 + $0x28] sm:$0xff]  }
 0x22c   :  { %717 = vmatprep.subr.bf16.mxu1 %v4952_v42  ;;  %760 = vmatprep.subr.bf16.mxu0 %v4954_v43  ;;  %v4929_v42 = vcombine.low %v163_v31, %v171_v23  ;;  %v4944_v43 = vcombine.high %v178_v37, %v186_v38  ;;  %v4946_v44 = vcombine.high %v179_v39, %v187_v40  ;;  %v6102_v30 = vld [vmem:[%s7945_s5 + $0xa8] sm:$0xff]   ;;  %v6103_v31 = vld [vmem:[%s7945_s5 + $0x70] sm:$0xff]  }
 0x22d   :  { %v6104_v23 = vld [vmem:[%s7945_s5 + $0xf0] sm:$0xff]  }
 0x22f   :  { %718 = vmatpush1.bf16.msra.mxu1 %v4951_v48  ;;  %761 = vmatpush1.bf16.msra.mxu0 %v4953_v49  ;;  %v203_v48 = vld [vmem:[%s7943_s3 + $0x178] sm:$0xff]  ;;  %v4943_v49 = vcombine.low %v178_v37, %v186_v38 }
 0x230   :  { %719 = vmatprep.subr.bf16.mxu1 %v4968_v50  ;;  %762 = vmatprep.subr.bf16.mxu0 %v4970_v51  ;;  %v4945_v50 = vcombine.low %v179_v39, %v187_v40  ;;  %v4960_v51 = vcombine.high %v194_v45, %v202_v46  ;;  %v4962_v52 = vcombine.high %v195_v47, %v203_v48  ;;  %v6109_v37 = vld [vmem:[%s7945_s5 + $0x38] sm:$0xff]   ;;  %v6111_v39 = vld [vmem:[%s7945_s5 + $0x140] sm:$0xff]  }
 0x231   :  { %v6110_v38 = vld [vmem:[%s7945_s5 + $0xb8] sm:$0xff]   ;;  %v6112_v40 = vld [vmem:[%s7945_s5 + $0x1c0] sm:$0xff]  }
 0x233   :  { %720 = vmatpush1.bf16.msra.mxu1 %v4967_v56  ;;  %763 = vmatpush1.bf16.msra.mxu0 %v4969_v57  ;;  %v219_v56 = vld [vmem:[%s7943_s3 + $0x1f8] sm:$0xff]  ;;  %v4959_v57 = vcombine.low %v194_v45, %v202_v46 }
 0x234   :  { %799 = vmatprep.subr.bf16.mxu1 %v4924_v58  ;;  %842 = vmatprep.subr.bf16.mxu0 %v4926_v59  ;;  %v4961_v58 = vcombine.low %v195_v47, %v203_v48  ;;  %v4976_v59 = vcombine.high %v210_v53, %v218_v54  ;;  %v4978_v60 = vcombine.high %v211_v55, %v219_v56 }
 0x235   :  { %v4977_v62 = vcombine.low %v211_v55, %v219_v56 }
 0x236   :  { %4981 = vmatmul.mubr.msk.bf16.vlgmr.msra.gmra.mrb[4].mxu1 %vm71_vm1, %v6577_v33  ;;  %4982 = vmatmul.mubr.msk.bf16.vlgmr.msra.gmra.mrb[8].mxu0 %vm71_vm1, %v6577_v33 }
 0x237   :  { %800 = vmatpush1.bf16.msra.mxu1 %v4923_v0  ;;  %843 = vmatpush1.bf16.msra.mxu0 %v4925_v2  ;;  %v6080_v0 = vld [vmem:[%s7945_s5 + $0xc0] sm:$0xff]  }
 0x238   :  { %801 = vmatprep.subr.bf16.mxu1 %v4940_v3  ;;  %844 = vmatprep.subr.bf16.mxu0 %v4942_v4  ;;  %v6081_v2 = vld [vmem:[%s7945_s5] sm:$0xff]   ;;  %v6083_v4 = vld [vmem:[%s7945_s5 + $0x48] sm:$0xff]  }
 0x239   :  { %831 = vmatprep.mubr.bf16.mxu1 %v6387_v8  ;;  %874 = vmatprep.mubr.bf16.mxu0 %v6387_v8  ;;  %v6082_v3 = vld [vmem:[%s7945_s5 + $0x80] sm:$0xff]  }
 0x23b   :  { %802 = vmatpush1.bf16.msra.mxu1 %v4939_v13  ;;  %845 = vmatpush1.bf16.msra.mxu0 %v4941_v14  ;;  %v6089_v13 = vld [vmem:[%s7945_s5 + $0x10] sm:$0xff]  }
 0x23c   :  { %803 = vmatprep.subr.bf16.mxu1 %v4956_v15  ;;  %846 = vmatprep.subr.bf16.mxu0 %v4958_v16  ;;  %v6090_v14 = vld [vmem:[%s7945_s5 + $0x90] sm:$0xff]   ;;  %v6091_v15 = vld [vmem:[%s7945_s5 + $0x58] sm:$0xff]  }
 0x23d   :  { %v6092_v16 = vld [vmem:[%s7945_s5 + $0xd8] sm:$0xff]  }
 0x23f   :  { %804 = vmatpush1.bf16.msra.mxu1 %v4955_v24  ;;  %847 = vmatpush1.bf16.msra.mxu0 %v4957_v25  ;;  %v6097_v24 = vld [vmem:[%s7945_s5 + $0x20] sm:$0xff]  }
 0x240   :  { %805 = vmatprep.subr.bf16.mxu1 %v4972_v26  ;;  %848 = vmatprep.subr.bf16.mxu0 %v4974_v28  ;;  %v6098_v25 = vld [vmem:[%s7945_s5 + $0xa0] sm:$0xff]   ;;  %v6099_v26 = vld [vmem:[%s7945_s5 + $0x68] sm:$0xff]  }
 0x241   :  { %v6100_v28 = vld [vmem:[%s7945_s5 + $0xe8] sm:$0xff]  }
 0x243   :  { %806 = vmatpush1.bf16.msra.mxu1 %v4971_v11  ;;  %849 = vmatpush1.bf16.msra.mxu0 %v4973_v34  ;;  %v6105_v11 = vld [vmem:[%s7945_s5 + $0x30] sm:$0xff]  }
 0x244   :  { %885 = vmatprep.subr.bf16.mxu1 %v4928_v35  ;;  %928 = vmatprep.subr.bf16.mxu0 %v4930_v36  ;;  %v6106_v34 = vld [vmem:[%s7945_s5 + $0xb0] sm:$0xff]   ;;  %v6107_v35 = vld [vmem:[%s7945_s5 + $0x78] sm:$0xff]  }
 0x245   :  { %v6108_v36 = vld [vmem:[%s7945_s5 + $0xf8] sm:$0xff]  }
 0x246   :  { %4983 = vmatmul.mubr.msk.bf16.vlgmr.msra.gmra.mrb[8].mxu1 %vm71_vm1, %v6577_v33  ;;  %4984 = vmatmul.mubr.msk.bf16.vlgmr.msra.gmra.mrb[12].mxu0 %vm71_vm1, %v6577_v33 }
 0x247   :  { %886 = vmatpush1.bf16.msra.mxu1 %v4927_v41  ;;  %929 = vmatpush1.bf16.msra.mxu0 %v4929_v42  ;;  %v220_v41 = vld [vmem:[%s7944_s4] sm:$0xff]  ;;  %v6827_v42 = vsub.s32 3, %v6461_v9 }
 0x248   :  { %887 = vmatprep.subr.bf16.mxu1 %v4944_v43  ;;  %930 = vmatprep.subr.bf16.mxu0 %v4946_v44  ;;  %v227_v43 = vrot.slane %v220_v41, %v6464_v10  ;;  %v235_v44 = vrot.slane %v220_v41, %v6553_v21  ;;  %v231_v45 = vrot.slane %v220_v41, %v6548_v18 }
 0x249   :  { %917 = vmatprep.mubr.bf16.mxu1 %v6387_v8  ;;  %960 = vmatprep.mubr.bf16.mxu0 %v6387_v8  ;;  %v239_v46 = vrot.slane %v220_v41, %v6827_v42 }
 0x24b   :  { %888 = vmatpush1.bf16.msra.mxu1 %v4943_v49  ;;  %931 = vmatpush1.bf16.msra.mxu0 %v4945_v50 }
 0x24c   :  { %889 = vmatprep.subr.bf16.mxu1 %v4960_v51  ;;  %932 = vmatprep.subr.bf16.mxu0 %v4962_v52 }
 0x24f   :  { %890 = vmatpush1.bf16.msra.mxu1 %v4959_v57  ;;  %933 = vmatpush1.bf16.msra.mxu0 %v4961_v58 }
 0x250   :  { %891 = vmatprep.subr.bf16.mxu1 %v4976_v59  ;;  %934 = vmatprep.subr.bf16.mxu0 %v4978_v60 }
 0x253   :  { %892 = vmatpush1.bf16.msra.mxu1 %v4975_v61  ;;  %935 = vmatpush1.bf16.msra.mxu0 %v4977_v62 }
 0x254   :  { %5671 = vmatprep.subr.bf16.mxu1 %v6079_v63  ;;  %5693 = vmatprep.subr.bf16.mxu0 %v6080_v0 }
 0x256   :  { %4985 = vmatmul.mubr.msk.bf16.vlgmr.msra.gmra.mrb[12].mxu1 %vm71_vm1, %v6577_v33  ;;  %4986 = vmatmul.mubr.msk.bf16.vlgmr.msra.gmra.mrb[16].mxu0 %vm71_vm1, %v6577_v33  ;;  %v6088_v33 = vld [vmem:[%s7945_s5 + $0xd0] sm:$0xff]  }
 0x257   :  { %5672 = vmatpush3.bf16.msra.mxu1 %v6081_v2  ;;  %5694 = vmatpush3.bf16.msra.mxu0 %v6082_v3 }
 0x258   :  { %5673 = vmatprep.subr.bf16.mxu1 %v6083_v4  ;;  %5695 = vmatprep.subr.bf16.mxu0 %v6084_v5 }
 0x25b   :  { %5674 = vmatpush3.bf16.msra.mxu1 %v6085_v6  ;;  %5696 = vmatpush3.bf16.msra.mxu0 %v6086_v7 }
 0x25c   :  { %5675 = vmatprep.subr.bf16.mxu1 %v6087_v12  ;;  %5697 = vmatprep.subr.bf16.mxu0 %v6088_v33 }
 0x25f   :  { %5676 = vmatpush3.bf16.msra.mxu1 %v6089_v13  ;;  %5698 = vmatpush3.bf16.msra.mxu0 %v6090_v14 }
 0x260   :  { %5677 = vmatprep.subr.bf16.mxu1 %v6091_v15  ;;  %5699 = vmatprep.subr.bf16.mxu0 %v6092_v16  ;;  %v6113_v15 = vld [vmem:[%s7945_s5 + $0x100] sm:$0xff]  }
 0x261   :  { %v6114_v16 = vld [vmem:[%s7945_s5 + $0x180] sm:$0xff]  }
 0x263   :  { %5678 = vmatpush3.bf16.msra.mxu1 %v6093_v17  ;;  %5700 = vmatpush3.bf16.msra.mxu0 %v6094_v19  ;;  %v6115_v17 = vld [vmem:[%s7945_s5 + $0x148] sm:$0xff]  }
 0x264   :  { %5679 = vmatprep.subr.bf16.mxu1 %v6095_v20  ;;  %5701 = vmatprep.subr.bf16.mxu0 %v6096_v22  ;;  %v6116_v19 = vld [vmem:[%s7945_s5 + $0x1c8] sm:$0xff]   ;;  %v6846_v20 = vsub.s32 4, %v6461_v9  ;;  %v6849_v22 = vsub.s32 6, %v6461_v9 }
 0x267   :  { %5680 = vmatpush3.bf16.msra.mxu1 %v6097_v24  ;;  %5702 = vmatpush3.bf16.msra.mxu0 %v6098_v25  ;;  %v6852_v24 = vsub.s32 5, %v6461_v9  ;;  %v6855_v25 = vsub.s32 7, %v6461_v9  ;;  %v6119_v9 = vld [vmem:[%s7945_s5 + $0x150] sm:$0xff]  }
 0x268   :  { %5681 = vmatprep.subr.bf16.mxu1 %v6099_v26  ;;  %5703 = vmatprep.subr.bf16.mxu0 %v6100_v28  ;;  %v6117_v26 = vld [vmem:[%s7945_s5 + $0x108] sm:$0xff]  }
 0x269   :  { %v6118_v28 = vld [vmem:[%s7945_s5 + $0x188] sm:$0xff]  }
 0x26b   :  { %5682 = vmatpush3.bf16.msra.mxu1 %v6101_v29  ;;  %5704 = vmatpush3.bf16.msra.mxu0 %v6102_v30  ;;  %v243_v29 = vrot.slane %v220_v41, %v6846_v20  ;;  %v251_v30 = vrot.slane %v220_v41, %v6849_v22 }
 0x26c   :  { %5683 = vmatprep.subr.bf16.mxu1 %v6103_v31  ;;  %5705 = vmatprep.subr.bf16.mxu0 %v6104_v23  ;;  %v6120_v31 = vld [vmem:[%s7945_s5 + $0x1d0] sm:$0xff]   ;;  %v247_v23 = vrot.slane %v220_v41, %v6852_v24 }
 0x26f   :  { %5684 = vmatpush3.bf16.msra.mxu1 %v6105_v11  ;;  %5706 = vmatpush3.bf16.msra.mxu0 %v6106_v34  ;;  %v255_v11 = vrot.slane %v220_v41, %v6855_v25  ;;  %v6123_v41 = vld [vmem:[%s7945_s5 + $0x158] sm:$0xff]  }
 0x270   :  { %5685 = vmatprep.subr.bf16.mxu1 %v6107_v35  ;;  %5707 = vmatprep.subr.bf16.mxu0 %v6108_v36  ;;  %v6121_v36 = vld [vmem:[%s7945_s5 + $0x110] sm:$0xff]  }
 0x273   :  { %5686 = vmatpush3.bf16.msra.mxu1 %v6109_v37  ;;  %5708 = vmatpush3.bf16.msra.mxu0 %v6110_v38  ;;  %v6122_v37 = vld [vmem:[%s7945_s5 + $0x190] sm:$0xff]  }
 0x274   :  { %5715 = vmatprep.subr.bf16.mxu1 %v6111_v39  ;;  %5737 = vmatprep.subr.bf16.mxu0 %v6112_v40 }
 0x2f9   :  { %v661_v47 = vpop.f32.mrb[0].mxu1  ;;  %v704_v48 = vpop.f32.mrb[4].mxu0 }
 0x2fa   :  { %v662_v49 = vadd.f32 %v661_v47, %v227_v43  ;;  %v705_v50 = vadd.f32 %v704_v48, %v235_v44  ;;  %v663_v51 = vpop.f32.mrb[1].mxu1  ;;  %v706_v52 = vpop.f32.mrb[5].mxu0 }
 0x2fb   :  { %v664_v53 = vadd.f32 %v663_v51, %v231_v45  ;;  %v707_v54 = vadd.f32 %v706_v52, %v239_v46  ;;  %v665_v55 = vpop.f32.mrb[2].mxu1  ;;  %v708_v56 = vpop.f32.mrb[6].mxu0 }
 0x2fc   :  { %v666_v57 = vadd.f32 %v665_v55, %v227_v43  ;;  %v709_v58 = vadd.f32 %v708_v56, %v235_v44  ;;  %v667_v59 = vpop.f32.mrb[3].mxu1  ;;  %v710_v60 = vpop.f32.mrb[7].mxu0  ;;  %v971_v63 = vmax.f32 %v662_v49, 0.0  ;;  %v973_v0 = vmax.f32 %v705_v50, 0.0  ;;  %v6124_v44 = vld [vmem:[%s7945_s5 + $0x1d8] sm:$0xff]  }
 0x2fd   :  { %v668_v61 = vadd.f32 %v667_v59, %v231_v45  ;;  %v711_v62 = vadd.f32 %v710_v60, %v239_v46  ;;  %v972_v4 = vmax.f32 %v664_v53, 0.0  ;;  %v974_v5 = vmax.f32 %v707_v54, 0.0  ;;  %v6125_v55 = vld [vmem:[%s7945_s5 + $0x118] sm:$0xff]  }
 0x2fe   :  { %v987_v2 = vmax.f32 %v666_v57, 0.0  ;;  %v989_v3 = vmax.f32 %v709_v58, 0.0  ;;  %v6126_v56 = vld [vmem:[%s7945_s5 + $0x198] sm:$0xff]  }
 0x2ff   :  { %v988_v6 = vmax.f32 %v668_v61, 0.0  ;;  %v990_v7 = vmax.f32 %v711_v62, 0.0  ;;  %v6127_v61 = vld [vmem:[%s7945_s5 + $0x160] sm:$0xff]  }
 0x300   :  { %v1003_v12 = vpack.c.bf16 %v987_v2, %v971_v63  ;;  %v1005_v33 = vpack.c.bf16 %v989_v3, %v973_v0  ;;  %v6128_v62 = vld [vmem:[%s7945_s5 + $0x1e0] sm:$0xff]  }
 0x301   :  { %v1004_v13 = vpack.c.bf16 %v988_v6, %v972_v4  ;;  %v1006_v14 = vpack.c.bf16 %v990_v7, %v974_v5 }
 0x303   :  { %2079 = vmatprep.mubr.bf16.mxu1 %v1004_v13  ;;  %2120 = vmatprep.mubr.bf16.mxu0 %v1006_v14  ;;  %v6131_v13 = vld [vmem:[%s7945_s5 + $0x168] sm:$0xff]  }
 0x304   :  { %2080 = vmatmul.mubr.bf16.vlgmr.msra.gmra.mrb[16].mxu1 %v1003_v12  ;;  %2121 = vmatmul.mubr.bf16.vlgmr.msra.gmra.mrb[20].mxu0 %v1005_v33  ;;  %v6129_v12 = vld [vmem:[%s7945_s5 + $0x120] sm:$0xff]   ;;  %v6132_v14 = vld [vmem:[%s7945_s5 + $0x1e8] sm:$0xff]  }
 0x305   :  { %5716 = vmatpush3.bf16.msra.mxu1 %v6113_v15  ;;  %5738 = vmatpush3.bf16.msra.mxu0 %v6114_v16  ;;  %v6130_v33 = vld [vmem:[%s7945_s5 + $0x1a0] sm:$0xff]   ;;  %v6916_v15 = vld [vmem:[%s7944_s4 + $0x8] sm:$0xff] }
 0x306   :  { %5717 = vmatprep.subr.bf16.mxu1 %v6115_v17  ;;  %5739 = vmatprep.subr.bf16.mxu0 %v6116_v19  ;;  %v6133_v16 = vld [vmem:[%s7945_s5 + $0x128] sm:$0xff]   ;;  %v259_v19 = vrot.slane %v6916_v15, %v6464_v10 }
 0x307   :  { %v6134_v17 = vld [vmem:[%s7945_s5 + $0x1a8] sm:$0xff]  }
 0x309   :  { %v747_v34 = vpop.f32.mrb[4].mxu1  ;;  %v790_v35 = vpop.f32.mrb[8].mxu0  ;;  %5718 = vmatpush3.bf16.msra.mxu1 %v6117_v26  ;;  %5740 = vmatpush3.bf16.msra.mxu0 %v6118_v28  ;;  %v267_v26 = vrot.slane %v6916_v15, %v6553_v21  ;;  %v6135_v28 = vld [vmem:[%s7945_s5 + $0x170] sm:$0xff]  }
 0x30a   :  { %v748_v38 = vadd.f32 %v747_v34, %v243_v29  ;;  %v791_v39 = vadd.f32 %v790_v35, %v251_v30  ;;  %v749_v40 = vpop.f32.mrb[5].mxu1  ;;  %v792_v43 = vpop.f32.mrb[9].mxu0  ;;  %5719 = vmatprep.subr.bf16.mxu1 %v6119_v9  ;;  %5741 = vmatprep.subr.bf16.mxu0 %v6120_v31  ;;  %v271_v9 = vrot.slane %v6916_v15, %v6827_v42  ;;  %v6138_v34 = vld [vmem:[%s7945_s5 + $0x1b0] sm:$0xff]  }
 0x30b   :  { %v750_v45 = vadd.f32 %v749_v40, %v247_v23  ;;  %v793_v46 = vadd.f32 %v792_v43, %v255_v11  ;;  %v751_v47 = vpop.f32.mrb[6].mxu1  ;;  %v794_v48 = vpop.f32.mrb[10].mxu0  ;;  %v6140_v40 = vld [vmem:[%s7945_s5 + $0x1f8] sm:$0xff]  }
 0x30c   :  { %v752_v49 = vadd.f32 %v751_v47, %v243_v29  ;;  %v795_v50 = vadd.f32 %v794_v48, %v251_v30  ;;  %v753_v51 = vpop.f32.mrb[7].mxu1  ;;  %v796_v52 = vpop.f32.mrb[11].mxu0  ;;  %v975_v57 = vmax.f32 %v748_v38, 0.0  ;;  %v977_v58 = vmax.f32 %v791_v39, 0.0  ;;  %v6136_v29 = vld [vmem:[%s7945_s5 + $0x1f0] sm:$0xff]   ;;  %v6139_v39 = vld [vmem:[%s7945_s5 + $0x178] sm:$0xff]  }
 0x30d   :  { %v754_v53 = vadd.f32 %v753_v51, %v247_v23  ;;  %v797_v54 = vadd.f32 %v796_v52, %v255_v11  ;;  %5720 = vmatpush3.bf16.msra.mxu1 %v6121_v36  ;;  %5742 = vmatpush3.bf16.msra.mxu0 %v6122_v37  ;;  %v976_v63 = vmax.f32 %v750_v45, 0.0  ;;  %v978_v0 = vmax.f32 %v793_v46, 0.0  ;;  %v6137_v11 = vld [vmem:[%s7945_s5 + $0x130] sm:$0xff]   ;;  %v6141_v52 = vld [vmem:[%s7945_s5 + $0x138] sm:$0xff]  }
 0x30e   :  { %v991_v59 = vmax.f32 %v752_v49, 0.0  ;;  %v993_v60 = vmax.f32 %v795_v50, 0.0  ;;  %5721 = vmatprep.subr.bf16.mxu1 %v6123_v41  ;;  %5743 = vmatprep.subr.bf16.mxu0 %v6124_v44  ;;  %v263_v30 = vrot.slane %v6916_v15, %v6548_v18 }
 0x30f   :  { %v992_v2 = vmax.f32 %v754_v53, 0.0  ;;  %v994_v3 = vmax.f32 %v797_v54, 0.0  ;;  %v6142_v53 = vld [vmem:[%s7945_s5 + $0x1b8] sm:$0xff]  }
 0x310   :  { %v6897_v4 = vpack.c.bf16 %v991_v59, %v975_v57  ;;  %v6899_v5 = vpack.c.bf16 %v993_v60, %v977_v58  ;;  %v6143_v58 = vld [vmem:[%s7945_s5 + $0x240] sm:$0xff]  }
 0x311   :  { %v1008_v6 = vpack.c.bf16 %v992_v2, %v976_v63  ;;  %v1010_v7 = vpack.c.bf16 %v994_v3, %v978_v0  ;;  %5722 = vmatpush3.bf16.msra.mxu1 %v6125_v55  ;;  %5744 = vmatpush3.bf16.msra.mxu0 %v6126_v56  ;;  %v6144_v59 = vld [vmem:[%s7945_s5 + $0x2c0] sm:$0xff]  }
 0x312   :  { %5723 = vmatprep.subr.bf16.mxu1 %v6127_v61  ;;  %5745 = vmatprep.subr.bf16.mxu0 %v6128_v62 }
 0x313   :  { %2161 = vmatprep.mubr.bf16.mxu1 %v1008_v6  ;;  %2202 = vmatprep.mubr.bf16.mxu0 %v1010_v7  ;;  %v6145_v7 = vld [vmem:[%s7945_s5 + $0x200] sm:$0xff]  }
 0x315   :  { %5724 = vmatpush3.bf16.msra.mxu1 %v6129_v12  ;;  %5746 = vmatpush3.bf16.msra.mxu0 %v6130_v33  ;;  %v6146_v12 = vld [vmem:[%s7945_s5 + $0x280] sm:$0xff]   ;;  %v6147_v33 = vld [vmem:[%s7945_s5 + $0x248] sm:$0xff]  }
 0x316   :  { %5725 = vmatprep.subr.bf16.mxu1 %v6131_v13  ;;  %5747 = vmatprep.subr.bf16.mxu0 %v6132_v14  ;;  %v6148_v13 = vld [vmem:[%s7945_s5 + $0x2c8] sm:$0xff]  }
 0x317   :  { %v6149_v14 = vld [vmem:[%s7945_s5 + $0x208] sm:$0xff]  }
 0x319   :  { %v833_v31 = vpop.f32.mrb[8].mxu1  ;;  %v876_v23 = vpop.f32.mrb[12].mxu0  ;;  %5726 = vmatpush3.bf16.msra.mxu1 %v6133_v16  ;;  %5748 = vmatpush3.bf16.msra.mxu0 %v6134_v17  ;;  %v275_v16 = vrot.slane %v6916_v15, %v6846_v20  ;;  %v283_v17 = vrot.slane %v6916_v15, %v6849_v22 }
 0x31a   :  { %v834_v35 = vadd.f32 %v833_v31, %v259_v19  ;;  %v877_v36 = vadd.f32 %v876_v23, %v267_v26  ;;  %v835_v37 = vpop.f32.mrb[9].mxu1  ;;  %v878_v38 = vpop.f32.mrb[13].mxu0  ;;  %5727 = vmatprep.subr.bf16.mxu1 %v6135_v28  ;;  %5749 = vmatprep.subr.bf16.mxu0 %v6136_v29  ;;  %v6152_v28 = vld [vmem:[%s7945_s5 + $0x2d0] sm:$0xff]  }
 0x31b   :  { %v836_v43 = vadd.f32 %v835_v37, %v263_v30  ;;  %v879_v41 = vadd.f32 %v878_v38, %v271_v9  ;;  %v837_v44 = vpop.f32.mrb[10].mxu1  ;;  %v880_v45 = vpop.f32.mrb[14].mxu0 }
 0x31c   :  { %v838_v46 = vadd.f32 %v837_v44, %v259_v19  ;;  %v881_v47 = vadd.f32 %v880_v45, %v267_v26  ;;  %v839_v48 = vpop.f32.mrb[11].mxu1  ;;  %v882_v49 = vpop.f32.mrb[15].mxu0  ;;  %v979_v54 = vmax.f32 %v834_v35, 0.0  ;;  %v981_v55 = vmax.f32 %v877_v36, 0.0  ;;  %v6155_v35 = vld [vmem:[%s7945_s5 + $0x258] sm:$0xff]  }
 0x31d   :  { %v840_v50 = vadd.f32 %v839_v48, %v263_v30  ;;  %v883_v51 = vadd.f32 %v882_v49, %v271_v9  ;;  %5728 = vmatpush3.bf16.msra.mxu1 %v6137_v11  ;;  %5750 = vmatpush3.bf16.msra.mxu0 %v6138_v34  ;;  %v980_v60 = vmax.f32 %v836_v43, 0.0  ;;  %v982_v61 = vmax.f32 %v879_v41, 0.0  ;;  %v6153_v9 = vld [vmem:[%s7945_s5 + $0x210] sm:$0xff]   ;;  %v6157_v48 = vld [vmem:[%s7945_s5 + $0x218] sm:$0xff]  }
 0x31e   :  { %v995_v56 = vmax.f32 %v838_v46, 0.0  ;;  %v997_v57 = vmax.f32 %v881_v47, 0.0  ;;  %5729 = vmatprep.subr.bf16.mxu1 %v6139_v39  ;;  %5751 = vmatprep.subr.bf16.mxu0 %v6140_v40  ;;  %v279_v19 = vrot.slane %v6916_v15, %v6852_v24  ;;  %v287_v26 = vrot.slane %v6916_v15, %v6855_v25  ;;  %v6154_v15 = vld [vmem:[%s7945_s5 + $0x290] sm:$0xff]   ;;  %v6156_v40 = vld [vmem:[%s7945_s5 + $0x2d8] sm:$0xff]  }
 0x31f   :  { %v996_v62 = vmax.f32 %v840_v50, 0.0  ;;  %v998_v63 = vmax.f32 %v883_v51, 0.0 }
 0x320   :  { %v6962_v0 = vpack.c.bf16 %v995_v56, %v979_v54  ;;  %v6964_v2 = vpack.c.bf16 %v997_v57, %v981_v55  ;;  %v6159_v54 = vld [vmem:[%s7945_s5 + $0x260] sm:$0xff]  }
 0x321   :  { %v1012_v3 = vpack.c.bf16 %v996_v62, %v980_v60  ;;  %v1014_v6 = vpack.c.bf16 %v998_v63, %v982_v61  ;;  %5730 = vmatpush3.bf16.msra.mxu1 %v6141_v52  ;;  %5752 = vmatpush3.bf16.msra.mxu0 %v6142_v53  ;;  %v6158_v53 = vld [vmem:[%s7945_s5 + $0x298] sm:$0xff]  }
 0x322   :  { %5759 = vmatprep.subr.bf16.mxu1 %v6143_v58  ;;  %5781 = vmatprep.subr.bf16.mxu0 %v6144_v59  ;;  %v6160_v59 = vld [vmem:[%s7945_s5 + $0x2e0] sm:$0xff]  }
 0x324   :  { %2162 = vmatmul.mubr.bf16.vlgmr.msra.gmra.mrb[20].mxu1 %v6897_v4  ;;  %2203 = vmatmul.mubr.bf16.vlgmr.msra.gmra.mrb[24].mxu0 %v6899_v5  ;;  %v6150_v4 = vld [vmem:[%s7945_s5 + $0x288] sm:$0xff]   ;;  %v6151_v5 = vld [vmem:[%s7945_s5 + $0x250] sm:$0xff]  }
 0x325   :  { %5760 = vmatpush3.bf16.msra.mxu1 %v6145_v7  ;;  %2243 = vmatprep.mubr.bf16.mxu1 %v1012_v3  ;;  %v6161_v3 = vld [vmem:[%s7945_s5 + $0x220] sm:$0xff]   ;;  %v6163_v7 = vld [vmem:[%s7945_s5 + $0x268] sm:$0xff]  }
 0x326   :  { %5782 = vmatpush3.bf16.msra.mxu0 %v6146_v12  ;;  %2284 = vmatprep.mubr.bf16.mxu0 %v1014_v6  ;;  %v6162_v6 = vld [vmem:[%s7945_s5 + $0x2a0] sm:$0xff]   ;;  %v6164_v12 = vld [vmem:[%s7945_s5 + $0x2e8] sm:$0xff]  }
 0x327   :  { %5761 = vmatprep.subr.bf16.mxu1 %v6147_v33  ;;  %5783 = vmatprep.subr.bf16.mxu0 %v6148_v13  ;;  %v6165_v33 = vld [vmem:[%s7945_s5 + $0x228] sm:$0xff]  }
 0x328   :  { %v6166_v13 = vld [vmem:[%s7945_s5 + $0x2a8] sm:$0xff]  }
 0x329   :  { %v919_v29 = vpop.f32.mrb[12].mxu1  ;;  %v962_v30 = vpop.f32.mrb[16].mxu0  ;;  %5762 = vmatpush3.bf16.msra.mxu1 %v6149_v14  ;;  %v6167_v14 = vld [vmem:[%s7945_s5 + $0x270] sm:$0xff]  }
 0x32a   :  { %v920_v31 = vadd.f32 %v919_v29, %v275_v16  ;;  %v963_v23 = vadd.f32 %v962_v30, %v283_v17  ;;  %5784 = vmatpush3.bf16.msra.mxu0 %v6150_v4  ;;  %v921_v11 = vpop.f32.mrb[13].mxu1  ;;  %v964_v34 = vpop.f32.mrb[17].mxu0  ;;  %5763 = vmatprep.subr.bf16.mxu1 %v6151_v5  ;;  %v6170_v4 = vld [vmem:[%s7945_s5 + $0x2b0] sm:$0xff]   ;;  %v6171_v5 = vld [vmem:[%s7945_s5 + $0x278] sm:$0xff]   ;;  %v6175_v29 = vld [vmem:[%s7945_s5 + $0x340] sm:$0xff]  }
 0x32b   :  { %v922_v36 = vadd.f32 %v921_v11, %v279_v19  ;;  %v965_v37 = vadd.f32 %v964_v34, %v287_v26  ;;  %v923_v38 = vpop.f32.mrb[14].mxu1  ;;  %v966_v39 = vpop.f32.mrb[18].mxu0  ;;  %5785 = vmatprep.subr.bf16.mxu0 %v6152_v28  ;;  %v6174_v28 = vld [vmem:[%s7945_s5 + $0x2b8] sm:$0xff]   ;;  %v6176_v30 = vld [vmem:[%s7945_s5 + $0x3c0] sm:$0xff]   ;;  %v6180_v11 = vld [vmem:[%s7945_s5 + $0x3c8] sm:$0xff]  }
 0x32c   :  { %v924_v43 = vadd.f32 %v923_v38, %v275_v16  ;;  %v967_v41 = vadd.f32 %v966_v39, %v283_v17  ;;  %v925_v44 = vpop.f32.mrb[15].mxu1  ;;  %v968_v45 = vpop.f32.mrb[19].mxu0  ;;  %v983_v49 = vmax.f32 %v920_v31, 0.0  ;;  %v985_v50 = vmax.f32 %v963_v23, 0.0  ;;  %v6168_v16 = vld [vmem:[%s7945_s5 + $0x2f0] sm:$0xff]   ;;  %v6178_v31 = vld [vmem:[%s7945_s5 + $0x380] sm:$0xff]  }
 0x32d   :  { %v926_v46 = vadd.f32 %v925_v44, %v279_v19  ;;  %v969_v47 = vadd.f32 %v968_v45, %v287_v26  ;;  %5764 = vmatpush3.bf16.msra.mxu1 %v6153_v9  ;;  %v984_v55 = vmax.f32 %v922_v36, 0.0  ;;  %v986_v56 = vmax.f32 %v965_v37, 0.0  ;;  %v6169_v17 = vld [vmem:[%s7945_s5 + $0x230] sm:$0xff]   ;;  %v6172_v19 = vld [vmem:[%s7945_s5 + $0x2f8] sm:$0xff]   ;;  %v6177_v9 = vld [vmem:[%s7945_s5 + $0x300] sm:$0xff]  }
 0x32e   :  { %v999_v51 = vmax.f32 %v924_v43, 0.0  ;;  %v1001_v52 = vmax.f32 %v967_v41, 0.0  ;;  %5786 = vmatpush3.bf16.msra.mxu0 %v6154_v15  ;;  %5765 = vmatprep.subr.bf16.mxu1 %v6155_v35  ;;  %v6173_v26 = vld [vmem:[%s7945_s5 + $0x238] sm:$0xff]   ;;  %v6179_v23 = vld [vmem:[%s7945_s5 + $0x348] sm:$0xff]   ;;  %v6185_v35 = vld [vmem:[%s7945_s5 + $0x310] sm:$0xff]  }
 0x32f   :  { %v1000_v57 = vmax.f32 %v926_v46, 0.0  ;;  %v1002_v58 = vmax.f32 %v969_v47, 0.0  ;;  %5787 = vmatprep.subr.bf16.mxu0 %v6156_v40  ;;  %v6181_v34 = vld [vmem:[%s7945_s5 + $0x308] sm:$0xff]   ;;  %v6186_v36 = vld [vmem:[%s7945_s5 + $0x390] sm:$0xff]   ;;  %v6187_v37 = vld [vmem:[%s7945_s5 + $0x358] sm:$0xff]  }
 0x330   :  { %v7024_v60 = vpack.c.bf16 %v999_v51, %v983_v49  ;;  %v7026_v61 = vpack.c.bf16 %v1001_v52, %v985_v50  ;;  %v6182_v15 = vld [vmem:[%s7945_s5 + $0x388] sm:$0xff]   ;;  %v6188_v38 = vld [vmem:[%s7945_s5 + $0x3d8] sm:$0xff]   ;;  %v6191_v43 = vld [vmem:[%s7945_s5 + $0x360] sm:$0xff]  }
 0x331   :  { %v1016_v62 = vpack.c.bf16 %v1000_v57, %v984_v55  ;;  %v1018_v63 = vpack.c.bf16 %v1002_v58, %v986_v56  ;;  %5766 = vmatpush3.bf16.msra.mxu1 %v6157_v48  ;;  %v6189_v39 = vld [vmem:[%s7945_s5 + $0x318] sm:$0xff]   ;;  %v6192_v41 = vld [vmem:[%s7945_s5 + $0x3e0] sm:$0xff]   ;;  %v6195_v46 = vld [vmem:[%s7945_s5 + $0x368] sm:$0xff]  }
 0x332   :  { %5788 = vmatpush3.bf16.msra.mxu0 %v6158_v53  ;;  %5767 = vmatprep.subr.bf16.mxu1 %v6159_v54  ;;  %v6190_v40 = vld [vmem:[%s7945_s5 + $0x398] sm:$0xff]   ;;  %v6193_v44 = vld [vmem:[%s7945_s5 + $0x320] sm:$0xff]   ;;  %v6196_v47 = vld [vmem:[%s7945_s5 + $0x3e8] sm:$0xff]  }
 0x333   :  { %5789 = vmatprep.subr.bf16.mxu0 %v6160_v59  ;;  %v6194_v45 = vld [vmem:[%s7945_s5 + $0x3a0] sm:$0xff]   ;;  %v6197_v48 = vld [vmem:[%s7945_s5 + $0x328] sm:$0xff]   ;;  %v6199_v50 = vld [vmem:[%s7945_s5 + $0x370] sm:$0xff]  }
 0x334   :  { %v6198_v49 = vld [vmem:[%s7945_s5 + $0x3a8] sm:$0xff]   ;;  %v6200_v51 = vld [vmem:[%s7945_s5 + $0x3f0] sm:$0xff]   ;;  %v6203_v54 = vld [vmem:[%s7945_s5 + $0x378] sm:$0xff]  }
 0x335   :  { %5768 = vmatpush3.bf16.msra.mxu1 %v6161_v3  ;;  %v6201_v52 = vld [vmem:[%s7945_s5 + $0x330] sm:$0xff]   ;;  %v6204_v55 = vld [vmem:[%s7945_s5 + $0x3f8] sm:$0xff]  }
 0x336   :  { %5790 = vmatpush3.bf16.msra.mxu0 %v6162_v6  ;;  %5769 = vmatprep.subr.bf16.mxu1 %v6163_v7  ;;  %v6202_v53 = vld [vmem:[%s7945_s5 + $0x3b0] sm:$0xff]   ;;  %v6205_v56 = vld [vmem:[%s7945_s5 + $0x338] sm:$0xff]  }
 0x337   :  { %5791 = vmatprep.subr.bf16.mxu0 %v6164_v12  ;;  %v6206_v57 = vld [vmem:[%s7945_s5 + $0x3b8] sm:$0xff]  }
 0x339   :  { %5770 = vmatpush3.bf16.msra.mxu1 %v6165_v33 }
 0x33a   :  { %5792 = vmatpush3.bf16.msra.mxu0 %v6166_v13  ;;  %5771 = vmatprep.subr.bf16.mxu1 %v6167_v14 }
 0x33b   :  { %5793 = vmatprep.subr.bf16.mxu0 %v6168_v16 }
 0x33d   :  { %5772 = vmatpush3.bf16.msra.mxu1 %v6169_v17 }
 0x33e   :  { %5794 = vmatpush3.bf16.msra.mxu0 %v6170_v4  ;;  %5773 = vmatprep.subr.bf16.mxu1 %v6171_v5 }
 0x33f   :  { %5795 = vmatprep.subr.bf16.mxu0 %v6172_v19 }
 0x341   :  { %5774 = vmatpush3.bf16.msra.mxu1 %v6173_v26 }
 0x342   :  { %5796 = vmatpush3.bf16.msra.mxu0 %v6174_v28  ;;  %5803 = vmatprep.subr.bf16.mxu1 %v6175_v29 }
 0x343   :  { %5825 = vmatprep.subr.bf16.mxu0 %v6176_v30 }
 0x344   :  { %2244 = vmatmul.mubr.bf16.vlgmr.msra.gmra.mrb[24].mxu1 %v6962_v0  ;;  %v6183_v0 = vld [vmem:[%s7945_s5 + $0x350] sm:$0xff]  }
 0x345   :  { %2285 = vmatmul.mubr.bf16.vlgmr.msra.gmra.mrb[28].mxu0 %v6964_v2  ;;  %5804 = vmatpush3.bf16.msra.mxu1 %v6177_v9  ;;  %v6184_v2 = vld [vmem:[%s7945_s5 + $0x3d0] sm:$0xff]  }
 0x346   :  { %2325 = vmatprep.mubr.bf16.mxu1 %v1016_v62  ;;  %5826 = vmatpush3.bf16.msra.mxu0 %v6178_v31  ;;  %v7177_v62 = vld [vmem:[%s7942_s2] sm:$0xff] }
 0x347   :  { %2366 = vmatprep.mubr.bf16.mxu0 %v1018_v63  ;;  %5805 = vmatprep.subr.bf16.mxu1 %v6179_v23  ;;  %v1278_v63 = vrot.slane %v7177_v62, %v6827_v42 }
 0x348   :  { %5827 = vmatprep.subr.bf16.mxu0 %v6180_v11 }
 0x349   :  { %5806 = vmatpush3.bf16.msra.mxu1 %v6181_v34 }
 0x34a   :  { %5828 = vmatpush3.bf16.msra.mxu0 %v6182_v15  ;;  %5807 = vmatprep.subr.bf16.mxu1 %v6183_v0 }
 0x34b   :  { %5829 = vmatprep.subr.bf16.mxu0 %v6184_v2 }
 0x34d   :  { %5808 = vmatpush3.bf16.msra.mxu1 %v6185_v35 }
 0x34e   :  { %5830 = vmatpush3.bf16.msra.mxu0 %v6186_v36  ;;  %5809 = vmatprep.subr.bf16.mxu1 %v6187_v37 }
 0x34f   :  { %5831 = vmatprep.subr.bf16.mxu0 %v6188_v38 }
 0x351   :  { %5810 = vmatpush3.bf16.msra.mxu1 %v6189_v39 }
 0x352   :  { %5832 = vmatpush3.bf16.msra.mxu0 %v6190_v40  ;;  %5811 = vmatprep.subr.bf16.mxu1 %v6191_v43 }
 0x353   :  { %5833 = vmatprep.subr.bf16.mxu0 %v6192_v41 }
 0x355   :  { %5812 = vmatpush3.bf16.msra.mxu1 %v6193_v44 }
 0x356   :  { %5834 = vmatpush3.bf16.msra.mxu0 %v6194_v45  ;;  %5813 = vmatprep.subr.bf16.mxu1 %v6195_v46 }
 0x357   :  { %5835 = vmatprep.subr.bf16.mxu0 %v6196_v47 }
 0x359   :  { %5814 = vmatpush3.bf16.msra.mxu1 %v6197_v48 }
 0x35a   :  { %5836 = vmatpush3.bf16.msra.mxu0 %v6198_v49  ;;  %5815 = vmatprep.subr.bf16.mxu1 %v6199_v50 }
 0x35b   :  { %5837 = vmatprep.subr.bf16.mxu0 %v6200_v51 }
 0x35d   :  { %5816 = vmatpush3.bf16.msra.mxu1 %v6201_v52 }
 0x35e   :  { %5838 = vmatpush3.bf16.msra.mxu0 %v6202_v53  ;;  %5817 = vmatprep.subr.bf16.mxu1 %v6203_v54 }
 0x35f   :  { %5839 = vmatprep.subr.bf16.mxu0 %v6204_v55 }
 0x361   :  { %5818 = vmatpush3.bf16.msra.mxu1 %v6205_v56 }
 0x362   :  { %5840 = vmatpush3.bf16.msra.mxu0 %v6206_v57  ;;  %6045 = vmatprep.subr.bf16.mxu1 %v6385_v1 }
 0x364   :  { %2326 = vmatmul.mubr.bf16.vlgmr.msra.gmra.mrb[28].mxu1 %v7024_v60 }
 0x365   :  { %2367 = vmatmul.mubr.bf16.vlgmr.msra.gmra.mrb[32].mxu0 %v7026_v61  ;;  %6053 = vmatprep.mubr.msk.bf16.mxu1 %vm6386_vm0, %v6385_v1 }
 0x366   :  { %3043 = vmatprep.mubr.bf16.mxu0 %v6387_v8 }
 0x3d7   :  { %v5687_v58 = vpop.f32.mrb[16].mxu1  ;;  %v5709_v59 = vpop.f32.mrb[20].mxu0 }
 0x3d8   :  { %v5688_v3 = vpop.f32.mrb[17].mxu1  ;;  %v5710_v6 = vpop.f32.mrb[21].mxu0 }
 0x3d9   :  { %v5689_v60 = vadd.f32 %v5688_v3, %v5687_v58  ;;  %v5711_v7 = vadd.f32 %v5710_v6, %v5709_v59  ;;  %v5690_v61 = vpop.f32.mrb[18].mxu1  ;;  %v5712_v12 = vpop.f32.mrb[22].mxu0 }
 0x3da   :  { %v5691_v33 = vpop.f32.mrb[19].mxu1  ;;  %v5713_v13 = vpop.f32.mrb[23].mxu0 }
 0x3db   :  { %v2082_v14 = vadd.f32 %v5689_v60, %v1278_v63  ;;  %v5692_v16 = vadd.f32 %v5691_v33, %v5690_v61  ;;  %v5714_v17 = vadd.f32 %v5713_v13, %v5712_v12 }
 0x3dd   :  { %v2123_v4 = vadd.f32 %v5711_v7, %v2082_v14  ;;  %v2085_v5 = vadd.f32 %v5692_v16, %v1278_v63 }
 0x3df   :  { %v2126_v19 = vadd.f32 %v5714_v17, %v2085_v5 }
 0x3f7   :  { %v5731_v26 = vpop.f32.mrb[20].mxu1  ;;  %v5753_v28 = vpop.f32.mrb[24].mxu0 }
 0x3f8   :  { %v5732_v29 = vpop.f32.mrb[21].mxu1  ;;  %v5754_v30 = vpop.f32.mrb[25].mxu0 }
 0x3f9   :  { %v5733_v9 = vadd.f32 %v5732_v29, %v5731_v26  ;;  %v5755_v31 = vadd.f32 %v5754_v30, %v5753_v28  ;;  %v5734_v23 = vpop.f32.mrb[22].mxu1  ;;  %v5756_v11 = vpop.f32.mrb[26].mxu0 }
 0x3fa   :  { %v5735_v34 = vpop.f32.mrb[23].mxu1  ;;  %v5757_v15 = vpop.f32.mrb[27].mxu0 }
 0x3fb   :  { %v2164_v0 = vadd.f32 %v5733_v9, %v2123_v4  ;;  %v5736_v2 = vadd.f32 %v5735_v34, %v5734_v23  ;;  %v5758_v35 = vadd.f32 %v5757_v15, %v5756_v11 }
 0x3fd   :  { %v2205_v36 = vadd.f32 %v5755_v31, %v2164_v0  ;;  %v2167_v37 = vadd.f32 %v5736_v2, %v2126_v19  ;;  %v6208_v0 = vld [vmem:[%s7941_s1 + $0x28] sm:$0xff]   ;;  %v6209_v2 = vld [vmem:[%s7941_s1 + $0x30] sm:$0xff]  }
 0x3ff   :  { %v2208_v38 = vadd.f32 %v5758_v35, %v2167_v37  ;;  %v6210_v35 = vld [vmem:[%s7941_s1 + $0x38] sm:$0xff]  }
 0x417   :  { %v5775_v39 = vpop.f32.mrb[24].mxu1 }
 0x418   :  { %v5797_v40 = vpop.f32.mrb[28].mxu0  ;;  %v5776_v43 = vpop.f32.mrb[25].mxu1 }
 0x419   :  { %v5777_v41 = vadd.f32 %v5776_v43, %v5775_v39  ;;  %v5798_v44 = vpop.f32.mrb[29].mxu0  ;;  %v5778_v45 = vpop.f32.mrb[26].mxu1 }
 0x41a   :  { %v5799_v46 = vadd.f32 %v5798_v44, %v5797_v40  ;;  %v5800_v47 = vpop.f32.mrb[30].mxu0  ;;  %v5779_v48 = vpop.f32.mrb[27].mxu1 }
 0x41b   :  { %v2246_v49 = vadd.f32 %v5777_v41, %v2205_v36  ;;  %v5780_v50 = vadd.f32 %v5779_v48, %v5778_v45  ;;  %v5801_v51 = vpop.f32.mrb[31].mxu0  ;;  %v2406_v41 = vrot.slane %v7177_v62, %v6846_v20 }
 0x41c   :  { %v5802_v52 = vadd.f32 %v5801_v51, %v5800_v47 }
 0x41d   :  { %v2287_v53 = vadd.f32 %v5799_v46, %v2246_v49  ;;  %v2249_v54 = vadd.f32 %v5780_v50, %v2208_v38  ;;  %v2412_v49 = vrot.slane %v7177_v62, %v6852_v24 }
 0x41f   :  { %v2290_v55 = vadd.f32 %v5802_v52, %v2249_v54  ;;  %v7211_v54 = vld [vmem:[%s7942_s2 + $0x8] sm:$0xff] }
 0x437   :  { %v5819_v56 = vpop.f32.mrb[28].mxu1 }
 0x438   :  { %v5841_v57 = vpop.f32.mrb[32].mxu0  ;;  %v5820_v58 = vpop.f32.mrb[29].mxu1 }
 0x439   :  { %v5821_v59 = vadd.f32 %v5820_v58, %v5819_v56  ;;  %v5842_v63 = vpop.f32.mrb[33].mxu0  ;;  %v5822_v3 = vpop.f32.mrb[30].mxu1 }
 0x43a   :  { %v5843_v6 = vadd.f32 %v5842_v63, %v5841_v57  ;;  %v5844_v60 = vpop.f32.mrb[34].mxu0  ;;  %v5823_v7 = vpop.f32.mrb[31].mxu1 }
 0x43b   :  { %v2328_v61 = vadd.f32 %v5821_v59, %v2287_v53  ;;  %v5824_v12 = vadd.f32 %v5823_v7, %v5822_v3  ;;  %v5845_v33 = vpop.f32.mrb[35].mxu0 }
 0x43c   :  { %v5846_v13 = vadd.f32 %v5845_v33, %v5844_v60 }
 0x43d   :  { %v2369_v14 = vadd.f32 %v5843_v6, %v2328_v61  ;;  %v2331_v16 = vadd.f32 %v5824_v12, %v2290_v55  ;;  %v2430_v55 = vrot.slane %v7211_v54, %v6464_v10 }
 0x43f   :  { %v2372_v17 = vadd.f32 %v5846_v13, %v2331_v16  ;;  %v2375_v4 = vadd.f32 %v2369_v14, %v6571_v32 }
 0x441   :  { %v2377_v5 = vsel %vm71_vm1, %v2375_v4, 0.0  ;;  %v2376_v19 = vadd.f32 %v2372_v17, %v6573_v27  ;;  %v6207_v27 = vld [vmem:[%s7941_s1 + $0x20] sm:$0xff]   ;;  %s6361_s1 = scalar_lea.vmem %s4900_s24, 128 }
 0x442   :  { %2378 = vadd.xlane.f32.xlu0 %v2377_v5  ;;  %6046 = vmatpush3.bf16.msra.mxu1 %v6207_v27  ;;  %v5129_v5 = vld [vmem:[%s7943_s3 + $0x200] sm:$0xff]  ;;  %p6362_p0 = scmp.ne.s32.totalorder %s4900_s24, %s6361_s1  ;;  %p6367_p2 = scmp.lt.s32.totalorder %s6361_s1, %s6361_s1 }
 0x443   :  { %v2380_v26 = vsel %vm71_vm1, %v2376_v19, 0.0  ;;  %6047 = vmatprep.subr.bf16.mxu1 %v6385_v1 }
 0x444   :  { %2381 = vadd.xlane.f32.xlu1 %v2380_v26  ;;  %v5130_v26 = vld [vmem:[%s7943_s3 + $0x208] sm:$0xff]  ;;  %p6368_p3 = por %p6367_p2, %p6366_p1 }
 0x446   :  { %6048 = vmatpush3.bf16.msra.mxu1 %v6208_v0  ;;  %p6369_p4 = pnand %p6368_p3, %p6362_p0 }
 0x447   :  { %6049 = vmatprep.subr.bf16.mxu1 %v6385_v1 }
 0x44a   :  { %6050 = vmatpush3.bf16.msra.mxu1 %v6209_v2 }
 0x44b   :  { %6051 = vmatprep.subr.bf16.mxu1 %v6385_v1 }
 0x44e   :  { %6052 = vmatpush3.bf16.msra.mxu1 %v6210_v35  ;;  %v5161_v35 = vld [vmem:[%s7943_s3 + $0x300] sm:$0xff] }
 0x4cf   :  { %v2379_v28 = vpop.xlane.xlu0 %2378 }
 0x4d0   :  { %v2383_v29 = vmul.f32 0.015625, %v2379_v28 }
 0x4d1   :  { %v2382_v30 = vpop.xlane.xlu1 %2381 }
 0x4d2   :  { %v2385_v9 = vsub.f32 %v2375_v4, %v2383_v29  ;;  %v2384_v31 = vmul.f32 0.015625, %v2382_v30  ;;  %v5138_v29 = vld [vmem:[%s7943_s3 + $0x248] sm:$0xff] }
 0x4d4   :  { %v2386_v23 = vsub.f32 %v2376_v19, %v2384_v31  ;;  %v2387_v11 = vmul.f32 %v2385_v9, %v2385_v9  ;;  %v5137_v19 = vld [vmem:[%s7943_s3 + $0x240] sm:$0xff]  ;;  %v5198_v31 = vcombine.high %v5130_v26, %v5138_v29 }
 0x4d5   :  { %v5196_v28 = vcombine.high %v5129_v5, %v5137_v19  ;;  %v5195_v30 = vcombine.low %v5129_v5, %v5137_v19 }
 0x4d6   :  { %v2389_v34 = vsel %vm71_vm1, %v2387_v11, 0.0  ;;  %v2388_v15 = vmul.f32 %v2386_v23, %v2386_v23  ;;  %3054 = vmatprep.subr.bf16.mxu1 %v5198_v31  ;;  %v5153_v11 = vld [vmem:[%s7943_s3 + $0x2c0] sm:$0xff] }
 0x4d7   :  { %2390 = vadd.xlane.f32.xlu0 %v2389_v34  ;;  %3011 = vmatprep.subr.bf16.mxu0 %v5196_v28  ;;  %v5146_v34 = vld [vmem:[%s7943_s3 + $0x288] sm:$0xff]  ;;  %v5147_v28 = vld [vmem:[%s7943_s3 + $0x290] sm:$0xff] }
 0x4d8   :  { %v2392_v32 = vsel %vm71_vm1, %v2388_v15, 0.0  ;;  %3012 = vmatpush1.bf16.msra.mxu0 %v5195_v30 }
 0x4d9   :  { %2393 = vadd.xlane.f32.xlu1 %v2392_v32  ;;  %v5154_v32 = vld [vmem:[%s7943_s3 + $0x2c8] sm:$0xff] }
 0x4da   :  { %v5213_v0 = vcombine.low %v5146_v34, %v5154_v32  ;;  %v5214_v2 = vcombine.high %v5146_v34, %v5154_v32  ;;  %v5171_v34 = vld [vmem:[%s7943_s3 + $0x350] sm:$0xff]  ;;  %v5172_v32 = vld [vmem:[%s7943_s3 + $0x358] sm:$0xff] }
 0x564   :  { %v2391_v36 = vpop.xlane.xlu0 %2390 }
 0x565   :  { %v2395_v37 = vmul.f32 0.015625, %v2391_v36  ;;  %v5169_v36 = vld [vmem:[%s7943_s3 + $0x340] sm:$0xff] }
 0x566   :  { %v2394_v38 = vpop.xlane.xlu1 %2393 }
 0x567   :  { %v2397_v39 = vadd.f32 1e-05, %v2395_v37  ;;  %v2396_v40 = vmul.f32 0.015625, %v2394_v38  ;;  %v5162_v37 = vld [vmem:[%s7943_s3 + $0x308] sm:$0xff]  ;;  %v5228_v38 = vcombine.high %v5161_v35, %v5169_v36 }
 0x569   :  { %6347 = vrsqrt.f32 %v2397_v39  ;;  %v2398_v43 = vadd.f32 1e-05, %v2396_v40  ;;  %v5170_v39 = vld [vmem:[%s7943_s3 + $0x348] sm:$0xff]  ;;  %v5227_v40 = vcombine.low %v5161_v35, %v5169_v36  ;;  %v5179_v36 = vld [vmem:[%s7943_s3 + $0x390] sm:$0xff] }
 0x56b   :  { %6349 = vrsqrt.f32 %v2398_v43  ;;  %v5229_v43 = vcombine.low %v5162_v37, %v5170_v39 }
 0x573   :  { %v6348_v44 = vpop.eup %6347 }
 0x574   :  { %v2401_v45 = vmul.f32 %v6348_v44, %v2385_v9  ;;  %v5197_v9 = vcombine.low %v5130_v26, %v5138_v29  ;;  %v5177_v44 = vld [vmem:[%s7943_s3 + $0x380] sm:$0xff]  ;;  %v5155_v29 = vld [vmem:[%s7943_s3 + $0x2d0] sm:$0xff] }
 0x575   :  { %v6350_v46 = vpop.eup %6349  ;;  %v5216_v31 = vcombine.high %v5147_v28, %v5155_v29 }
 0x576   :  { %v2407_v47 = vmul.f32 %v2406_v41, %v2401_v45  ;;  %v2402_v48 = vmul.f32 %v6350_v46, %v2386_v23  ;;  %v5145_v23 = vld [vmem:[%s7943_s3 + $0x280] sm:$0xff]  ;;  %v5178_v46 = vld [vmem:[%s7943_s3 + $0x388] sm:$0xff] }
 0x577   :  { %v5212_v15 = vcombine.high %v5145_v23, %v5153_v11  ;;  %v5211_v27 = vcombine.low %v5145_v23, %v5153_v11  ;;  %v5185_v45 = vld [vmem:[%s7943_s3 + $0x3c0] sm:$0xff]  ;;  %v5163_v11 = vld [vmem:[%s7943_s3 + $0x310] sm:$0xff] }
 0x578   :  { %v2408_v50 = vmul.f32 %v2406_v41, %v2402_v48  ;;  %v2413_v51 = vadd.f32 %v2412_v49, %v2407_v47  ;;  %v5230_v41 = vcombine.high %v5162_v37, %v5170_v39  ;;  %v5244_v47 = vcombine.high %v5177_v44, %v5185_v45  ;;  %v5186_v48 = vld [vmem:[%s7943_s3 + $0x3c8] sm:$0xff]  ;;  %v5187_v37 = vld [vmem:[%s7943_s3 + $0x3d0] sm:$0xff]  ;;  %v5188_v39 = vld [vmem:[%s7943_s3 + $0x3d8] sm:$0xff] }
 0x579   :  { %3013 = vmatprep.subr.bf16.mxu0 %v5212_v15  ;;  %v5164_v15 = vld [vmem:[%s7943_s3 + $0x318] sm:$0xff] }
 0x57a   :  { %v2414_v52 = vadd.f32 %v2412_v49, %v2408_v50  ;;  %3014 = vmatpush1.bf16.msra.mxu0 %v5211_v27  ;;  %v5243_v49 = vcombine.low %v5177_v44, %v5185_v45  ;;  %v5245_v50 = vcombine.low %v5178_v46, %v5186_v48  ;;  %v5215_v27 = vcombine.low %v5147_v28, %v5155_v29  ;;  %v5133_v45 = vld [vmem:[%s7943_s3 + $0x220] sm:$0xff] }
 0x57b   :  { %3015 = vmatprep.subr.bf16.mxu0 %v5228_v38  ;;  %v5234_v35 = vcombine.high %v5164_v15, %v5172_v32  ;;  %v5180_v38 = vld [vmem:[%s7943_s3 + $0x398] sm:$0xff] }
 0x57c   :  { %v2417_v53 = vpack.c.bf16 %v2414_v52, %v2413_v51  ;;  %v5246_v51 = vcombine.high %v5178_v46, %v5186_v48  ;;  %v5131_v52 = vld [vmem:[%s7943_s3 + $0x210] sm:$0xff]  ;;  %v5250_v44 = vcombine.high %v5180_v38, %v5188_v39  ;;  %v5141_v46 = vld [vmem:[%s7943_s3 + $0x260] sm:$0xff]  ;;  %v5142_v48 = vld [vmem:[%s7943_s3 + $0x268] sm:$0xff] }
 0x57e   :  { %6054 = vmatmul.mubr.msk.bf16.vlgmr.msra.gmra.mrb[32].mxu1 %vm71_vm1, %v2417_v53  ;;  %3016 = vmatpush1.bf16.msra.mxu0 %v5227_v40  ;;  %v5139_v53 = vld [vmem:[%s7943_s3 + $0x250] sm:$0xff]  ;;  %v5231_v40 = vcombine.low %v5163_v11, %v5171_v34 }
 0x57f   :  { %3086 = vmatprep.mubr.bf16.mxu1 %v6387_v8  ;;  %3055 = vmatpush1.bf16.msra.mxu1 %v5197_v9 }
 0x580   :  { %3056 = vmatprep.subr.bf16.mxu1 %v5214_v2  ;;  %3017 = vmatprep.subr.bf16.mxu0 %v5244_v47  ;;  %v5232_v2 = vcombine.high %v5163_v11, %v5171_v34  ;;  %v5134_v47 = vld [vmem:[%s7943_s3 + $0x228] sm:$0xff]  ;;  %v5144_v11 = vld [vmem:[%s7943_s3 + $0x278] sm:$0xff] }
 0x582   :  { %3018 = vmatpush1.bf16.msra.mxu0 %v5243_v49  ;;  %v5247_v49 = vcombine.low %v5179_v36, %v5187_v37 }
 0x583   :  { %3057 = vmatpush1.bf16.msra.mxu1 %v5213_v0 }
 0x584   :  { %3058 = vmatprep.subr.bf16.mxu1 %v5230_v41  ;;  %v5248_v41 = vcombine.high %v5179_v36, %v5187_v37  ;;  %v5160_v36 = vld [vmem:[%s7943_s3 + $0x2f8] sm:$0xff] }
 0x587   :  { %3059 = vmatpush1.bf16.msra.mxu1 %v5229_v43  ;;  %v5233_v43 = vcombine.low %v5164_v15, %v5172_v32 }
 0x588   :  { %3060 = vmatprep.subr.bf16.mxu1 %v5246_v51  ;;  %v5204_v51 = vcombine.high %v5133_v45, %v5141_v46 }
 0x58b   :  { %3061 = vmatpush1.bf16.msra.mxu1 %v5245_v50  ;;  %v5249_v50 = vcombine.low %v5180_v38, %v5188_v39 }
 0x651   :  { %v2492_v56 = vpop.f32.mrb[32].mxu1 }
 0x652   :  { %v2493_v57 = vadd.f32 %v2492_v56, %v2430_v55  ;;  %v6055_v58 = vpop.f32.mrb[33].mxu1  ;;  %v5199_v56 = vcombine.low %v5131_v52, %v5139_v53 }
 0x653   :  { %v2495_v62 = vpop.f32.mrb[34].mxu1  ;;  %v5140_v58 = vld [vmem:[%s7943_s3 + $0x258] sm:$0xff] }
 0x654   :  { %v2496_v59 = vadd.f32 %v2495_v62, %v2430_v55  ;;  %v6056_v63 = vpop.f32.mrb[35].mxu1  ;;  %v2499_v3 = vsel %vm71_vm1, %v2493_v57, 0.0  ;;  %v5132_v55 = vld [vmem:[%s7943_s3 + $0x218] sm:$0xff] }
 0x655   :  { %2500 = vadd.xlane.f32.xlu0 %v2499_v3  ;;  %v5201_v62 = vcombine.low %v5132_v55, %v5140_v58 }
 0x656   :  { %v2502_v6 = vsel %vm71_vm1, %v2496_v59, 0.0 }
 0x657   :  { %2503 = vadd.xlane.f32.xlu1 %v2502_v6 }
 0x6e2   :  { %v2501_v60 = vpop.xlane.xlu0 %2500 }
 0x6e3   :  { %v2505_v7 = vmul.f32 0.015625, %v2501_v60 }
 0x6e4   :  { %v2504_v61 = vpop.xlane.xlu1 %2503 }
 0x6e5   :  { %v7217_v12 = vsub.f32 %v2493_v57, %v2505_v7  ;;  %v2506_v33 = vmul.f32 0.015625, %v2504_v61  ;;  %v5200_v57 = vcombine.high %v5131_v52, %v5139_v53  ;;  %v5206_v52 = vcombine.high %v5134_v47, %v5142_v48  ;;  %v5149_v53 = vld [vmem:[%s7943_s3 + $0x2a0] sm:$0xff] }
 0x6e7   :  { %v7219_v13 = vsub.f32 %v2496_v59, %v2506_v33  ;;  %v2509_v14 = vmul.f32 %v7217_v12, %v7217_v12  ;;  %v5202_v59 = vcombine.high %v5132_v55, %v5140_v58  ;;  %3097 = vmatprep.subr.bf16.mxu0 %v5200_v57  ;;  %v2528_v33 = vrot.slane %v7211_v54, %v6548_v18  ;;  %v5157_v55 = vld [vmem:[%s7943_s3 + $0x2e0] sm:$0xff]  ;;  %v5158_v57 = vld [vmem:[%s7943_s3 + $0x2e8] sm:$0xff] }
 0x6e8   :  { %v5203_v58 = vcombine.low %v5133_v45, %v5141_v46  ;;  %v5176_v45 = vld [vmem:[%s7943_s3 + $0x378] sm:$0xff] }
 0x6e9   :  { %v2511_v16 = vsel %vm71_vm1, %v2509_v14, 0.0  ;;  %v2510_v17 = vmul.f32 %v7219_v13, %v7219_v13  ;;  %3140 = vmatprep.subr.bf16.mxu1 %v5202_v59  ;;  %v5220_v59 = vcombine.high %v5149_v53, %v5157_v55 }
 0x6ea   :  { %2512 = vadd.xlane.f32.xlu0 %v2511_v16 }
 0x6eb   :  { %v2514_v4 = vsel %vm71_vm1, %v2510_v17, 0.0 }
 0x6ec   :  { %2515 = vadd.xlane.f32.xlu1 %v2514_v4  ;;  %v2534_v4 = vrot.slane %v7211_v54, %v6553_v21  ;;  %v5156_v54 = vld [vmem:[%s7943_s3 + $0x2d8] sm:$0xff] }
 0x777   :  { %v2513_v63 = vpop.xlane.xlu0 %2512 }
 0x778   :  { %v2517_v3 = vmul.f32 0.015625, %v2513_v63 }
 0x779   :  { %v2516_v6 = vpop.xlane.xlu1 %2515 }
 0x77a   :  { %v2519_v60 = vadd.f32 1e-05, %v2517_v3  ;;  %v2518_v7 = vmul.f32 0.015625, %v2516_v6  ;;  %v5165_v3 = vld [vmem:[%s7943_s3 + $0x320] sm:$0xff] }
 0x77b   :  { %v5173_v6 = vld [vmem:[%s7943_s3 + $0x360] sm:$0xff] }
 0x77c   :  { %6351 = vrsqrt.f32 %v2519_v60  ;;  %v2520_v61 = vadd.f32 1e-05, %v2518_v7  ;;  %v5166_v60 = vld [vmem:[%s7943_s3 + $0x328] sm:$0xff] }
 0x77d   :  { %v5174_v7 = vld [vmem:[%s7943_s3 + $0x368] sm:$0xff] }
 0x77e   :  { %6353 = vrsqrt.f32 %v2520_v61  ;;  %v5219_v61 = vcombine.low %v5149_v53, %v5157_v55  ;;  %v5237_v28 = vcombine.low %v5166_v60, %v5174_v7  ;;  %v5192_v53 = vld [vmem:[%s7943_s3 + $0x3f8] sm:$0xff] }
 0x786   :  { %v6352_v14 = vpop.eup %6351 }
 0x787   :  { %v2523_v16 = vmul.f32 %v6352_v14, %v7217_v12  ;;  %v5148_v12 = vld [vmem:[%s7943_s3 + $0x298] sm:$0xff]  ;;  %v5236_v14 = vcombine.high %v5165_v3, %v5173_v6 }
 0x788   :  { %v6354_v17 = vpop.eup %6353  ;;  %v5218_v23 = vcombine.high %v5148_v12, %v5156_v54  ;;  %v5217_v0 = vcombine.low %v5148_v12, %v5156_v54  ;;  %v5135_v54 = vld [vmem:[%s7943_s3 + $0x230] sm:$0xff] }
 0x789   :  { %v2529_v5 = vmul.f32 %v2528_v33, %v2523_v16  ;;  %v2524_v19 = vmul.f32 %v6354_v17, %v7219_v13  ;;  %v5238_v16 = vcombine.high %v5166_v60, %v5174_v7  ;;  %v5181_v17 = vld [vmem:[%s7943_s3 + $0x3a0] sm:$0xff]  ;;  %v6215_v60 = vld [vmem:[%s7945_s5 + $0x448] sm:$0xff]  }
 0x78a   :  { %v6216_v7 = vld [vmem:[%s7945_s5 + $0x4c8] sm:$0xff]  }
 0x78b   :  { %v2530_v26 = vmul.f32 %v2528_v33, %v2524_v19  ;;  %v7305_v30 = vadd.f32 %v2534_v4, %v2529_v5  ;;  %v5182_v5 = vld [vmem:[%s7943_s3 + $0x3a8] sm:$0xff] }
 0x78c   :  { %v5190_v19 = vld [vmem:[%s7943_s3 + $0x3e8] sm:$0xff] }
 0x78d   :  { %v7307_v13 = vadd.f32 %v2534_v4, %v2530_v26  ;;  %v5189_v4 = vld [vmem:[%s7943_s3 + $0x3e0] sm:$0xff]  ;;  %v5235_v26 = vcombine.low %v5165_v3, %v5173_v6  ;;  %v5254_v12 = vcombine.high %v5182_v5, %v5190_v19  ;;  %v5253_v15 = vcombine.low %v5182_v5, %v5190_v19  ;;  %v6224_v5 = vld [vmem:[%s7945_s5 + $0x4d8] sm:$0xff]  }
 0x78e   :  { %v5252_v29 = vcombine.high %v5181_v17, %v5189_v4  ;;  %v5251_v34 = vcombine.low %v5181_v17, %v5189_v4  ;;  %v6213_v3 = vld [vmem:[%s7945_s5 + $0x400] sm:$0xff]   ;;  %v6222_v17 = vld [vmem:[%s7945_s5 + $0x490] sm:$0xff]   ;;  %v6223_v4 = vld [vmem:[%s7945_s5 + $0x458] sm:$0xff]  }
 0x78f   :  { %v7311_v9 = vpack.c.bf16 %v7307_v13, %v7305_v30  ;;  %v6214_v6 = vld [vmem:[%s7945_s5 + $0x480] sm:$0xff]   ;;  %v6225_v19 = vld [vmem:[%s7945_s5 + $0x418] sm:$0xff]  }
 0x791   :  { %5259 = vmatmul.mubr.msk.bf16.vlgmr.msra.gmra.mrb[36].mxu0 %vm71_vm1, %v7311_v9  ;;  %5260 = vmatmul.mubr.msk.bf16.vlgmr.msra.gmra.mrb[36].mxu1 %vm71_vm1, %v7311_v9 }
 0x792   :  { %3098 = vmatpush1.bf16.msra.mxu0 %v5199_v56  ;;  %3141 = vmatpush1.bf16.msra.mxu1 %v5201_v62  ;;  %v5150_v56 = vld [vmem:[%s7943_s3 + $0x2a8] sm:$0xff]  ;;  %v5205_v62 = vcombine.low %v5134_v47, %v5142_v48 }
 0x793   :  { %3099 = vmatprep.subr.bf16.mxu0 %v5216_v31  ;;  %3142 = vmatprep.subr.bf16.mxu1 %v5218_v23  ;;  %v5222_v63 = vcombine.high %v5150_v56, %v5158_v57  ;;  %v5221_v33 = vcombine.low %v5150_v56, %v5158_v57  ;;  %v5143_v31 = vld [vmem:[%s7943_s3 + $0x270] sm:$0xff]  ;;  %v5136_v23 = vld [vmem:[%s7943_s3 + $0x238] sm:$0xff] }
 0x794   :  { %3129 = vmatprep.mubr.bf16.mxu0 %v6387_v8  ;;  %3172 = vmatprep.mubr.bf16.mxu1 %v6387_v8  ;;  %v5208_v32 = vcombine.high %v5135_v54, %v5143_v31  ;;  %v5207_v37 = vcombine.low %v5135_v54, %v5143_v31  ;;  %v5209_v38 = vcombine.low %v5136_v23, %v5144_v11  ;;  %v6230_v54 = vld [vmem:[%s7945_s5 + $0x4a0] sm:$0xff]   ;;  %v6231_v31 = vld [vmem:[%s7945_s5 + $0x468] sm:$0xff]  }
 0x796   :  { %3100 = vmatpush1.bf16.msra.mxu0 %v5215_v27  ;;  %3143 = vmatpush1.bf16.msra.mxu1 %v5217_v0  ;;  %v5210_v27 = vcombine.high %v5136_v23, %v5144_v11  ;;  %v5151_v0 = vld [vmem:[%s7943_s3 + $0x2b0] sm:$0xff]  ;;  %v6232_v23 = vld [vmem:[%s7945_s5 + $0x4e8] sm:$0xff]  }
 0x797   :  { %3101 = vmatprep.subr.bf16.mxu0 %v5232_v2  ;;  %3144 = vmatprep.subr.bf16.mxu1 %v5234_v35  ;;  %v5159_v2 = vld [vmem:[%s7943_s3 + $0x2f0] sm:$0xff]  ;;  %v5152_v35 = vld [vmem:[%s7943_s3 + $0x2b8] sm:$0xff]  ;;  %v6233_v11 = vld [vmem:[%s7945_s5 + $0x428] sm:$0xff]  }
 0x798   :  { %v5224_v39 = vcombine.high %v5151_v0, %v5159_v2  ;;  %v5223_v46 = vcombine.low %v5151_v0, %v5159_v2  ;;  %v5225_v47 = vcombine.low %v5152_v35, %v5160_v36  ;;  %v6238_v0 = vld [vmem:[%s7945_s5 + $0x4b0] sm:$0xff]   ;;  %v6239_v2 = vld [vmem:[%s7945_s5 + $0x478] sm:$0xff]  }
 0x79a   :  { %3102 = vmatpush1.bf16.msra.mxu0 %v5231_v40  ;;  %3145 = vmatpush1.bf16.msra.mxu1 %v5233_v43  ;;  %v5226_v40 = vcombine.high %v5152_v35, %v5160_v36  ;;  %v5167_v43 = vld [vmem:[%s7943_s3 + $0x330] sm:$0xff]  ;;  %v6240_v35 = vld [vmem:[%s7945_s5 + $0x4f8] sm:$0xff]  }
 0x79b   :  { %3103 = vmatprep.subr.bf16.mxu0 %v5248_v41  ;;  %3146 = vmatprep.subr.bf16.mxu1 %v5250_v44  ;;  %v5175_v41 = vld [vmem:[%s7943_s3 + $0x370] sm:$0xff]  ;;  %v5168_v44 = vld [vmem:[%s7943_s3 + $0x338] sm:$0xff] }
 0x79c   :  { %v5240_v48 = vcombine.high %v5167_v43, %v5175_v41  ;;  %v5239_v55 = vcombine.low %v5167_v43, %v5175_v41  ;;  %v5241_v56 = vcombine.low %v5168_v44, %v5176_v45  ;;  %v6241_v36 = vld [vmem:[%s7945_s5 + $0x438] sm:$0xff]  }
 0x79e   :  { %3104 = vmatpush1.bf16.msra.mxu0 %v5247_v49  ;;  %3147 = vmatpush1.bf16.msra.mxu1 %v5249_v50  ;;  %v5242_v49 = vcombine.high %v5168_v44, %v5176_v45  ;;  %v5183_v50 = vld [vmem:[%s7943_s3 + $0x3b0] sm:$0xff] }
 0x79f   :  { %3183 = vmatprep.subr.bf16.mxu0 %v5204_v51  ;;  %3226 = vmatprep.subr.bf16.mxu1 %v5206_v52  ;;  %v5191_v51 = vld [vmem:[%s7943_s3 + $0x3f0] sm:$0xff]  ;;  %v5184_v52 = vld [vmem:[%s7943_s3 + $0x3b8] sm:$0xff] }
 0x7a0   :  { %v5256_v57 = vcombine.high %v5183_v50, %v5191_v51 }
 0x7a1   :  { %5261 = vmatmul.mubr.msk.bf16.vlgmr.msra.gmra.mrb[40].mxu0 %vm71_vm1, %v7311_v9  ;;  %5262 = vmatmul.mubr.msk.bf16.vlgmr.msra.gmra.mrb[40].mxu1 %vm71_vm1, %v7311_v9 }
 0x7a2   :  { %3184 = vmatpush1.bf16.msra.mxu0 %v5203_v58  ;;  %3227 = vmatpush1.bf16.msra.mxu1 %v5205_v62  ;;  %v5258_v58 = vcombine.high %v5184_v52, %v5192_v53  ;;  %v5255_v62 = vcombine.low %v5183_v50, %v5191_v51 }
 0x7a3   :  { %3185 = vmatprep.subr.bf16.mxu0 %v5220_v59  ;;  %3228 = vmatprep.subr.bf16.mxu1 %v5222_v63  ;;  %v5257_v59 = vcombine.low %v5184_v52, %v5192_v53  ;;  %v6211_v63 = vld [vmem:[%s7945_s5 + $0x440] sm:$0xff]  }
 0x7a4   :  { %3215 = vmatprep.mubr.bf16.mxu0 %v6387_v8  ;;  %3258 = vmatprep.mubr.bf16.mxu1 %v6387_v8 }
 0x7a6   :  { %3186 = vmatpush1.bf16.msra.mxu0 %v5219_v61  ;;  %3229 = vmatpush1.bf16.msra.mxu1 %v5221_v33  ;;  %v6217_v61 = vld [vmem:[%s7945_s5 + $0x408] sm:$0xff]  }
 0x7a7   :  { %3187 = vmatprep.subr.bf16.mxu0 %v5236_v14  ;;  %3230 = vmatprep.subr.bf16.mxu1 %v5238_v16  ;;  %v6218_v33 = vld [vmem:[%s7945_s5 + $0x488] sm:$0xff]   ;;  %v6219_v14 = vld [vmem:[%s7945_s5 + $0x450] sm:$0xff]  }
 0x7a8   :  { %v6221_v16 = vld [vmem:[%s7945_s5 + $0x410] sm:$0xff]  }
 0x7aa   :  { %3188 = vmatpush1.bf16.msra.mxu0 %v5235_v26  ;;  %3231 = vmatpush1.bf16.msra.mxu1 %v5237_v28  ;;  %v6226_v26 = vld [vmem:[%s7945_s5 + $0x498] sm:$0xff]   ;;  %v6227_v28 = vld [vmem:[%s7945_s5 + $0x460] sm:$0xff]  }
 0x7ab   :  { %3189 = vmatprep.subr.bf16.mxu0 %v5252_v29  ;;  %3232 = vmatprep.subr.bf16.mxu1 %v5254_v12  ;;  %v6228_v29 = vld [vmem:[%s7945_s5 + $0x4e0] sm:$0xff]  }
 0x7ac   :  { %v6229_v12 = vld [vmem:[%s7945_s5 + $0x420] sm:$0xff]  }
 0x7ae   :  { %3190 = vmatpush1.bf16.msra.mxu0 %v5251_v34  ;;  %3233 = vmatpush1.bf16.msra.mxu1 %v5253_v15  ;;  %v6234_v34 = vld [vmem:[%s7945_s5 + $0x4a8] sm:$0xff]   ;;  %v6235_v15 = vld [vmem:[%s7945_s5 + $0x470] sm:$0xff]  }
 0x7af   :  { %3269 = vmatprep.subr.bf16.mxu0 %v5208_v32  ;;  %3312 = vmatprep.subr.bf16.mxu1 %v5210_v27  ;;  %v6236_v32 = vld [vmem:[%s7945_s5 + $0x4f0] sm:$0xff]  }
 0x7b0   :  { %v6237_v27 = vld [vmem:[%s7945_s5 + $0x430] sm:$0xff]  }
 0x7b1   :  { %5263 = vmatmul.mubr.msk.bf16.vlgmr.msra.gmra.mrb[44].mxu0 %vm71_vm1, %v7311_v9  ;;  %5264 = vmatmul.mubr.msk.bf16.vlgmr.msra.gmra.mrb[44].mxu1 %vm71_vm1, %v7311_v9 }
 0x7b2   :  { %3270 = vmatpush1.bf16.msra.mxu0 %v5207_v37  ;;  %3313 = vmatpush1.bf16.msra.mxu1 %v5209_v38  ;;  %v6242_v37 = vld [vmem:[%s7945_s5 + $0x4b8] sm:$0xff]   ;;  %v6243_v38 = vld [vmem:[%s7945_s5 + $0x540] sm:$0xff]  }
 0x7b3   :  { %3271 = vmatprep.subr.bf16.mxu0 %v5224_v39  ;;  %3314 = vmatprep.subr.bf16.mxu1 %v5226_v40  ;;  %v6244_v39 = vld [vmem:[%s7945_s5 + $0x5c0] sm:$0xff]   ;;  %v5193_v40 = vld [vmem:[%s7944_s4 + $0x10] sm:$0xff] }
 0x7b4   :  { %3301 = vmatprep.mubr.bf16.mxu0 %v6387_v8  ;;  %3344 = vmatprep.mubr.bf16.mxu1 %v6387_v8  ;;  %v6212_v8 = vld [vmem:[%s7945_s5 + $0x4c0] sm:$0xff]   ;;  %v2611_v43 = vrot.slane %v5193_v40, %v6464_v10  ;;  %v2619_v41 = vrot.slane %v5193_v40, %v6553_v21  ;;  %v2615_v44 = vrot.slane %v5193_v40, %v6548_v18 }
 0x7b5   :  { %v2623_v45 = vrot.slane %v5193_v40, %v6827_v42 }
 0x7b6   :  { %3272 = vmatpush1.bf16.msra.mxu0 %v5223_v46  ;;  %3315 = vmatpush1.bf16.msra.mxu1 %v5225_v47 }
 0x7b7   :  { %3273 = vmatprep.subr.bf16.mxu0 %v5240_v48  ;;  %3316 = vmatprep.subr.bf16.mxu1 %v5242_v49 }
 0x7ba   :  { %3274 = vmatpush1.bf16.msra.mxu0 %v5239_v55  ;;  %3317 = vmatpush1.bf16.msra.mxu1 %v5241_v56 }
 0x7bb   :  { %3275 = vmatprep.subr.bf16.mxu0 %v5256_v57  ;;  %3318 = vmatprep.subr.bf16.mxu1 %v5258_v58 }
 0x7be   :  { %3276 = vmatpush1.bf16.msra.mxu0 %v5255_v62  ;;  %3319 = vmatpush1.bf16.msra.mxu1 %v5257_v59 }
 0x7bf   :  { %5852 = vmatprep.subr.bf16.mxu0 %v6211_v63  ;;  %5874 = vmatprep.subr.bf16.mxu1 %v6212_v8 }
 0x7c1   :  { %5265 = vmatmul.mubr.msk.bf16.vlgmr.msra.gmra.mrb[48].mxu0 %vm71_vm1, %v7311_v9  ;;  %5266 = vmatmul.mubr.msk.bf16.vlgmr.msra.gmra.mrb[48].mxu1 %vm71_vm1, %v7311_v9  ;;  %v6220_v9 = vld [vmem:[%s7945_s5 + $0x4d0] sm:$0xff]  }
 0x7c2   :  { %5853 = vmatpush3.bf16.msra.mxu0 %v6213_v3  ;;  %5875 = vmatpush3.bf16.msra.mxu1 %v6214_v6 }
 0x7c3   :  { %5854 = vmatprep.subr.bf16.mxu0 %v6215_v60  ;;  %5876 = vmatprep.subr.bf16.mxu1 %v6216_v7 }
 0x7c6   :  { %5855 = vmatpush3.bf16.msra.mxu0 %v6217_v61  ;;  %5877 = vmatpush3.bf16.msra.mxu1 %v6218_v33 }
 0x7c7   :  { %5856 = vmatprep.subr.bf16.mxu0 %v6219_v14  ;;  %5878 = vmatprep.subr.bf16.mxu1 %v6220_v9 }
 0x7ca   :  { %5857 = vmatpush3.bf16.msra.mxu0 %v6221_v16  ;;  %5879 = vmatpush3.bf16.msra.mxu1 %v6222_v17 }
 0x7cb   :  { %5858 = vmatprep.subr.bf16.mxu0 %v6223_v4  ;;  %5880 = vmatprep.subr.bf16.mxu1 %v6224_v5 }
 0x7ce   :  { %5859 = vmatpush3.bf16.msra.mxu0 %v6225_v19  ;;  %5881 = vmatpush3.bf16.msra.mxu1 %v6226_v26  ;;  %v6245_v19 = vld [vmem:[%s7945_s5 + $0x500] sm:$0xff]  }
 0x7cf   :  { %5860 = vmatprep.subr.bf16.mxu0 %v6227_v28  ;;  %5882 = vmatprep.subr.bf16.mxu1 %v6228_v29  ;;  %v6246_v26 = vld [vmem:[%s7945_s5 + $0x580] sm:$0xff]   ;;  %v6247_v28 = vld [vmem:[%s7945_s5 + $0x548] sm:$0xff]  }
 0x7d0   :  { %v6248_v29 = vld [vmem:[%s7945_s5 + $0x5c8] sm:$0xff]  }
 0x7d2   :  { %5861 = vmatpush3.bf16.msra.mxu0 %v6229_v12  ;;  %5883 = vmatpush3.bf16.msra.mxu1 %v6230_v54  ;;  %v6249_v12 = vld [vmem:[%s7945_s5 + $0x508] sm:$0xff]  }
 0x7d3   :  { %5862 = vmatprep.subr.bf16.mxu0 %v6231_v31  ;;  %5884 = vmatprep.subr.bf16.mxu1 %v6232_v23  ;;  %v6250_v54 = vld [vmem:[%s7945_s5 + $0x588] sm:$0xff]   ;;  %v2627_v31 = vrot.slane %v5193_v40, %v6846_v20  ;;  %v2635_v23 = vrot.slane %v5193_v40, %v6849_v22 }
 0x7d6   :  { %5863 = vmatpush3.bf16.msra.mxu0 %v6233_v11  ;;  %5885 = vmatpush3.bf16.msra.mxu1 %v6234_v34  ;;  %v6251_v11 = vld [vmem:[%s7945_s5 + $0x550] sm:$0xff]  }
 0x7d7   :  { %5864 = vmatprep.subr.bf16.mxu0 %v6235_v15  ;;  %5886 = vmatprep.subr.bf16.mxu1 %v6236_v32  ;;  %v6252_v34 = vld [vmem:[%s7945_s5 + $0x5d0] sm:$0xff]   ;;  %v2631_v15 = vrot.slane %v5193_v40, %v6852_v24  ;;  %v2639_v32 = vrot.slane %v5193_v40, %v6855_v25  ;;  %v6255_v40 = vld [vmem:[%s7945_s5 + $0x558] sm:$0xff]  }
 0x7da   :  { %5865 = vmatpush3.bf16.msra.mxu0 %v6237_v27  ;;  %5887 = vmatpush3.bf16.msra.mxu1 %v6238_v0 }
 0x7db   :  { %5866 = vmatprep.subr.bf16.mxu0 %v6239_v2  ;;  %5888 = vmatprep.subr.bf16.mxu1 %v6240_v35  ;;  %v6253_v2 = vld [vmem:[%s7945_s5 + $0x510] sm:$0xff]  }
 0x7dc   :  { %v6254_v35 = vld [vmem:[%s7945_s5 + $0x590] sm:$0xff]  }
 0x7de   :  { %5867 = vmatpush3.bf16.msra.mxu0 %v6241_v36  ;;  %5889 = vmatpush3.bf16.msra.mxu1 %v6242_v37 }
 0x7df   :  { %5896 = vmatprep.subr.bf16.mxu0 %v6243_v38  ;;  %5918 = vmatprep.subr.bf16.mxu1 %v6244_v39 }
 0x864   :  { %v3045_v46 = vpop.f32.mrb[36].mxu0  ;;  %v3088_v47 = vpop.f32.mrb[36].mxu1 }
 0x865   :  { %v3046_v48 = vadd.f32 %v3045_v46, %v2611_v43  ;;  %v3089_v49 = vadd.f32 %v3088_v47, %v2619_v41  ;;  %v3047_v50 = vpop.f32.mrb[37].mxu0  ;;  %v3090_v51 = vpop.f32.mrb[37].mxu1 }
 0x866   :  { %v3048_v52 = vadd.f32 %v3047_v50, %v2615_v44  ;;  %v3091_v53 = vadd.f32 %v3090_v51, %v2623_v45  ;;  %v3049_v55 = vpop.f32.mrb[38].mxu0  ;;  %v3092_v56 = vpop.f32.mrb[38].mxu1 }
 0x867   :  { %v3050_v57 = vadd.f32 %v3049_v55, %v2611_v43  ;;  %v3093_v58 = vadd.f32 %v3092_v56, %v2619_v41  ;;  %v3051_v62 = vpop.f32.mrb[39].mxu0  ;;  %v3094_v59 = vpop.f32.mrb[39].mxu1  ;;  %v3355_v3 = vmax.f32 %v3046_v48, 0.0  ;;  %v3357_v6 = vmax.f32 %v3089_v49, 0.0  ;;  %v6256_v43 = vld [vmem:[%s7945_s5 + $0x5d8] sm:$0xff]  }
 0x868   :  { %v3052_v63 = vadd.f32 %v3051_v62, %v2615_v44  ;;  %v3095_v8 = vadd.f32 %v3094_v59, %v2623_v45  ;;  %v3356_v61 = vmax.f32 %v3048_v52, 0.0  ;;  %v3358_v33 = vmax.f32 %v3091_v53, 0.0  ;;  %v6257_v53 = vld [vmem:[%s7945_s5 + $0x518] sm:$0xff]   ;;  %v6259_v59 = vld [vmem:[%s7945_s5 + $0x560] sm:$0xff]  }
 0x869   :  { %v3371_v60 = vmax.f32 %v3050_v57, 0.0  ;;  %v3373_v7 = vmax.f32 %v3093_v58, 0.0  ;;  %v6258_v55 = vld [vmem:[%s7945_s5 + $0x598] sm:$0xff]  }
 0x86a   :  { %v3372_v14 = vmax.f32 %v3052_v63, 0.0  ;;  %v3374_v9 = vmax.f32 %v3095_v8, 0.0  ;;  %v6260_v63 = vld [vmem:[%s7945_s5 + $0x5e0] sm:$0xff]  }
 0x86b   :  { %v3387_v16 = vpack.c.bf16 %v3371_v60, %v3355_v3  ;;  %v3389_v17 = vpack.c.bf16 %v3373_v7, %v3357_v6 }
 0x86c   :  { %v3388_v4 = vpack.c.bf16 %v3372_v14, %v3356_v61  ;;  %v3390_v5 = vpack.c.bf16 %v3374_v9, %v3358_v33  ;;  %v6261_v9 = vld [vmem:[%s7945_s5 + $0x520] sm:$0xff]  }
 0x86e   :  { %4464 = vmatprep.mubr.bf16.mxu0 %v3388_v4  ;;  %4505 = vmatprep.mubr.bf16.mxu1 %v3390_v5  ;;  %v6264_v4 = vld [vmem:[%s7945_s5 + $0x5e8] sm:$0xff]   ;;  %v7635_v5 = vld [vmem:[%s7944_s4 + $0x18] sm:$0xff] }
 0x86f   :  { %4465 = vmatmul.mubr.bf16.vlgmr.msra.gmra.mrb[52].mxu0 %v3387_v16  ;;  %4506 = vmatmul.mubr.bf16.vlgmr.msra.gmra.mrb[52].mxu1 %v3389_v17  ;;  %v6262_v16 = vld [vmem:[%s7945_s5 + $0x5a0] sm:$0xff]   ;;  %v6263_v17 = vld [vmem:[%s7945_s5 + $0x568] sm:$0xff]  }
 0x870   :  { %5897 = vmatpush3.bf16.msra.mxu0 %v6245_v19  ;;  %5919 = vmatpush3.bf16.msra.mxu1 %v6246_v26  ;;  %v6265_v19 = vld [vmem:[%s7945_s5 + $0x528] sm:$0xff]  }
 0x871   :  { %5898 = vmatprep.subr.bf16.mxu0 %v6247_v28  ;;  %5920 = vmatprep.subr.bf16.mxu1 %v6248_v29  ;;  %v6266_v26 = vld [vmem:[%s7945_s5 + $0x5a8] sm:$0xff]   ;;  %v2643_v28 = vrot.slane %v7635_v5, %v6464_v10  ;;  %v2651_v29 = vrot.slane %v7635_v5, %v6553_v21  ;;  %v6269_v10 = vld [vmem:[%s7945_s5 + $0x530] sm:$0xff]  }
 0x872   :  { %v6270_v21 = vld [vmem:[%s7945_s5 + $0x5b0] sm:$0xff]  }
 0x874   :  { %v3131_v27 = vpop.f32.mrb[40].mxu0  ;;  %v3174_v0 = vpop.f32.mrb[40].mxu1  ;;  %5899 = vmatpush3.bf16.msra.mxu0 %v6249_v12  ;;  %5921 = vmatpush3.bf16.msra.mxu1 %v6250_v54  ;;  %v6267_v12 = vld [vmem:[%s7945_s5 + $0x570] sm:$0xff]  }
 0x875   :  { %v3132_v36 = vadd.f32 %v3131_v27, %v2627_v31  ;;  %v3175_v37 = vadd.f32 %v3174_v0, %v2635_v23  ;;  %v3133_v38 = vpop.f32.mrb[41].mxu0  ;;  %v3176_v39 = vpop.f32.mrb[41].mxu1  ;;  %5900 = vmatprep.subr.bf16.mxu0 %v6251_v11  ;;  %5922 = vmatprep.subr.bf16.mxu1 %v6252_v34  ;;  %v6268_v54 = vld [vmem:[%s7945_s5 + $0x5f0] sm:$0xff]  }
 0x876   :  { %v3134_v41 = vadd.f32 %v3133_v38, %v2631_v15  ;;  %v3177_v44 = vadd.f32 %v3176_v39, %v2639_v32  ;;  %v3135_v45 = vpop.f32.mrb[42].mxu0  ;;  %v3178_v46 = vpop.f32.mrb[42].mxu1 }
 0x877   :  { %v3136_v47 = vadd.f32 %v3135_v45, %v2627_v31  ;;  %v3179_v48 = vadd.f32 %v3178_v46, %v2635_v23  ;;  %v3137_v49 = vpop.f32.mrb[43].mxu0  ;;  %v3180_v50 = vpop.f32.mrb[43].mxu1  ;;  %v3359_v56 = vmax.f32 %v3132_v36, 0.0  ;;  %v3361_v57 = vmax.f32 %v3175_v37, 0.0  ;;  %v6273_v46 = vld [vmem:[%s7945_s5 + $0x538] sm:$0xff]  }
 0x878   :  { %v3138_v51 = vadd.f32 %v3137_v49, %v2631_v15  ;;  %v3181_v52 = vadd.f32 %v3180_v50, %v2639_v32  ;;  %5901 = vmatpush3.bf16.msra.mxu0 %v6253_v2  ;;  %5923 = vmatpush3.bf16.msra.mxu1 %v6254_v35  ;;  %v3360_v8 = vmax.f32 %v3134_v41, 0.0  ;;  %v3362_v3 = vmax.f32 %v3177_v44, 0.0  ;;  %v6272_v2 = vld [vmem:[%s7945_s5 + $0x5f8] sm:$0xff]  }
 0x879   :  { %v3375_v58 = vmax.f32 %v3136_v47, 0.0  ;;  %v3377_v62 = vmax.f32 %v3179_v48, 0.0  ;;  %5902 = vmatprep.subr.bf16.mxu0 %v6255_v40  ;;  %5924 = vmatprep.subr.bf16.mxu1 %v6256_v43  ;;  %v2647_v31 = vrot.slane %v7635_v5, %v6548_v18  ;;  %v2655_v23 = vrot.slane %v7635_v5, %v6827_v42  ;;  %v6271_v18 = vld [vmem:[%s7945_s5 + $0x578] sm:$0xff]  }
 0x87a   :  { %v3376_v6 = vmax.f32 %v3138_v51, 0.0  ;;  %v3378_v60 = vmax.f32 %v3181_v52, 0.0  ;;  %v6274_v47 = vld [vmem:[%s7945_s5 + $0x5b8] sm:$0xff]   ;;  %v6275_v52 = vld [vmem:[%s7945_s5 + $0x640] sm:$0xff]  }
 0x87b   :  { %v7616_v7 = vpack.c.bf16 %v3375_v58, %v3359_v56  ;;  %v7618_v61 = vpack.c.bf16 %v3377_v62, %v3361_v57 }
 0x87c   :  { %v3392_v33 = vpack.c.bf16 %v3376_v6, %v3360_v8  ;;  %v3394_v14 = vpack.c.bf16 %v3378_v60, %v3362_v3  ;;  %5903 = vmatpush3.bf16.msra.mxu0 %v6257_v53  ;;  %5925 = vmatpush3.bf16.msra.mxu1 %v6258_v55  ;;  %v6276_v53 = vld [vmem:[%s7945_s5 + $0x6c0] sm:$0xff]   ;;  %v6279_v60 = vld [vmem:[%s7945_s5 + $0x648] sm:$0xff]  }
 0x87d   :  { %5904 = vmatprep.subr.bf16.mxu0 %v6259_v59  ;;  %5926 = vmatprep.subr.bf16.mxu1 %v6260_v63  ;;  %v6277_v3 = vld [vmem:[%s7945_s5 + $0x600] sm:$0xff]  }
 0x87e   :  { %4546 = vmatprep.mubr.bf16.mxu0 %v3392_v33  ;;  %4587 = vmatprep.mubr.bf16.mxu1 %v3394_v14  ;;  %v6278_v6 = vld [vmem:[%s7945_s5 + $0x680] sm:$0xff]   ;;  %v6280_v33 = vld [vmem:[%s7945_s5 + $0x6c8] sm:$0xff]  }
 0x87f   :  { %v6281_v14 = vld [vmem:[%s7945_s5 + $0x608] sm:$0xff]  }
 0x880   :  { %5905 = vmatpush3.bf16.msra.mxu0 %v6261_v9  ;;  %5927 = vmatpush3.bf16.msra.mxu1 %v6262_v16  ;;  %v2659_v9 = vrot.slane %v7635_v5, %v6846_v20  ;;  %v2667_v16 = vrot.slane %v7635_v5, %v6849_v22  ;;  %v6284_v22 = vld [vmem:[%s7945_s5 + $0x6d0] sm:$0xff]  }
 0x881   :  { %5906 = vmatprep.subr.bf16.mxu0 %v6263_v17  ;;  %5928 = vmatprep.subr.bf16.mxu1 %v6264_v4  ;;  %v2663_v17 = vrot.slane %v7635_v5, %v6852_v24  ;;  %v2671_v4 = vrot.slane %v7635_v5, %v6855_v25  ;;  %v6286_v25 = vld [vmem:[%s7945_s5 + $0x690] sm:$0xff]   ;;  %v6287_v5 = vld [vmem:[%s7945_s5 + $0x658] sm:$0xff]  }
 0x884   :  { %v3217_v11 = vpop.f32.mrb[44].mxu0  ;;  %v3260_v34 = vpop.f32.mrb[44].mxu1  ;;  %5907 = vmatpush3.bf16.msra.mxu0 %v6265_v19  ;;  %5929 = vmatpush3.bf16.msra.mxu1 %v6266_v26 }
 0x885   :  { %v3218_v15 = vadd.f32 %v3217_v11, %v2643_v28  ;;  %v3261_v32 = vadd.f32 %v3260_v34, %v2651_v29  ;;  %v3219_v27 = vpop.f32.mrb[45].mxu0  ;;  %v3262_v0 = vpop.f32.mrb[45].mxu1  ;;  %5908 = vmatprep.subr.bf16.mxu0 %v6267_v12  ;;  %5930 = vmatprep.subr.bf16.mxu1 %v6268_v54 }
 0x886   :  { %v3220_v35 = vadd.f32 %v3219_v27, %v2647_v31  ;;  %v3263_v36 = vadd.f32 %v3262_v0, %v2655_v23  ;;  %v3221_v37 = vpop.f32.mrb[46].mxu0  ;;  %v3264_v38 = vpop.f32.mrb[46].mxu1 }
 0x887   :  { %v3222_v39 = vadd.f32 %v3221_v37, %v2643_v28  ;;  %v3265_v40 = vadd.f32 %v3264_v38, %v2651_v29  ;;  %v3223_v43 = vpop.f32.mrb[47].mxu0  ;;  %v3266_v41 = vpop.f32.mrb[47].mxu1  ;;  %v3363_v48 = vmax.f32 %v3218_v15, 0.0  ;;  %v3365_v49 = vmax.f32 %v3261_v32, 0.0  ;;  %v6285_v28 = vld [vmem:[%s7945_s5 + $0x610] sm:$0xff]  }
 0x888   :  { %v3224_v44 = vadd.f32 %v3223_v43, %v2647_v31  ;;  %v3267_v45 = vadd.f32 %v3266_v41, %v2655_v23  ;;  %5909 = vmatpush3.bf16.msra.mxu0 %v6269_v10  ;;  %5931 = vmatpush3.bf16.msra.mxu1 %v6270_v21  ;;  %v3364_v55 = vmax.f32 %v3220_v35, 0.0  ;;  %v3366_v56 = vmax.f32 %v3263_v36, 0.0  ;;  %v6288_v21 = vld [vmem:[%s7945_s5 + $0x6d8] sm:$0xff]   ;;  %v6291_v43 = vld [vmem:[%s7945_s5 + $0x660] sm:$0xff]  }
 0x889   :  { %v3379_v50 = vmax.f32 %v3222_v39, 0.0  ;;  %v3381_v51 = vmax.f32 %v3265_v40, 0.0  ;;  %5910 = vmatprep.subr.bf16.mxu0 %v6271_v18  ;;  %5932 = vmatprep.subr.bf16.mxu1 %v6272_v2  ;;  %v6289_v35 = vld [vmem:[%s7945_s5 + $0x618] sm:$0xff]  }
 0x88a   :  { %v3380_v57 = vmax.f32 %v3224_v44, 0.0  ;;  %v3382_v58 = vmax.f32 %v3267_v45, 0.0  ;;  %v6290_v40 = vld [vmem:[%s7945_s5 + $0x698] sm:$0xff]  }
 0x88b   :  { %v7681_v62 = vpack.c.bf16 %v3379_v50, %v3363_v48  ;;  %v7683_v59 = vpack.c.bf16 %v3381_v51, %v3365_v49 }
 0x88c   :  { %v3396_v63 = vpack.c.bf16 %v3380_v57, %v3364_v55  ;;  %v3398_v8 = vpack.c.bf16 %v3382_v58, %v3366_v56  ;;  %5911 = vmatpush3.bf16.msra.mxu0 %v6273_v46  ;;  %5933 = vmatpush3.bf16.msra.mxu1 %v6274_v47  ;;  %v6292_v47 = vld [vmem:[%s7945_s5 + $0x6e0] sm:$0xff]   ;;  %v6295_v55 = vld [vmem:[%s7945_s5 + $0x668] sm:$0xff]  }
 0x88d   :  { %5940 = vmatprep.subr.bf16.mxu0 %v6275_v52  ;;  %5962 = vmatprep.subr.bf16.mxu1 %v6276_v53  ;;  %v6293_v52 = vld [vmem:[%s7945_s5 + $0x620] sm:$0xff]   ;;  %v6296_v56 = vld [vmem:[%s7945_s5 + $0x6e8] sm:$0xff]  }
 0x88e   :  { %v6294_v53 = vld [vmem:[%s7945_s5 + $0x6a0] sm:$0xff]   ;;  %v6297_v57 = vld [vmem:[%s7945_s5 + $0x628] sm:$0xff]  }
 0x88f   :  { %4547 = vmatmul.mubr.bf16.vlgmr.msra.gmra.mrb[56].mxu0 %v7616_v7  ;;  %4588 = vmatmul.mubr.bf16.vlgmr.msra.gmra.mrb[56].mxu1 %v7618_v61  ;;  %v6282_v7 = vld [vmem:[%s7945_s5 + $0x688] sm:$0xff]   ;;  %v6283_v61 = vld [vmem:[%s7945_s5 + $0x650] sm:$0xff]  }
 0x890   :  { %5941 = vmatpush3.bf16.msra.mxu0 %v6277_v3  ;;  %4628 = vmatprep.mubr.bf16.mxu0 %v3396_v63  ;;  %v6298_v58 = vld [vmem:[%s7945_s5 + $0x6a8] sm:$0xff]   ;;  %v6299_v63 = vld [vmem:[%s7945_s5 + $0x670] sm:$0xff]  }
 0x891   :  { %5963 = vmatpush3.bf16.msra.mxu1 %v6278_v6  ;;  %4669 = vmatprep.mubr.bf16.mxu1 %v3398_v8  ;;  %v6300_v8 = vld [vmem:[%s7945_s5 + $0x6f0] sm:$0xff]  }
 0x892   :  { %5942 = vmatprep.subr.bf16.mxu0 %v6279_v60  ;;  %5964 = vmatprep.subr.bf16.mxu1 %v6280_v33  ;;  %v6301_v3 = vld [vmem:[%s7945_s5 + $0x630] sm:$0xff]   ;;  %v6303_v60 = vld [vmem:[%s7945_s5 + $0x678] sm:$0xff]  }
 0x893   :  { %v6302_v6 = vld [vmem:[%s7945_s5 + $0x6b0] sm:$0xff]   ;;  %v6304_v33 = vld [vmem:[%s7945_s5 + $0x6f8] sm:$0xff]  }
 0x894   :  { %v3303_v19 = vpop.f32.mrb[48].mxu0  ;;  %v3346_v26 = vpop.f32.mrb[48].mxu1  ;;  %5943 = vmatpush3.bf16.msra.mxu0 %v6281_v14  ;;  %v6305_v14 = vld [vmem:[%s7945_s5 + $0x638] sm:$0xff]  }
 0x895   :  { %v3304_v29 = vadd.f32 %v3303_v19, %v2659_v9  ;;  %v3347_v12 = vadd.f32 %v3346_v26, %v2667_v16  ;;  %5965 = vmatpush3.bf16.msra.mxu1 %v6282_v7  ;;  %v3305_v54 = vpop.f32.mrb[49].mxu0  ;;  %v3348_v31 = vpop.f32.mrb[49].mxu1  ;;  %5944 = vmatprep.subr.bf16.mxu0 %v6283_v61  ;;  %v6308_v7 = vld [vmem:[%s7945_s5 + $0x7c0] sm:$0xff]   ;;  %v6313_v19 = vld [vmem:[%s7945_s5 + $0x708] sm:$0xff]  }
 0x896   :  { %v3306_v23 = vadd.f32 %v3305_v54, %v2663_v17  ;;  %v3349_v11 = vadd.f32 %v3348_v31, %v2671_v4  ;;  %v3307_v34 = vpop.f32.mrb[50].mxu0  ;;  %v3350_v10 = vpop.f32.mrb[50].mxu1  ;;  %5966 = vmatprep.subr.bf16.mxu1 %v6284_v22  ;;  %v6309_v61 = vld [vmem:[%s7945_s5 + $0x700] sm:$0xff]   ;;  %v6312_v22 = vld [vmem:[%s7945_s5 + $0x7c8] sm:$0xff]   ;;  %v6320_v54 = vld [vmem:[%s7945_s5 + $0x7d8] sm:$0xff]  }
 0x897   :  { %v3308_v15 = vadd.f32 %v3307_v34, %v2659_v9  ;;  %v3351_v32 = vadd.f32 %v3350_v10, %v2667_v16  ;;  %v3309_v27 = vpop.f32.mrb[51].mxu0  ;;  %v3352_v0 = vpop.f32.mrb[51].mxu1  ;;  %v3367_v36 = vmax.f32 %v3304_v29, 0.0  ;;  %v3369_v37 = vmax.f32 %v3347_v12, 0.0  ;;  %v6306_v9 = vld [vmem:[%s7945_s5 + $0x6b8] sm:$0xff]   ;;  %v6307_v16 = vld [vmem:[%s7945_s5 + $0x740] sm:$0xff]  }
 0x898   :  { %v3310_v18 = vadd.f32 %v3309_v27, %v2663_v17  ;;  %v3353_v2 = vadd.f32 %v3352_v0, %v2671_v4  ;;  %5945 = vmatpush3.bf16.msra.mxu0 %v6285_v28  ;;  %v3368_v41 = vmax.f32 %v3306_v23, 0.0  ;;  %v3370_v44 = vmax.f32 %v3349_v11, 0.0  ;;  %v6310_v17 = vld [vmem:[%s7945_s5 + $0x780] sm:$0xff]   ;;  %v6311_v4 = vld [vmem:[%s7945_s5 + $0x748] sm:$0xff]   ;;  %v6317_v28 = vld [vmem:[%s7945_s5 + $0x710] sm:$0xff]  }
 0x899   :  { %v3383_v38 = vmax.f32 %v3308_v15, 0.0  ;;  %v3385_v39 = vmax.f32 %v3351_v32, 0.0  ;;  %5967 = vmatpush3.bf16.msra.mxu1 %v6286_v25  ;;  %5946 = vmatprep.subr.bf16.mxu0 %v6287_v5  ;;  %v6314_v26 = vld [vmem:[%s7945_s5 + $0x788] sm:$0xff]   ;;  %v6318_v29 = vld [vmem:[%s7945_s5 + $0x790] sm:$0xff]   ;;  %v6319_v12 = vld [vmem:[%s7945_s5 + $0x758] sm:$0xff]  }
 0x89a   :  { %v3384_v45 = vmax.f32 %v3310_v18, 0.0  ;;  %v3386_v46 = vmax.f32 %v3353_v2, 0.0  ;;  %5968 = vmatprep.subr.bf16.mxu1 %v6288_v21  ;;  %v6321_v31 = vld [vmem:[%s7945_s5 + $0x718] sm:$0xff]   ;;  %v6323_v5 = vld [vmem:[%s7945_s5 + $0x760] sm:$0xff]   ;;  %v6327_v10 = vld [vmem:[%s7945_s5 + $0x768] sm:$0xff]  }
 0x89b   :  { %v7743_v48 = vpack.c.bf16 %v3383_v38, %v3367_v36  ;;  %v7745_v49 = vpack.c.bf16 %v3385_v39, %v3369_v37  ;;  %v6322_v25 = vld [vmem:[%s7945_s5 + $0x798] sm:$0xff]   ;;  %v6324_v23 = vld [vmem:[%s7945_s5 + $0x7e0] sm:$0xff]   ;;  %v6328_v21 = vld [vmem:[%s7945_s5 + $0x7e8] sm:$0xff]  }
 0x89c   :  { %v3400_v50 = vpack.c.bf16 %v3384_v45, %v3368_v41  ;;  %v3402_v51 = vpack.c.bf16 %v3386_v46, %v3370_v44  ;;  %5947 = vmatpush3.bf16.msra.mxu0 %v6289_v35  ;;  %v6325_v11 = vld [vmem:[%s7945_s5 + $0x720] sm:$0xff]   ;;  %v6329_v15 = vld [vmem:[%s7945_s5 + $0x728] sm:$0xff]   ;;  %v6331_v27 = vld [vmem:[%s7945_s5 + $0x770] sm:$0xff]  }
 0x89d   :  { %5969 = vmatpush3.bf16.msra.mxu1 %v6290_v40  ;;  %5948 = vmatprep.subr.bf16.mxu0 %v6291_v43  ;;  %v6326_v34 = vld [vmem:[%s7945_s5 + $0x7a0] sm:$0xff]   ;;  %v6330_v32 = vld [vmem:[%s7945_s5 + $0x7a8] sm:$0xff]   ;;  %v6332_v0 = vld [vmem:[%s7945_s5 + $0x7f0] sm:$0xff]  }
 0x89e   :  { %5970 = vmatprep.subr.bf16.mxu1 %v6292_v47  ;;  %v6333_v18 = vld [vmem:[%s7945_s5 + $0x730] sm:$0xff]   ;;  %v6335_v35 = vld [vmem:[%s7945_s5 + $0x778] sm:$0xff]   ;;  %v7895_v43 = vld [vmem:[%s7942_s2 + $0x8] sm:$0xff] }
 0x89f   :  { %v6334_v2 = vld [vmem:[%s7945_s5 + $0x7b0] sm:$0xff]   ;;  %v6336_v36 = vld [vmem:[%s7945_s5 + $0x7f8] sm:$0xff]   ;;  %v3663_v41 = vrot.slane %v7895_v43, %v6827_v42 }
 0x8a0   :  { %5949 = vmatpush3.bf16.msra.mxu0 %v6293_v52  ;;  %v6337_v37 = vld [vmem:[%s7945_s5 + $0x738] sm:$0xff]  }
 0x8a1   :  { %5971 = vmatpush3.bf16.msra.mxu1 %v6294_v53  ;;  %5950 = vmatprep.subr.bf16.mxu0 %v6295_v55  ;;  %v6338_v38 = vld [vmem:[%s7945_s5 + $0x7b8] sm:$0xff]  }
 0x8a2   :  { %5972 = vmatprep.subr.bf16.mxu1 %v6296_v56 }
 0x8a4   :  { %5951 = vmatpush3.bf16.msra.mxu0 %v6297_v57 }
 0x8a5   :  { %5973 = vmatpush3.bf16.msra.mxu1 %v6298_v58  ;;  %5952 = vmatprep.subr.bf16.mxu0 %v6299_v63 }
 0x8a6   :  { %5974 = vmatprep.subr.bf16.mxu1 %v6300_v8 }
 0x8a8   :  { %5953 = vmatpush3.bf16.msra.mxu0 %v6301_v3 }
 0x8a9   :  { %5975 = vmatpush3.bf16.msra.mxu1 %v6302_v6  ;;  %5954 = vmatprep.subr.bf16.mxu0 %v6303_v60 }
 0x8aa   :  { %5976 = vmatprep.subr.bf16.mxu1 %v6304_v33 }
 0x8ac   :  { %5955 = vmatpush3.bf16.msra.mxu0 %v6305_v14 }
 0x8ad   :  { %5977 = vmatpush3.bf16.msra.mxu1 %v6306_v9  ;;  %5984 = vmatprep.subr.bf16.mxu0 %v6307_v16 }
 0x8ae   :  { %6006 = vmatprep.subr.bf16.mxu1 %v6308_v7 }
 0x8af   :  { %4629 = vmatmul.mubr.bf16.vlgmr.msra.gmra.mrb[60].mxu0 %v7681_v62  ;;  %v6315_v62 = vld [vmem:[%s7945_s5 + $0x750] sm:$0xff]  }
 0x8b0   :  { %4670 = vmatmul.mubr.bf16.vlgmr.msra.gmra.mrb[60].mxu1 %v7683_v59  ;;  %5985 = vmatpush3.bf16.msra.mxu0 %v6309_v61  ;;  %v6316_v59 = vld [vmem:[%s7945_s5 + $0x7d0] sm:$0xff]  }
 0x8b1   :  { %4710 = vmatprep.mubr.bf16.mxu0 %v3400_v50  ;;  %6007 = vmatpush3.bf16.msra.mxu1 %v6310_v17 }
 0x8b2   :  { %4751 = vmatprep.mubr.bf16.mxu1 %v3402_v51  ;;  %5986 = vmatprep.subr.bf16.mxu0 %v6311_v4 }
 0x8b3   :  { %6008 = vmatprep.subr.bf16.mxu1 %v6312_v22 }
 0x8b4   :  { %5987 = vmatpush3.bf16.msra.mxu0 %v6313_v19 }
 0x8b5   :  { %6009 = vmatpush3.bf16.msra.mxu1 %v6314_v26  ;;  %5988 = vmatprep.subr.bf16.mxu0 %v6315_v62 }
 0x8b6   :  { %6010 = vmatprep.subr.bf16.mxu1 %v6316_v59 }
 0x8b8   :  { %5989 = vmatpush3.bf16.msra.mxu0 %v6317_v28 }
 0x8b9   :  { %6011 = vmatpush3.bf16.msra.mxu1 %v6318_v29  ;;  %5990 = vmatprep.subr.bf16.mxu0 %v6319_v12 }
 0x8ba   :  { %6012 = vmatprep.subr.bf16.mxu1 %v6320_v54 }
 0x8bc   :  { %5991 = vmatpush3.bf16.msra.mxu0 %v6321_v31 }
 0x8bd   :  { %6013 = vmatpush3.bf16.msra.mxu1 %v6322_v25  ;;  %5992 = vmatprep.subr.bf16.mxu0 %v6323_v5 }
 0x8be   :  { %6014 = vmatprep.subr.bf16.mxu1 %v6324_v23 }
 0x8c0   :  { %5993 = vmatpush3.bf16.msra.mxu0 %v6325_v11 }
 0x8c1   :  { %6015 = vmatpush3.bf16.msra.mxu1 %v6326_v34  ;;  %5994 = vmatprep.subr.bf16.mxu0 %v6327_v10 }
 0x8c2   :  { %6016 = vmatprep.subr.bf16.mxu1 %v6328_v21 }
 0x8c4   :  { %5995 = vmatpush3.bf16.msra.mxu0 %v6329_v15 }
 0x8c5   :  { %6017 = vmatpush3.bf16.msra.mxu1 %v6330_v32  ;;  %5996 = vmatprep.subr.bf16.mxu0 %v6331_v27 }
 0x8c6   :  { %6018 = vmatprep.subr.bf16.mxu1 %v6332_v0 }
 0x8c8   :  { %5997 = vmatpush3.bf16.msra.mxu0 %v6333_v18 }
 0x8c9   :  { %6019 = vmatpush3.bf16.msra.mxu1 %v6334_v2  ;;  %5998 = vmatprep.subr.bf16.mxu0 %v6335_v35 }
 0x8ca   :  { %6020 = vmatprep.subr.bf16.mxu1 %v6336_v36 }
 0x8cc   :  { %5999 = vmatpush3.bf16.msra.mxu0 %v6337_v37 }
 0x8cd   :  { %6021 = vmatpush3.bf16.msra.mxu1 %v6338_v38  ;;  %6057 = vmatprep.subr.bf16.mxu0 %v6385_v1 }
 0x8cf   :  { %4711 = vmatmul.mubr.bf16.vlgmr.msra.gmra.mrb[64].mxu0 %v7743_v48 }
 0x8d0   :  { %4752 = vmatmul.mubr.bf16.vlgmr.msra.gmra.mrb[64].mxu1 %v7745_v49  ;;  %6065 = vmatprep.mubr.msk.bf16.mxu0 %vm6386_vm0, %v6385_v1 }
 0x942   :  { %v5868_v39 = vpop.f32.mrb[52].mxu0  ;;  %v5890_v40 = vpop.f32.mrb[52].mxu1 }
 0x943   :  { %v5869_v44 = vpop.f32.mrb[53].mxu0  ;;  %v5891_v45 = vpop.f32.mrb[53].mxu1 }
 0x944   :  { %v5870_v46 = vadd.f32 %v5869_v44, %v5868_v39  ;;  %v5892_v47 = vadd.f32 %v5891_v45, %v5890_v40  ;;  %v5871_v48 = vpop.f32.mrb[54].mxu0  ;;  %v5893_v50 = vpop.f32.mrb[54].mxu1 }
 0x945   :  { %v5872_v49 = vpop.f32.mrb[55].mxu0  ;;  %v5894_v51 = vpop.f32.mrb[55].mxu1 }
 0x946   :  { %v4467_v52 = vadd.f32 %v5870_v46, %v3663_v41  ;;  %v5873_v53 = vadd.f32 %v5872_v49, %v5871_v48  ;;  %v5895_v55 = vadd.f32 %v5894_v51, %v5893_v50 }
 0x948   :  { %v4508_v56 = vadd.f32 %v5892_v47, %v4467_v52  ;;  %v4470_v57 = vadd.f32 %v5873_v53, %v3663_v41 }
 0x94a   :  { %v4511_v58 = vadd.f32 %v5895_v55, %v4470_v57 }
 0x962   :  { %v5912_v63 = vpop.f32.mrb[56].mxu0  ;;  %v5934_v8 = vpop.f32.mrb[56].mxu1 }
 0x963   :  { %v5913_v3 = vpop.f32.mrb[57].mxu0  ;;  %v5935_v6 = vpop.f32.mrb[57].mxu1 }
 0x964   :  { %v5914_v60 = vadd.f32 %v5913_v3, %v5912_v63  ;;  %v5936_v42 = vadd.f32 %v5935_v6, %v5934_v8  ;;  %v5915_v33 = vpop.f32.mrb[58].mxu0  ;;  %v5937_v14 = vpop.f32.mrb[58].mxu1  ;;  %v6340_v6 = vld [vmem:[%s7946_s6 + $0x8] sm:$0xff]  }
 0x965   :  { %v5916_v9 = vpop.f32.mrb[59].mxu0  ;;  %v5938_v16 = vpop.f32.mrb[59].mxu1 }
 0x966   :  { %v4549_v7 = vadd.f32 %v5914_v60, %v4508_v56  ;;  %v5917_v61 = vadd.f32 %v5916_v9, %v5915_v33  ;;  %v5939_v17 = vadd.f32 %v5938_v16, %v5937_v14  ;;  %v6341_v60 = vld [vmem:[%s7946_s6 + $0x10] sm:$0xff]  }
 0x968   :  { %v4590_v4 = vadd.f32 %v5936_v42, %v4549_v7  ;;  %v4552_v22 = vadd.f32 %v5917_v61, %v4511_v58  ;;  %v6342_v42 = vld [vmem:[%s7946_s6 + $0x18] sm:$0xff]  }
 0x96a   :  { %v4593_v19 = vadd.f32 %v5939_v17, %v4552_v22  ;;  %v4791_v17 = vrot.slane %v7895_v43, %v6846_v20 }
 0x982   :  { %v5956_v26 = vpop.f32.mrb[60].mxu0 }
 0x983   :  { %v5978_v62 = vpop.f32.mrb[60].mxu1  ;;  %v5957_v59 = vpop.f32.mrb[61].mxu0 }
 0x984   :  { %v5958_v28 = vadd.f32 %v5957_v59, %v5956_v26  ;;  %v5979_v29 = vpop.f32.mrb[61].mxu1  ;;  %v5959_v12 = vpop.f32.mrb[62].mxu0 }
 0x985   :  { %v5980_v54 = vadd.f32 %v5979_v29, %v5978_v62  ;;  %v5981_v31 = vpop.f32.mrb[62].mxu1  ;;  %v5960_v25 = vpop.f32.mrb[63].mxu0 }
 0x986   :  { %v4631_v5 = vadd.f32 %v5958_v28, %v4590_v4  ;;  %v5961_v23 = vadd.f32 %v5960_v25, %v5959_v12  ;;  %v5982_v11 = vpop.f32.mrb[63].mxu1 }
 0x987   :  { %v5983_v34 = vadd.f32 %v5982_v11, %v5981_v31 }
 0x988   :  { %v4672_v10 = vadd.f32 %v5980_v54, %v4631_v5  ;;  %v4634_v21 = vadd.f32 %v5961_v23, %v4593_v19  ;;  %v5651_v54 = vld [vmem:[%s7947_s7] ss:$0 sm:$0xff] }
 0x98a   :  { %v4675_v15 = vadd.f32 %v5983_v34, %v4634_v21 }
 0x9a2   :  { %v6000_v32 = vpop.f32.mrb[64].mxu0 }
 0x9a3   :  { %v6022_v27 = vpop.f32.mrb[64].mxu1  ;;  %v6001_v0 = vpop.f32.mrb[65].mxu0 }
 0x9a4   :  { %v6002_v18 = vadd.f32 %v6001_v0, %v6000_v32  ;;  %v6023_v2 = vpop.f32.mrb[65].mxu1  ;;  %v6003_v35 = vpop.f32.mrb[66].mxu0 }
 0x9a5   :  { %v6024_v36 = vadd.f32 %v6023_v2, %v6022_v27  ;;  %v6025_v37 = vpop.f32.mrb[66].mxu1  ;;  %v6004_v38 = vpop.f32.mrb[67].mxu0 }
 0x9a6   :  { %v4713_v39 = vadd.f32 %v6002_v18, %v4672_v10  ;;  %v6005_v40 = vadd.f32 %v6004_v38, %v6003_v35  ;;  %v6026_v41 = vpop.f32.mrb[67].mxu1 }
 0x9a7   :  { %v6027_v44 = vadd.f32 %v6026_v41, %v6025_v37 }
 0x9a8   :  { %v4754_v45 = vadd.f32 %v6024_v36, %v4713_v39  ;;  %v4716_v46 = vadd.f32 %v6005_v40, %v4675_v15 }
 0x9aa   :  { %v4757_v47 = vadd.f32 %v6027_v44, %v4716_v46  ;;  %v4760_v48 = vadd.f32 %v4754_v45, %v7305_v30 }
 0x9ac   :  { %v4762_v50 = vsel %vm71_vm1, %v4760_v48, 0.0  ;;  %v4761_v49 = vadd.f32 %v4757_v47, %v7307_v13  ;;  %v6339_v13 = vld [vmem:[%s7946_s6] sm:$0xff]  }
 0x9ad   :  { %4763 = vadd.xlane.f32.xlu0 %v4762_v50  ;;  %6058 = vmatpush3.bf16.msra.mxu0 %v6339_v13 }
 0x9ae   :  { %v4765_v51 = vsel %vm71_vm1, %v4761_v49, 0.0  ;;  %6059 = vmatprep.subr.bf16.mxu0 %v6385_v1 }
 0x9af   :  { %4766 = vadd.xlane.f32.xlu1 %v4765_v51 }
 0x9b1   :  { %6060 = vmatpush3.bf16.msra.mxu0 %v6340_v6 }
 0x9b2   :  { %6061 = vmatprep.subr.bf16.mxu0 %v6385_v1 }
 0x9b5   :  { %6062 = vmatpush3.bf16.msra.mxu0 %v6341_v60 }
 0x9b6   :  { %6063 = vmatprep.subr.bf16.mxu0 %v6385_v1  ;;  %v4797_v1 = vrot.slane %v7895_v43, %v6852_v24 }
 0x9b9   :  { %6064 = vmatpush3.bf16.msra.mxu0 %v6342_v42 }
 0xa3a   :  { %v4764_v52 = vpop.xlane.xlu0 %4763 }
 0xa3b   :  { %v4768_v53 = vmul.f32 0.015625, %v4764_v52 }
 0xa3c   :  { %v4767_v55 = vpop.xlane.xlu1 %4766 }
 0xa3d   :  { %v4770_v56 = vsub.f32 %v4760_v48, %v4768_v53  ;;  %v4769_v57 = vmul.f32 0.015625, %v4767_v55 }
 0xa3f   :  { %v4771_v58 = vsub.f32 %v4761_v49, %v4769_v57  ;;  %v4772_v63 = vmul.f32 %v4770_v56, %v4770_v56 }
 0xa41   :  { %v4774_v8 = vsel %vm71_vm1, %v4772_v63, 0.0  ;;  %v4773_v3 = vmul.f32 %v4771_v58, %v4771_v58 }
 0xa42   :  { %4775 = vadd.xlane.f32.xlu0 %v4774_v8 }
 0xa43   :  { %v4777_v30 = vsel %vm71_vm1, %v4773_v3, 0.0 }
 0xa44   :  { %4778 = vadd.xlane.f32.xlu1 %v4777_v30 }
 0xacf   :  { %v4776_v33 = vpop.xlane.xlu0 %4775 }
 0xad0   :  { %v4780_v14 = vmul.f32 0.015625, %v4776_v33 }
 0xad1   :  { %v4779_v9 = vpop.xlane.xlu1 %4778 }
 0xad2   :  { %v4782_v16 = vadd.f32 1e-05, %v4780_v14  ;;  %v4781_v7 = vmul.f32 0.015625, %v4779_v9 }
 0xad4   :  { %6355 = vrsqrt.f32 %v4782_v16  ;;  %v4783_v61 = vadd.f32 1e-05, %v4781_v7 }
 0xad6   :  { %6357 = vrsqrt.f32 %v4783_v61 }
 0xade   :  { %v6356_v4 = vpop.eup %6355 }
 0xadf   :  { %v4786_v22 = vmul.f32 %v6356_v4, %v4770_v56 }
 0xae0   :  { %v6358_v19 = vpop.eup %6357 }
 0xae1   :  { %v4792_v26 = vmul.f32 %v4791_v17, %v4786_v22  ;;  %v4787_v62 = vmul.f32 %v6358_v19, %v4771_v58 }
 0xae3   :  { %v4793_v59 = vmul.f32 %v4791_v17, %v4787_v62  ;;  %v4798_v28 = vadd.f32 %v4797_v1, %v4792_v26 }
 0xae5   :  { %v4799_v29 = vadd.f32 %v4797_v1, %v4793_v59 }
 0xae7   :  { %v4800_v12 = vpack.c.bf16 %v4799_v29, %v4798_v28 }
 0xae9   :  { %6066 = vmatmul.mubr.msk.bf16.vlgmr.msra.gmra.mrb[68].mxu0 %vm71_vm1, %v4800_v12 }
 0xbbc   :  { %v4877_v31 = vpop.f32.mrb[68].mxu0 }
 0xbbd   :  { %v6067_v20 = vpop.f32.mrb[69].mxu0  ;;  %v4878_v5 = vadd.f32 %v5651_v54, %v4877_v31 }
 0xbbe   :  { %v4880_v25 = vpop.f32.mrb[70].mxu0 }
 0xbbf   :  { %v4881_v23 = vadd.f32 %v5651_v54, %v4880_v25  ;;  %v6068_v11 = vpop.f32.mrb[71].mxu0 }
 0xbc1   :  { %v5664_v34 = vpack.c.bf16 %v4881_v23, %v4878_v5 }
 0xbc3   :  { %5665 = vst [vmem:[#allocation2] sm:$0xff] %v5664_v34  }
 0xbc4   :  { %6372 = shalt.err (!%p6369_p4)
}
 0xbc5   :  { %s6373_s25 = scalar_lea.hbm %s7948_s8, 128 }
 0xbc6   :  { %p6374_p5 = scmp.ne.s32.totalorder %s7948_s8, %s6373_s25  ;;  %p6377_p6 = scmp.lt.u32.totalorder %s6373_s25, %s7948_s8 }
 0xbc8   :  { %p6379_p7 = pnand %p6377_p6, %p6374_p5 }
 0xbca   :  { %6382 = shalt.err (!%p6379_p7)
}
 0xbcb   :  { %s6389_s30 = smov 64   ;;  %s6390_s9 = smov 4  }
 0xbcc   :  { %4905 = dma.vmem_to_hbm [thread:$0]  %s4900_s24, 128, %s7948_s8, [#allocation3], %s6389_s30, %s6389_s30, %s6390_s9  }
 0xbcd   :  { %6383 = dma.done.wait [#allocation3], 128  }
 0xbce   :  { %6384 = vsyncadd [#allocation3], 4294967168 }
 0xbcf   :  { %4909 = vsyncpa [#allocation3], 1 }

// kernel: tpu_custom_call.1
= control target key start
LH: loop header
LB: loop body
LE: loop exit
PB: predicated region body
PF: predicated region fallthrough
CT: control target
= control target key end

     0   :  { %v6385_v1 = vmov 0.0   ;;  %vm6386_vm0 = vmmov 0   ;;  %vm71_vm1 = vcmask 523264   ;;  %s7940_s0 = inlined_call_operand.vmem [shape: f32[16,64], index: 0, kind: input, shape index: {}]   ;;  %s7941_s1 = inlined_call_operand.vmem [shape: bf16[2,64,64], index: 1, kind: input, shape index: {}]   ;;  %s7942_s2 = inlined_call_operand.vmem [shape: f32[2,8,64], index: 2, kind: input, shape index: {}]   ;;  %s7943_s3 = inlined_call_operand.vmem [shape: bf16[2,64,2048], index: 3, kind: input, shape index: {}]   ;;  %s7944_s4 = inlined_call_operand.vmem [shape: f32[2,1,2048], index: 4, kind: input, shape index: {}]   ;;  %s7945_s5 = inlined_call_operand.vmem [shape: bf16[2,2048,64], index: 5, kind: input, shape index: {}]   ;;  %s7946_s6 = inlined_call_operand.vmem [shape: bf16[64,128], index: 6, kind: input, shape index: {}]   ;;  %s7947_s7 = inlined_call_operand.vmem [shape: f32[1,128], index: 7, kind: input, shape index: {}]   ;;  %s7948_s8 = inlined_call_operand.hbm [shape: bf16[16,128], index: 8, kind: output, shape index: {}]  }
   0x1   :  { %v6075_v0 = vld [vmem:[%s7941_s1] sm:$0xff]   ;;  %6033 = vmatprep.subr.bf16.mxu0 %v6385_v1  ;;  %v6076_v2 = vld [vmem:[%s7941_s1 + $0x8] sm:$0xff]   ;;  %6041 = vmatprep.mubr.msk.bf16.mxu0 %vm6386_vm0, %v6385_v1  ;;  %v6077_v3 = vld [vmem:[%s7941_s1 + $0x10] sm:$0xff]  }
   0x2   :  { %6034 = vmatpush3.bf16.msra.mxu0 %v6075_v0  ;;  %v6078_v4 = vld [vmem:[%s7941_s1 + $0x18] sm:$0xff]   ;;  %v31_v5 = vld [vmem:[%s7940_s0] sm:$0xff]  ;;  %v32_v6 = vld [vmem:[%s7940_s0 + $0x8] sm:$0xff] }
   0x3   :  { %6035 = vmatprep.subr.bf16.mxu0 %v6385_v1  ;;  %v34_v7 = vpack.c.bf16 %v32_v6, %v31_v5 }
   0x6   :  { %6036 = vmatpush3.bf16.msra.mxu0 %v6076_v2 }
   0x7   :  { %6037 = vmatprep.subr.bf16.mxu0 %v6385_v1 }
   0xa   :  { %6038 = vmatpush3.bf16.msra.mxu0 %v6077_v3 }
   0xb   :  { %6039 = vmatprep.subr.bf16.mxu0 %v6385_v1 }
   0xe   :  { %6040 = vmatpush3.bf16.msra.mxu0 %v6078_v4 }
  0x11   :  { %6042 = vmatmul.mubr.msk.bf16.vlgmr.msra.gmra.mrb[0].mxu0 %vm71_vm1, %v34_v7 }
  0x12   :  { %13 = vsyncpa [#allocation3], 0  ;;  %v43_v8 = vlaneseq  ;;  %v6469_v11 = vld [vmem:[%s7942_s2] sm:$0xff]  ;;  %v157_v33 = vld [vmem:[%s7943_s3 + $0x8] sm:$0xff]  ;;  %s6388_s23 = smov [#allocation2]  }
  0x13   :  { %v156_v31 = vld [vmem:[%s7943_s3] sm:$0xff]  ;;  %v165_v35 = vld [vmem:[%s7943_s3 + $0x48] sm:$0xff]  ;;  %v158_v63 = vld [vmem:[%s7943_s3 + $0x10] sm:$0xff]  ;;  %s4899_s24 = sshll.u32 %s6388_s23, 4  ;;  %s4900_s24 = int_to_ptr.vmem [resolvable:$true] %s4899_s24 }
  0x14   :  { %v6461_v9 = vshrl.u32 %v43_v8, 7  ;;  %v164_v32 = vld [vmem:[%s7943_s3 + $0x40] sm:$0xff]  ;;  %v4917_v36 = vcombine.low %v157_v33, %v165_v35  ;;  %v4918_v37 = vcombine.high %v157_v33, %v165_v35  ;;  %v173_v41 = vld [vmem:[%s7943_s3 + $0x88] sm:$0xff]  ;;  %v166_v0 = vld [vmem:[%s7943_s3 + $0x50] sm:$0xff]  ;;  %v6387_v8 = vmov 0   ;;  %p6366_p1 = scmp.lt.s32.totalorder %s4900_s24, %s4900_s24 }
  0x15   :  { %v4916_v34 = vcombine.high %v156_v31, %v164_v32  ;;  %v4915_v38 = vcombine.low %v156_v31, %v164_v32  ;;  %v172_v39 = vld [vmem:[%s7943_s3 + $0x80] sm:$0xff]  ;;  %v181_v43 = vld [vmem:[%s7943_s3 + $0xc8] sm:$0xff]  ;;  %v159_v2 = vld [vmem:[%s7943_s3 + $0x18] sm:$0xff]  ;;  %v4920_v3 = vcombine.high %v158_v63, %v166_v0  ;;  %v4919_v5 = vcombine.low %v158_v63, %v166_v0  ;;  %659 = vmatprep.mubr.bf16.mxu1 %v6387_v8 }
  0x16   :  { %v6464_v10 = vsub.s32 0, %v6461_v9  ;;  %670 = vmatprep.subr.bf16.mxu0 %v4918_v37  ;;  %v180_v40 = vld [vmem:[%s7943_s3 + $0xc0] sm:$0xff]  ;;  %v4933_v44 = vcombine.low %v173_v41, %v181_v43  ;;  %v4934_v45 = vcombine.high %v173_v41, %v181_v43  ;;  %v189_v49 = vld [vmem:[%s7943_s3 + $0x108] sm:$0xff]  ;;  %v167_v4 = vld [vmem:[%s7943_s3 + $0x58] sm:$0xff]  ;;  %702 = vmatprep.mubr.bf16.mxu0 %v6387_v8 }
  0x17   :  { %627 = vmatprep.subr.bf16.mxu1 %v4916_v34  ;;  %671 = vmatpush1.bf16.msra.mxu0 %v4917_v36  ;;  %v4932_v42 = vcombine.high %v172_v39, %v180_v40  ;;  %v4931_v46 = vcombine.low %v172_v39, %v180_v40  ;;  %v188_v47 = vld [vmem:[%s7943_s3 + $0x100] sm:$0xff]  ;;  %v197_v51 = vld [vmem:[%s7943_s3 + $0x148] sm:$0xff]  ;;  %v4921_v6 = vcombine.low %v159_v2, %v167_v4  ;;  %v182_v31 = vld [vmem:[%s7943_s3 + $0xd0] sm:$0xff] }
  0x18   :  { %v46_v12 = vrot.slane %v6469_v11, %v6464_v10  ;;  %628 = vmatpush1.bf16.msra.mxu1 %v4915_v38  ;;  %672 = vmatprep.subr.bf16.mxu0 %v4934_v45  ;;  %v196_v48 = vld [vmem:[%s7943_s3 + $0x140] sm:$0xff]  ;;  %v4949_v52 = vcombine.low %v189_v49, %v197_v51  ;;  %v4950_v53 = vcombine.high %v189_v49, %v197_v51  ;;  %v205_v57 = vld [vmem:[%s7943_s3 + $0x188] sm:$0xff]  ;;  %v190_v36 = vld [vmem:[%s7943_s3 + $0x110] sm:$0xff] }
  0x19   :  { %629 = vmatprep.subr.bf16.mxu1 %v4932_v42  ;;  %v4948_v50 = vcombine.high %v188_v47, %v196_v48  ;;  %v4947_v54 = vcombine.low %v188_v47, %v196_v48  ;;  %v204_v55 = vld [vmem:[%s7943_s3 + $0x180] sm:$0xff]  ;;  %v213_v59 = vld [vmem:[%s7943_s3 + $0x1c8] sm:$0xff]  ;;  %v4922_v7 = vcombine.high %v159_v2, %v167_v4  ;;  %v198_v37 = vld [vmem:[%s7943_s3 + $0x150] sm:$0xff] }
  0x1a   :  { %v212_v56 = vld [vmem:[%s7943_s3 + $0x1c0] sm:$0xff]  ;;  %v4965_v60 = vcombine.low %v205_v57, %v213_v59  ;;  %v4966_v61 = vcombine.high %v205_v57, %v213_v59  ;;  %v191_v38 = vld [vmem:[%s7943_s3 + $0x118] sm:$0xff]  ;;  %v4952_v42 = vcombine.high %v190_v36, %v198_v37  ;;  %v214_v45 = vld [vmem:[%s7943_s3 + $0x1d0] sm:$0xff]  ;;  %v4951_v48 = vcombine.low %v190_v36, %v198_v37 }
  0x1b   :  { %673 = vmatpush1.bf16.msra.mxu0 %v4933_v44  ;;  %v4964_v58 = vcombine.high %v204_v55, %v212_v56  ;;  %v4963_v62 = vcombine.low %v204_v55, %v212_v56  ;;  %v199_v39 = vld [vmem:[%s7943_s3 + $0x158] sm:$0xff]  ;;  %v206_v44 = vld [vmem:[%s7943_s3 + $0x190] sm:$0xff]  ;;  %v169_v55 = vld [vmem:[%s7943_s3 + $0x68] sm:$0xff] }
  0x1c   :  { %630 = vmatpush1.bf16.msra.mxu1 %v4931_v46  ;;  %674 = vmatprep.subr.bf16.mxu0 %v4950_v53  ;;  %v4954_v43 = vcombine.high %v191_v38, %v199_v39  ;;  %v207_v46 = vld [vmem:[%s7943_s3 + $0x198] sm:$0xff]  ;;  %v4953_v49 = vcombine.low %v191_v38, %v199_v39  ;;  %v168_v53 = vld [vmem:[%s7943_s3 + $0x60] sm:$0xff]  ;;  %v4967_v56 = vcombine.low %v206_v44, %v214_v45  ;;  %v185_v63 = vld [vmem:[%s7943_s3 + $0xe8] sm:$0xff] }
  0x1d   :  { %631 = vmatprep.subr.bf16.mxu1 %v4948_v50  ;;  %v215_v47 = vld [vmem:[%s7943_s3 + $0x1d8] sm:$0xff]  ;;  %v4968_v50 = vcombine.high %v206_v44, %v214_v45  ;;  %v178_v37 = vld [vmem:[%s7943_s3 + $0xb0] sm:$0xff] }
  0x1e   :  { %v4970_v51 = vcombine.high %v207_v46, %v215_v47  ;;  %v4969_v57 = vcombine.low %v207_v46, %v215_v47  ;;  %v186_v38 = vld [vmem:[%s7943_s3 + $0xf0] sm:$0xff]  ;;  %v179_v39 = vld [vmem:[%s7943_s3 + $0xb8] sm:$0xff] }
  0x1f   :  { %675 = vmatpush1.bf16.msra.mxu0 %v4949_v52  ;;  %v160_v52 = vld [vmem:[%s7943_s3 + $0x20] sm:$0xff]  ;;  %v194_v45 = vld [vmem:[%s7943_s3 + $0x130] sm:$0xff]  ;;  %v195_v47 = vld [vmem:[%s7943_s3 + $0x138] sm:$0xff] }
  0x20   :  { %632 = vmatpush1.bf16.msra.mxu1 %v4947_v54  ;;  %676 = vmatprep.subr.bf16.mxu0 %v4966_v61  ;;  %v161_v54 = vld [vmem:[%s7943_s3 + $0x28] sm:$0xff]  ;;  %v184_v61 = vld [vmem:[%s7943_s3 + $0xe0] sm:$0xff]  ;;  %v4923_v0 = vcombine.low %v160_v52, %v168_v53  ;;  %v202_v46 = vld [vmem:[%s7943_s3 + $0x170] sm:$0xff] }
  0x21   :  { %633 = vmatprep.subr.bf16.mxu1 %v4964_v58  ;;  %v4924_v58 = vcombine.high %v160_v52, %v168_v53  ;;  %v4926_v59 = vcombine.high %v161_v54, %v169_v55  ;;  %v4925_v2 = vcombine.low %v161_v54, %v169_v55  ;;  %v210_v53 = vld [vmem:[%s7943_s3 + $0x1b0] sm:$0xff]  ;;  %v211_v55 = vld [vmem:[%s7943_s3 + $0x1b8] sm:$0xff] }
  0x22   :  { %v218_v54 = vld [vmem:[%s7943_s3 + $0x1f0] sm:$0xff] }
  0x23   :  { %677 = vmatpush1.bf16.msra.mxu0 %v4965_v60  ;;  %v176_v60 = vld [vmem:[%s7943_s3 + $0xa0] sm:$0xff] }
  0x24   :  { %634 = vmatpush1.bf16.msra.mxu1 %v4963_v62  ;;  %756 = vmatprep.subr.bf16.mxu0 %v4922_v7  ;;  %v177_v62 = vld [vmem:[%s7943_s3 + $0xa8] sm:$0xff] }
  0x25   :  { %713 = vmatprep.subr.bf16.mxu1 %v4920_v3  ;;  %v4940_v3 = vcombine.high %v176_v60, %v184_v61  ;;  %v4942_v4 = vcombine.high %v177_v62, %v185_v63  ;;  %v193_v7 = vld [vmem:[%s7943_s3 + $0x128] sm:$0xff] }
  0xe4   :  { %v109_v13 = vpop.f32.mrb[0].mxu0 }
  0xe5   :  { %v110_v14 = vadd.f32 %v109_v13, %v46_v12  ;;  %v6043_v15 = vpop.f32.mrb[1].mxu0 }
  0xe6   :  { %v112_v16 = vpop.f32.mrb[2].mxu0 }
  0xe7   :  { %v113_v17 = vadd.f32 %v112_v16, %v46_v12  ;;  %v6044_v18 = vpop.f32.mrb[3].mxu0  ;;  %v116_v19 = vsel %vm71_vm1, %v110_v14, 0.0 }
  0xe8   :  { %117 = vadd.xlane.f32.xlu0 %v116_v19  ;;  %v6548_v18 = vsub.s32 1, %v6461_v9 }
  0xe9   :  { %v119_v20 = vsel %vm71_vm1, %v113_v17, 0.0 }
  0xec   :  { %120 = vadd.xlane.f32.xlu0 %v119_v20  ;;  %v146_v20 = vrot.slane %v6469_v11, %v6548_v18 }
 0x175   :  { %v118_v21 = vpop.xlane.xlu0 %117 }
 0x176   :  { %v123_v22 = vmul.f32 0.015625, %v118_v21  ;;  %v6553_v21 = vsub.s32 2, %v6461_v9 }
 0x178   :  { %v6475_v23 = vsub.f32 %v110_v14, %v123_v22 }
 0x179   :  { %v121_v24 = vpop.xlane.xlu0 %120 }
 0x17a   :  { %v124_v25 = vmul.f32 0.015625, %v121_v24  ;;  %v127_v26 = vmul.f32 %v6475_v23, %v6475_v23 }
 0x17c   :  { %v6479_v27 = vsub.f32 %v113_v17, %v124_v25  ;;  %v129_v28 = vsel %vm71_vm1, %v127_v26, 0.0  ;;  %v152_v25 = vrot.slane %v6469_v11, %v6553_v21  ;;  %v183_v11 = vld [vmem:[%s7943_s3 + $0xd8] sm:$0xff] }
 0x17d   :  { %130 = vadd.xlane.f32.xlu1 %v129_v28 }
 0x17e   :  { %v128_v29 = vmul.f32 %v6479_v27, %v6479_v27 }
 0x180   :  { %v132_v30 = vsel %vm71_vm1, %v128_v29, 0.0 }
 0x181   :  { %133 = vadd.xlane.f32.xlu1 %v132_v30  ;;  %v174_v30 = vld [vmem:[%s7943_s3 + $0x90] sm:$0xff] }
 0x182   :  { %v4936_v34 = vcombine.high %v174_v30, %v182_v31  ;;  %v4935_v40 = vcombine.low %v174_v30, %v182_v31  ;;  %v170_v30 = vld [vmem:[%s7943_s3 + $0x70] sm:$0xff]  ;;  %v163_v31 = vld [vmem:[%s7943_s3 + $0x38] sm:$0xff] }
 0x20a   :  { %v131_v12 = vpop.xlane.xlu1 %130 }
 0x20b   :  { %v135_v13 = vmul.f32 0.015625, %v131_v12  ;;  %v201_v12 = vld [vmem:[%s7943_s3 + $0x168] sm:$0xff] }
 0x20d   :  { %v137_v14 = vadd.f32 1e-05, %v135_v13  ;;  %v4939_v13 = vcombine.low %v176_v60, %v184_v61  ;;  %v4975_v61 = vcombine.low %v210_v53, %v218_v54 }
 0x20e   :  { %v134_v15 = vpop.xlane.xlu1 %133 }
 0x20f   :  { %6343 = vrsqrt.f32 %v137_v14  ;;  %v136_v16 = vmul.f32 0.015625, %v134_v15  ;;  %v4941_v14 = vcombine.low %v177_v62, %v185_v63  ;;  %v6079_v63 = vld [vmem:[%s7945_s5 + $0x40] sm:$0xff]  }
 0x211   :  { %v138_v17 = vadd.f32 1e-05, %v136_v16  ;;  %v4958_v16 = vcombine.high %v193_v7, %v201_v12 }
 0x213   :  { %6345 = vrsqrt.f32 %v138_v17  ;;  %v208_v17 = vld [vmem:[%s7943_s3 + $0x1a0] sm:$0xff] }
 0x219   :  { %v6344_v19 = vpop.eup %6343 }
 0x21a   :  { %v141_v22 = vmul.f32 %v6344_v19, %v6475_v23  ;;  %v175_v23 = vld [vmem:[%s7943_s3 + $0x98] sm:$0xff]  ;;  %v216_v19 = vld [vmem:[%s7943_s3 + $0x1e0] sm:$0xff] }
 0x21b   :  { %v4938_v35 = vcombine.high %v175_v23, %v183_v11  ;;  %v4937_v41 = vcombine.low %v175_v23, %v183_v11  ;;  %v171_v23 = vld [vmem:[%s7943_s3 + $0x78] sm:$0xff]  ;;  %v4971_v11 = vcombine.low %v208_v17, %v216_v19 }
 0x21c   :  { %v147_v26 = vmul.f32 %v146_v20, %v141_v22  ;;  %v217_v22 = vld [vmem:[%s7943_s3 + $0x1e8] sm:$0xff]  ;;  %v4930_v36 = vcombine.high %v163_v31, %v171_v23 }
 0x21d   :  { %v6346_v24 = vpop.eup %6345 }
 0x21e   :  { %v142_v28 = vmul.f32 %v6346_v24, %v6479_v27  ;;  %v6571_v32 = vadd.f32 %v152_v25, %v147_v26  ;;  %v4972_v26 = vcombine.high %v208_v17, %v216_v19  ;;  %v6093_v17 = vld [vmem:[%s7945_s5 + $0x18] sm:$0xff]  }
 0x21f   :  { %v6094_v19 = vld [vmem:[%s7945_s5 + $0x98] sm:$0xff]  }
 0x220   :  { %v148_v29 = vmul.f32 %v146_v20, %v142_v28  ;;  %v209_v20 = vld [vmem:[%s7943_s3 + $0x1a8] sm:$0xff] }
 0x221   :  { %v4974_v28 = vcombine.high %v209_v20, %v217_v22 }
 0x222   :  { %v6573_v27 = vadd.f32 %v152_v25, %v148_v29  ;;  %v4957_v25 = vcombine.low %v193_v7, %v201_v12  ;;  %v162_v29 = vld [vmem:[%s7943_s3 + $0x30] sm:$0xff]  ;;  %v6086_v7 = vld [vmem:[%s7945_s5 + $0x88] sm:$0xff]  }
 0x223   :  { %v6087_v12 = vld [vmem:[%s7945_s5 + $0x50] sm:$0xff]  }
 0x224   :  { %v6577_v33 = vpack.c.bf16 %v6573_v27, %v6571_v32 }
 0x226   :  { %4979 = vmatmul.mubr.msk.bf16.vlgmr.msra.gmra.mrb[0].mxu1 %vm71_vm1, %v6577_v33  ;;  %4980 = vmatmul.mubr.msk.bf16.vlgmr.msra.gmra.mrb[4].mxu0 %vm71_vm1, %v6577_v33 }
 0x227   :  { %714 = vmatpush1.bf16.msra.mxu1 %v4919_v5  ;;  %757 = vmatpush1.bf16.msra.mxu0 %v4921_v6  ;;  %v192_v5 = vld [vmem:[%s7943_s3 + $0x120] sm:$0xff] }
 0x228   :  { %715 = vmatprep.subr.bf16.mxu1 %v4936_v34  ;;  %758 = vmatprep.subr.bf16.mxu0 %v4938_v35  ;;  %v200_v6 = vld [vmem:[%s7943_s3 + $0x160] sm:$0xff]  ;;  %v4973_v34 = vcombine.low %v209_v20, %v217_v22  ;;  %v4928_v35 = vcombine.high %v162_v29, %v170_v30 }
 0x229   :  { %745 = vmatprep.mubr.bf16.mxu1 %v6387_v8  ;;  %788 = vmatprep.mubr.bf16.mxu0 %v6387_v8  ;;  %v4956_v15 = vcombine.high %v192_v5, %v200_v6  ;;  %v4955_v24 = vcombine.low %v192_v5, %v200_v6  ;;  %v6084_v5 = vld [vmem:[%s7945_s5 + $0xc8] sm:$0xff]   ;;  %v6095_v20 = vld [vmem:[%s7945_s5 + $0x60] sm:$0xff]  }
 0x22a   :  { %v6085_v6 = vld [vmem:[%s7945_s5 + $0x8] sm:$0xff]   ;;  %v6096_v22 = vld [vmem:[%s7945_s5 + $0xe0] sm:$0xff]  }
 0x22b   :  { %716 = vmatpush1.bf16.msra.mxu1 %v4935_v40  ;;  %759 = vmatpush1.bf16.msra.mxu0 %v4937_v41  ;;  %v187_v40 = vld [vmem:[%s7943_s3 + $0xf8] sm:$0xff]  ;;  %v4927_v41 = vcombine.low %v162_v29, %v170_v30  ;;  %v6101_v29 = vld [vmem:[%s7945_s5 + $0x28] sm:$0xff]  }
 0x22c   :  { %717 = vmatprep.subr.bf16.mxu1 %v4952_v42  ;;  %760 = vmatprep.subr.bf16.mxu0 %v4954_v43  ;;  %v4929_v42 = vcombine.low %v163_v31, %v171_v23  ;;  %v4944_v43 = vcombine.high %v178_v37, %v186_v38  ;;  %v4946_v44 = vcombine.high %v179_v39, %v187_v40  ;;  %v6102_v30 = vld [vmem:[%s7945_s5 + $0xa8] sm:$0xff]   ;;  %v6103_v31 = vld [vmem:[%s7945_s5 + $0x70] sm:$0xff]  }
 0x22d   :  { %v6104_v23 = vld [vmem:[%s7945_s5 + $0xf0] sm:$0xff]  }
 0x22f   :  { %718 = vmatpush1.bf16.msra.mxu1 %v4951_v48  ;;  %761 = vmatpush1.bf16.msra.mxu0 %v4953_v49  ;;  %v203_v48 = vld [vmem:[%s7943_s3 + $0x178] sm:$0xff]  ;;  %v4943_v49 = vcombine.low %v178_v37, %v186_v38 }
 0x230   :  { %719 = vmatprep.subr.bf16.mxu1 %v4968_v50  ;;  %762 = vmatprep.subr.bf16.mxu0 %v4970_v51  ;;  %v4945_v50 = vcombine.low %v179_v39, %v187_v40  ;;  %v4960_v51 = vcombine.high %v194_v45, %v202_v46  ;;  %v4962_v52 = vcombine.high %v195_v47, %v203_v48  ;;  %v6109_v37 = vld [vmem:[%s7945_s5 + $0x38] sm:$0xff]   ;;  %v6111_v39 = vld [vmem:[%s7945_s5 + $0x140] sm:$0xff]  }
 0x231   :  { %v6110_v38 = vld [vmem:[%s7945_s5 + $0xb8] sm:$0xff]   ;;  %v6112_v40 = vld [vmem:[%s7945_s5 + $0x1c0] sm:$0xff]  }
 0x233   :  { %720 = vmatpush1.bf16.msra.mxu1 %v4967_v56  ;;  %763 = vmatpush1.bf16.msra.mxu0 %v4969_v57  ;;  %v219_v56 = vld [vmem:[%s7943_s3 + $0x1f8] sm:$0xff]  ;;  %v4959_v57 = vcombine.low %v194_v45, %v202_v46 }
 0x234   :  { %799 = vmatprep.subr.bf16.mxu1 %v4924_v58  ;;  %842 = vmatprep.subr.bf16.mxu0 %v4926_v59  ;;  %v4961_v58 = vcombine.low %v195_v47, %v203_v48  ;;  %v4976_v59 = vcombine.high %v210_v53, %v218_v54  ;;  %v4978_v60 = vcombine.high %v211_v55, %v219_v56 }
 0x235   :  { %v4977_v62 = vcombine.low %v211_v55, %v219_v56 }
 0x236   :  { %4981 = vmatmul.mubr.msk.bf16.vlgmr.msra.gmra.mrb[4].mxu1 %vm71_vm1, %v6577_v33  ;;  %4982 = vmatmul.mubr.msk.bf16.vlgmr.msra.gmra.mrb[8].mxu0 %vm71_vm1, %v6577_v33 }
 0x237   :  { %800 = vmatpush1.bf16.msra.mxu1 %v4923_v0  ;;  %843 = vmatpush1.bf16.msra.mxu0 %v4925_v2  ;;  %v6080_v0 = vld [vmem:[%s7945_s5 + $0xc0] sm:$0xff]  }
 0x238   :  { %801 = vmatprep.subr.bf16.mxu1 %v4940_v3  ;;  %844 = vmatprep.subr.bf16.mxu0 %v4942_v4  ;;  %v6081_v2 = vld [vmem:[%s7945_s5] sm:$0xff]   ;;  %v6083_v4 = vld [vmem:[%s7945_s5 + $0x48] sm:$0xff]  }
 0x239   :  { %831 = vmatprep.mubr.bf16.mxu1 %v6387_v8  ;;  %874 = vmatprep.mubr.bf16.mxu0 %v6387_v8  ;;  %v6082_v3 = vld [vmem:[%s7945_s5 + $0x80] sm:$0xff]  }
 0x23b   :  { %802 = vmatpush1.bf16.msra.mxu1 %v4939_v13  ;;  %845 = vmatpush1.bf16.msra.mxu0 %v4941_v14  ;;  %v6089_v13 = vld [vmem:[%s7945_s5 + $0x10] sm:$0xff]  }
 0x23c   :  { %803 = vmatprep.subr.bf16.mxu1 %v4956_v15  ;;  %846 = vmatprep.subr.bf16.mxu0 %v4958_v16  ;;  %v6090_v14 = vld [vmem:[%s7945_s5 + $0x90] sm:$0xff]   ;;  %v6091_v15 = vld [vmem:[%s7945_s5 + $0x58] sm:$0xff]  }
 0x23d   :  { %v6092_v16 = vld [vmem:[%s7945_s5 + $0xd8] sm:$0xff]  }
 0x23f   :  { %804 = vmatpush1.bf16.msra.mxu1 %v4955_v24  ;;  %847 = vmatpush1.bf16.msra.mxu0 %v4957_v25  ;;  %v6097_v24 = vld [vmem:[%s7945_s5 + $0x20] sm:$0xff]  }
 0x240   :  { %805 = vmatprep.subr.bf16.mxu1 %v4972_v26  ;;  %848 = vmatprep.subr.bf16.mxu0 %v4974_v28  ;;  %v6098_v25 = vld [vmem:[%s7945_s5 + $0xa0] sm:$0xff]   ;;  %v6099_v26 = vld [vmem:[%s7945_s5 + $0x68] sm:$0xff]  }
 0x241   :  { %v6100_v28 = vld [vmem:[%s7945_s5 + $0xe8] sm:$0xff]  }
 0x243   :  { %806 = vmatpush1.bf16.msra.mxu1 %v4971_v11  ;;  %849 = vmatpush1.bf16.msra.mxu0 %v4973_v34  ;;  %v6105_v11 = vld [vmem:[%s7945_s5 + $0x30] sm:$0xff]  }
 0x244   :  { %885 = vmatprep.subr.bf16.mxu1 %v4928_v35  ;;  %928 = vmatprep.subr.bf16.mxu0 %v4930_v36  ;;  %v6106_v34 = vld [vmem:[%s7945_s5 + $0xb0] sm:$0xff]   ;;  %v6107_v35 = vld [vmem:[%s7945_s5 + $0x78] sm:$0xff]  }
 0x245   :  { %v6108_v36 = vld [vmem:[%s7945_s5 + $0xf8] sm:$0xff]  }
 0x246   :  { %4983 = vmatmul.mubr.msk.bf16.vlgmr.msra.gmra.mrb[8].mxu1 %vm71_vm1, %v6577_v33  ;;  %4984 = vmatmul.mubr.msk.bf16.vlgmr.msra.gmra.mrb[12].mxu0 %vm71_vm1, %v6577_v33 }
 0x247   :  { %886 = vmatpush1.bf16.msra.mxu1 %v4927_v41  ;;  %929 = vmatpush1.bf16.msra.mxu0 %v4929_v42  ;;  %v220_v41 = vld [vmem:[%s7944_s4] sm:$0xff]  ;;  %v6827_v42 = vsub.s32 3, %v6461_v9 }
 0x248   :  { %887 = vmatprep.subr.bf16.mxu1 %v4944_v43  ;;  %930 = vmatprep.subr.bf16.mxu0 %v4946_v44  ;;  %v227_v43 = vrot.slane %v220_v41, %v6464_v10  ;;  %v235_v44 = vrot.slane %v220_v41, %v6553_v21  ;;  %v231_v45 = vrot.slane %v220_v41, %v6548_v18 }
 0x249   :  { %917 = vmatprep.mubr.bf16.mxu1 %v6387_v8  ;;  %960 = vmatprep.mubr.bf16.mxu0 %v6387_v8  ;;  %v239_v46 = vrot.slane %v220_v41, %v6827_v42 }
 0x24b   :  { %888 = vmatpush1.bf16.msra.mxu1 %v4943_v49  ;;  %931 = vmatpush1.bf16.msra.mxu0 %v4945_v50 }
 0x24c   :  { %889 = vmatprep.subr.bf16.mxu1 %v4960_v51  ;;  %932 = vmatprep.subr.bf16.mxu0 %v4962_v52 }
 0x24f   :  { %890 = vmatpush1.bf16.msra.mxu1 %v4959_v57  ;;  %933 = vmatpush1.bf16.msra.mxu0 %v4961_v58 }
 0x250   :  { %891 = vmatprep.subr.bf16.mxu1 %v4976_v59  ;;  %934 = vmatprep.subr.bf16.mxu0 %v4978_v60 }
 0x253   :  { %892 = vmatpush1.bf16.msra.mxu1 %v4975_v61  ;;  %935 = vmatpush1.bf16.msra.mxu0 %v4977_v62 }
 0x254   :  { %5671 = vmatprep.subr.bf16.mxu1 %v6079_v63  ;;  %5693 = vmatprep.subr.bf16.mxu0 %v6080_v0 }
 0x256   :  { %4985 = vmatmul.mubr.msk.bf16.vlgmr.msra.gmra.mrb[12].mxu1 %vm71_vm1, %v6577_v33  ;;  %4986 = vmatmul.mubr.msk.bf16.vlgmr.msra.gmra.mrb[16].mxu0 %vm71_vm1, %v6577_v33  ;;  %v6088_v33 = vld [vmem:[%s7945_s5 + $0xd0] sm:$0xff]  }
 0x257   :  { %5672 = vmatpush3.bf16.msra.mxu1 %v6081_v2  ;;  %5694 = vmatpush3.bf16.msra.mxu0 %v6082_v3 }
 0x258   :  { %5673 = vmatprep.subr.bf16.mxu1 %v6083_v4  ;;  %5695 = vmatprep.subr.bf16.mxu0 %v6084_v5 }
 0x25b   :  { %5674 = vmatpush3.bf16.msra.mxu1 %v6085_v6  ;;  %5696 = vmatpush3.bf16.msra.mxu0 %v6086_v7 }
 0x25c   :  { %5675 = vmatprep.subr.bf16.mxu1 %v6087_v12  ;;  %5697 = vmatprep.subr.bf16.mxu0 %v6088_v33 }
 0x25f   :  { %5676 = vmatpush3.bf16.msra.mxu1 %v6089_v13  ;;  %5698 = vmatpush3.bf16.msra.mxu0 %v6090_v14 }
 0x260   :  { %5677 = vmatprep.subr.bf16.mxu1 %v6091_v15  ;;  %5699 = vmatprep.subr.bf16.mxu0 %v6092_v16  ;;  %v6113_v15 = vld [vmem:[%s7945_s5 + $0x100] sm:$0xff]  }
 0x261   :  { %v6114_v16 = vld [vmem:[%s7945_s5 + $0x180] sm:$0xff]  }
 0x263   :  { %5678 = vmatpush3.bf16.msra.mxu1 %v6093_v17  ;;  %5700 = vmatpush3.bf16.msra.mxu0 %v6094_v19  ;;  %v6115_v17 = vld [vmem:[%s7945_s5 + $0x148] sm:$0xff]  }
 0x264   :  { %5679 = vmatprep.subr.bf16.mxu1 %v6095_v20  ;;  %5701 = vmatprep.subr.bf16.mxu0 %v6096_v22  ;;  %v6116_v19 = vld [vmem:[%s7945_s5 + $0x1c8] sm:$0xff]   ;;  %v6846_v20 = vsub.s32 4, %v6461_v9  ;;  %v6849_v22 = vsub.s32 6, %v6461_v9 }
 0x267   :  { %5680 = vmatpush3.bf16.msra.mxu1 %v6097_v24  ;;  %5702 = vmatpush3.bf16.msra.mxu0 %v6098_v25  ;;  %v6852_v24 = vsub.s32 5, %v6461_v9  ;;  %v6855_v25 = vsub.s32 7, %v6461_v9  ;;  %v6119_v9 = vld [vmem:[%s7945_s5 + $0x150] sm:$0xff]  }
 0x268   :  { %5681 = vmatprep.subr.bf16.mxu1 %v6099_v26  ;;  %5703 = vmatprep.subr.bf16.mxu0 %v6100_v28  ;;  %v6117_v26 = vld [vmem:[%s7945_s5 + $0x108] sm:$0xff]  }
 0x269   :  { %v6118_v28 = vld [vmem:[%s7945_s5 + $0x188] sm:$0xff]  }
 0x26b   :  { %5682 = vmatpush3.bf16.msra.mxu1 %v6101_v29  ;;  %5704 = vmatpush3.bf16.msra.mxu0 %v6102_v30  ;;  %v243_v29 = vrot.slane %v220_v41, %v6846_v20  ;;  %v251_v30 = vrot.slane %v220_v41, %v6849_v22 }
 0x26c   :  { %5683 = vmatprep.subr.bf16.mxu1 %v6103_v31  ;;  %5705 = vmatprep.subr.bf16.mxu0 %v6104_v23  ;;  %v6120_v31 = vld [vmem:[%s7945_s5 + $0x1d0] sm:$0xff]   ;;  %v247_v23 = vrot.slane %v220_v41, %v6852_v24 }
 0x26f   :  { %5684 = vmatpush3.bf16.msra.mxu1 %v6105_v11  ;;  %5706 = vmatpush3.bf16.msra.mxu0 %v6106_v34  ;;  %v255_v11 = vrot.slane %v220_v41, %v6855_v25  ;;  %v6123_v41 = vld [vmem:[%s7945_s5 + $0x158] sm:$0xff]  }
 0x270   :  { %5685 = vmatprep.subr.bf16.mxu1 %v6107_v35  ;;  %5707 = vmatprep.subr.bf16.mxu0 %v6108_v36  ;;  %v6121_v36 = vld [vmem:[%s7945_s5 + $0x110] sm:$0xff]  }
 0x273   :  { %5686 = vmatpush3.bf16.msra.mxu1 %v6109_v37  ;;  %5708 = vmatpush3.bf16.msra.mxu0 %v6110_v38  ;;  %v6122_v37 = vld [vmem:[%s7945_s5 + $0x190] sm:$0xff]  }
 0x274   :  { %5715 = vmatprep.subr.bf16.mxu1 %v6111_v39  ;;  %5737 = vmatprep.subr.bf16.mxu0 %v6112_v40 }
 0x2f9   :  { %v661_v47 = vpop.f32.mrb[0].mxu1  ;;  %v704_v48 = vpop.f32.mrb[4].mxu0 }
 0x2fa   :  { %v662_v49 = vadd.f32 %v661_v47, %v227_v43  ;;  %v705_v50 = vadd.f32 %v704_v48, %v235_v44  ;;  %v663_v51 = vpop.f32.mrb[1].mxu1  ;;  %v706_v52 = vpop.f32.mrb[5].mxu0 }
 0x2fb   :  { %v664_v53 = vadd.f32 %v663_v51, %v231_v45  ;;  %v707_v54 = vadd.f32 %v706_v52, %v239_v46  ;;  %v665_v55 = vpop.f32.mrb[2].mxu1  ;;  %v708_v56 = vpop.f32.mrb[6].mxu0 }
 0x2fc   :  { %v666_v57 = vadd.f32 %v665_v55, %v227_v43  ;;  %v709_v58 = vadd.f32 %v708_v56, %v235_v44  ;;  %v667_v59 = vpop.f32.mrb[3].mxu1  ;;  %v710_v60 = vpop.f32.mrb[7].mxu0  ;;  %v971_v63 = vmax.f32 %v662_v49, 0.0  ;;  %v973_v0 = vmax.f32 %v705_v50, 0.0  ;;  %v6124_v44 = vld [vmem:[%s7945_s5 + $0x1d8] sm:$0xff]  }
 0x2fd   :  { %v668_v61 = vadd.f32 %v667_v59, %v231_v45  ;;  %v711_v62 = vadd.f32 %v710_v60, %v239_v46  ;;  %v972_v4 = vmax.f32 %v664_v53, 0.0  ;;  %v974_v5 = vmax.f32 %v707_v54, 0.0  ;;  %v6125_v55 = vld [vmem:[%s7945_s5 + $0x118] sm:$0xff]  }
 0x2fe   :  { %v987_v2 = vmax.f32 %v666_v57, 0.0  ;;  %v989_v3 = vmax.f32 %v709_v58, 0.0  ;;  %v6126_v56 = vld [vmem:[%s7945_s5 + $0x198] sm:$0xff]  }
 0x2ff   :  { %v988_v6 = vmax.f32 %v668_v61, 0.0  ;;  %v990_v7 = vmax.f32 %v711_v62, 0.0  ;;  %v6127_v61 = vld [vmem:[%s7945_s5 + $0x160] sm:$0xff]  }
 0x300   :  { %v1003_v12 = vpack.c.bf16 %v987_v2, %v971_v63  ;;  %v1005_v33 = vpack.c.bf16 %v989_v3, %v973_v0  ;;  %v6128_v62 = vld [vmem:[%s7945_s5 + $0x1e0] sm:$0xff]  }
 0x301   :  { %v1004_v13 = vpack.c.bf16 %v988_v6, %v972_v4  ;;  %v1006_v14 = vpack.c.bf16 %v990_v7, %v974_v5 }
 0x303   :  { %2079 = vmatprep.mubr.bf16.mxu1 %v1004_v13  ;;  %2120 = vmatprep.mubr.bf16.mxu0 %v1006_v14  ;;  %v6131_v13 = vld [vmem:[%s7945_s5 + $0x168] sm:$0xff]  }
 0x304   :  { %2080 = vmatmul.mubr.bf16.vlgmr.msra.gmra.mrb[16].mxu1 %v1003_v12  ;;  %2121 = vmatmul.mubr.bf16.vlgmr.msra.gmra.mrb[20].mxu0 %v1005_v33  ;;  %v6129_v12 = vld [vmem:[%s7945_s5 + $0x120] sm:$0xff]   ;;  %v6132_v14 = vld [vmem:[%s7945_s5 + $0x1e8] sm:$0xff]  }
 0x305   :  { %5716 = vmatpush3.bf16.msra.mxu1 %v6113_v15  ;;  %5738 = vmatpush3.bf16.msra.mxu0 %v6114_v16  ;;  %v6130_v33 = vld [vmem:[%s7945_s5 + $0x1a0] sm:$0xff]   ;;  %v6916_v15 = vld [vmem:[%s7944_s4 + $0x8] sm:$0xff] }
 0x306   :  { %5717 = vmatprep.subr.bf16.mxu1 %v6115_v17  ;;  %5739 = vmatprep.subr.bf16.mxu0 %v6116_v19  ;;  %v6133_v16 = vld [vmem:[%s7945_s5 + $0x128] sm:$0xff]   ;;  %v259_v19 = vrot.slane %v6916_v15, %v6464_v10 }
 0x307   :  { %v6134_v17 = vld [vmem:[%s7945_s5 + $0x1a8] sm:$0xff]  }
 0x309   :  { %v747_v34 = vpop.f32.mrb[4].mxu1  ;;  %v790_v35 = vpop.f32.mrb[8].mxu0  ;;  %5718 = vmatpush3.bf16.msra.mxu1 %v6117_v26  ;;  %5740 = vmatpush3.bf16.msra.mxu0 %v6118_v28  ;;  %v267_v26 = vrot.slane %v6916_v15, %v6553_v21  ;;  %v6135_v28 = vld [vmem:[%s7945_s5 + $0x170] sm:$0xff]  }
 0x30a   :  { %v748_v38 = vadd.f32 %v747_v34, %v243_v29  ;;  %v791_v39 = vadd.f32 %v790_v35, %v251_v30  ;;  %v749_v40 = vpop.f32.mrb[5].mxu1  ;;  %v792_v43 = vpop.f32.mrb[9].mxu0  ;;  %5719 = vmatprep.subr.bf16.mxu1 %v6119_v9  ;;  %5741 = vmatprep.subr.bf16.mxu0 %v6120_v31  ;;  %v271_v9 = vrot.slane %v6916_v15, %v6827_v42  ;;  %v6138_v34 = vld [vmem:[%s7945_s5 + $0x1b0] sm:$0xff]  }
 0x30b   :  { %v750_v45 = vadd.f32 %v749_v40, %v247_v23  ;;  %v793_v46 = vadd.f32 %v792_v43, %v255_v11  ;;  %v751_v47 = vpop.f32.mrb[6].mxu1  ;;  %v794_v48 = vpop.f32.mrb[10].mxu0  ;;  %v6140_v40 = vld [vmem:[%s7945_s5 + $0x1f8] sm:$0xff]  }
 0x30c   :  { %v752_v49 = vadd.f32 %v751_v47, %v243_v29  ;;  %v795_v50 = vadd.f32 %v794_v48, %v251_v30  ;;  %v753_v51 = vpop.f32.mrb[7].mxu1  ;;  %v796_v52 = vpop.f32.mrb[11].mxu0  ;;  %v975_v57 = vmax.f32 %v748_v38, 0.0  ;;  %v977_v58 = vmax.f32 %v791_v39, 0.0  ;;  %v6136_v29 = vld [vmem:[%s7945_s5 + $0x1f0] sm:$0xff]   ;;  %v6139_v39 = vld [vmem:[%s7945_s5 + $0x178] sm:$0xff]  }
 0x30d   :  { %v754_v53 = vadd.f32 %v753_v51, %v247_v23  ;;  %v797_v54 = vadd.f32 %v796_v52, %v255_v11  ;;  %5720 = vmatpush3.bf16.msra.mxu1 %v6121_v36  ;;  %5742 = vmatpush3.bf16.msra.mxu0 %v6122_v37  ;;  %v976_v63 = vmax.f32 %v750_v45, 0.0  ;;  %v978_v0 = vmax.f32 %v793_v46, 0.0  ;;  %v6137_v11 = vld [vmem:[%s7945_s5 + $0x130] sm:$0xff]   ;;  %v6141_v52 = vld [vmem:[%s7945_s5 + $0x138] sm:$0xff]  }
 0x30e   :  { %v991_v59 = vmax.f32 %v752_v49, 0.0  ;;  %v993_v60 = vmax.f32 %v795_v50, 0.0  ;;  %5721 = vmatprep.subr.bf16.mxu1 %v6123_v41  ;;  %5743 = vmatprep.subr.bf16.mxu0 %v6124_v44  ;;  %v263_v30 = vrot.slane %v6916_v15, %v6548_v18 }
 0x30f   :  { %v992_v2 = vmax.f32 %v754_v53, 0.0  ;;  %v994_v3 = vmax.f32 %v797_v54, 0.0  ;;  %v6142_v53 = vld [vmem:[%s7945_s5 + $0x1b8] sm:$0xff]  }
 0x310   :  { %v6897_v4 = vpack.c.bf16 %v991_v59, %v975_v57  ;;  %v6899_v5 = vpack.c.bf16 %v993_v60, %v977_v58  ;;  %v6143_v58 = vld [vmem:[%s7945_s5 + $0x240] sm:$0xff]  }
 0x311   :  { %v1008_v6 = vpack.c.bf16 %v992_v2, %v976_v63  ;;  %v1010_v7 = vpack.c.bf16 %v994_v3, %v978_v0  ;;  %5722 = vmatpush3.bf16.msra.mxu1 %v6125_v55  ;;  %5744 = vmatpush3.bf16.msra.mxu0 %v6126_v56  ;;  %v6144_v59 = vld [vmem:[%s7945_s5 + $0x2c0] sm:$0xff]  }
 0x312   :  { %5723 = vmatprep.subr.bf16.mxu1 %v6127_v61  ;;  %5745 = vmatprep.subr.bf16.mxu0 %v6128_v62 }
 0x313   :  { %2161 = vmatprep.mubr.bf16.mxu1 %v1008_v6  ;;  %2202 = vmatprep.mubr.bf16.mxu0 %v1010_v7  ;;  %v6145_v7 = vld [vmem:[%s7945_s5 + $0x200] sm:$0xff]  }
 0x315   :  { %5724 = vmatpush3.bf16.msra.mxu1 %v6129_v12  ;;  %5746 = vmatpush3.bf16.msra.mxu0 %v6130_v33  ;;  %v6146_v12 = vld [vmem:[%s7945_s5 + $0x280] sm:$0xff]   ;;  %v6147_v33 = vld [vmem:[%s7945_s5 + $0x248] sm:$0xff]  }
 0x316   :  { %5725 = vmatprep.subr.bf16.mxu1 %v6131_v13  ;;  %5747 = vmatprep.subr.bf16.mxu0 %v6132_v14  ;;  %v6148_v13 = vld [vmem:[%s7945_s5 + $0x2c8] sm:$0xff]  }
 0x317   :  { %v6149_v14 = vld [vmem:[%s7945_s5 + $0x208] sm:$0xff]  }
 0x319   :  { %v833_v31 = vpop.f32.mrb[8].mxu1  ;;  %v876_v23 = vpop.f32.mrb[12].mxu0  ;;  %5726 = vmatpush3.bf16.msra.mxu1 %v6133_v16  ;;  %5748 = vmatpush3.bf16.msra.mxu0 %v6134_v17  ;;  %v275_v16 = vrot.slane %v6916_v15, %v6846_v20  ;;  %v283_v17 = vrot.slane %v6916_v15, %v6849_v22 }
 0x31a   :  { %v834_v35 = vadd.f32 %v833_v31, %v259_v19  ;;  %v877_v36 = vadd.f32 %v876_v23, %v267_v26  ;;  %v835_v37 = vpop.f32.mrb[9].mxu1  ;;  %v878_v38 = vpop.f32.mrb[13].mxu0  ;;  %5727 = vmatprep.subr.bf16.mxu1 %v6135_v28  ;;  %5749 = vmatprep.subr.bf16.mxu0 %v6136_v29  ;;  %v6152_v28 = vld [vmem:[%s7945_s5 + $0x2d0] sm:$0xff]  }
 0x31b   :  { %v836_v43 = vadd.f32 %v835_v37, %v263_v30  ;;  %v879_v41 = vadd.f32 %v878_v38, %v271_v9  ;;  %v837_v44 = vpop.f32.mrb[10].mxu1  ;;  %v880_v45 = vpop.f32.mrb[14].mxu0 }
 0x31c   :  { %v838_v46 = vadd.f32 %v837_v44, %v259_v19  ;;  %v881_v47 = vadd.f32 %v880_v45, %v267_v26  ;;  %v839_v48 = vpop.f32.mrb[11].mxu1  ;;  %v882_v49 = vpop.f32.mrb[15].mxu0  ;;  %v979_v54 = vmax.f32 %v834_v35, 0.0  ;;  %v981_v55 = vmax.f32 %v877_v36, 0.0  ;;  %v6155_v35 = vld [vmem:[%s7945_s5 + $0x258] sm:$0xff]  }
 0x31d   :  { %v840_v50 = vadd.f32 %v839_v48, %v263_v30  ;;  %v883_v51 = vadd.f32 %v882_v49, %v271_v9  ;;  %5728 = vmatpush3.bf16.msra.mxu1 %v6137_v11  ;;  %5750 = vmatpush3.bf16.msra.mxu0 %v6138_v34  ;;  %v980_v60 = vmax.f32 %v836_v43, 0.0  ;;  %v982_v61 = vmax.f32 %v879_v41, 0.0  ;;  %v6153_v9 = vld [vmem:[%s7945_s5 + $0x210] sm:$0xff]   ;;  %v6157_v48 = vld [vmem:[%s7945_s5 + $0x218] sm:$0xff]  }
 0x31e   :  { %v995_v56 = vmax.f32 %v838_v46, 0.0  ;;  %v997_v57 = vmax.f32 %v881_v47, 0.0  ;;  %5729 = vmatprep.subr.bf16.mxu1 %v6139_v39  ;;  %5751 = vmatprep.subr.bf16.mxu0 %v6140_v40  ;;  %v279_v19 = vrot.slane %v6916_v15, %v6852_v24  ;;  %v287_v26 = vrot.slane %v6916_v15, %v6855_v25  ;;  %v6154_v15 = vld [vmem:[%s7945_s5 + $0x290] sm:$0xff]   ;;  %v6156_v40 = vld [vmem:[%s7945_s5 + $0x2d8] sm:$0xff]  }
 0x31f   :  { %v996_v62 = vmax.f32 %v840_v50, 0.0  ;;  %v998_v63 = vmax.f32 %v883_v51, 0.0 }
 0x320   :  { %v6962_v0 = vpack.c.bf16 %v995_v56, %v979_v54  ;;  %v6964_v2 = vpack.c.bf16 %v997_v57, %v981_v55  ;;  %v6159_v54 = vld [vmem:[%s7945_s5 + $0x260] sm:$0xff]  }
 0x321   :  { %v1012_v3 = vpack.c.bf16 %v996_v62, %v980_v60  ;;  %v1014_v6 = vpack.c.bf16 %v998_v63, %v982_v61  ;;  %5730 = vmatpush3.bf16.msra.mxu1 %v6141_v52  ;;  %5752 = vmatpush3.bf16.msra.mxu0 %v6142_v53  ;;  %v6158_v53 = vld [vmem:[%s7945_s5 + $0x298] sm:$0xff]  }
 0x322   :  { %5759 = vmatprep.subr.bf16.mxu1 %v6143_v58  ;;  %5781 = vmatprep.subr.bf16.mxu0 %v6144_v59  ;;  %v6160_v59 = vld [vmem:[%s7945_s5 + $0x2e0] sm:$0xff]  }
 0x324   :  { %2162 = vmatmul.mubr.bf16.vlgmr.msra.gmra.mrb[20].mxu1 %v6897_v4  ;;  %2203 = vmatmul.mubr.bf16.vlgmr.msra.gmra.mrb[24].mxu0 %v6899_v5  ;;  %v6150_v4 = vld [vmem:[%s7945_s5 + $0x288] sm:$0xff]   ;;  %v6151_v5 = vld [vmem:[%s7945_s5 + $0x250] sm:$0xff]  }
 0x325   :  { %5760 = vmatpush3.bf16.msra.mxu1 %v6145_v7  ;;  %2243 = vmatprep.mubr.bf16.mxu1 %v1012_v3  ;;  %v6161_v3 = vld [vmem:[%s7945_s5 + $0x220] sm:$0xff]   ;;  %v6163_v7 = vld [vmem:[%s7945_s5 + $0x268] sm:$0xff]  }
 0x326   :  { %5782 = vmatpush3.bf16.msra.mxu0 %v6146_v12  ;;  %2284 = vmatprep.mubr.bf16.mxu0 %v1014_v6  ;;  %v6162_v6 = vld [vmem:[%s7945_s5 + $0x2a0] sm:$0xff]   ;;  %v6164_v12 = vld [vmem:[%s7945_s5 + $0x2e8] sm:$0xff]  }
 0x327   :  { %5761 = vmatprep.subr.bf16.mxu1 %v6147_v33  ;;  %5783 = vmatprep.subr.bf16.mxu0 %v6148_v13  ;;  %v6165_v33 = vld [vmem:[%s7945_s5 + $0x228] sm:$0xff]  }
 0x328   :  { %v6166_v13 = vld [vmem:[%s7945_s5 + $0x2a8] sm:$0xff]  }
 0x329   :  { %v919_v29 = vpop.f32.mrb[12].mxu1  ;;  %v962_v30 = vpop.f32.mrb[16].mxu0  ;;  %5762 = vmatpush3.bf16.msra.mxu1 %v6149_v14  ;;  %v6167_v14 = vld [vmem:[%s7945_s5 + $0x270] sm:$0xff]  }
 0x32a   :  { %v920_v31 = vadd.f32 %v919_v29, %v275_v16  ;;  %v963_v23 = vadd.f32 %v962_v30, %v283_v17  ;;  %5784 = vmatpush3.bf16.msra.mxu0 %v6150_v4  ;;  %v921_v11 = vpop.f32.mrb[13].mxu1  ;;  %v964_v34 = vpop.f32.mrb[17].mxu0  ;;  %5763 = vmatprep.subr.bf16.mxu1 %v6151_v5  ;;  %v6170_v4 = vld [vmem:[%s7945_s5 + $0x2b0] sm:$0xff]   ;;  %v6171_v5 = vld [vmem:[%s7945_s5 + $0x278] sm:$0xff]   ;;  %v6175_v29 = vld [vmem:[%s7945_s5 + $0x340] sm:$0xff]  }
 0x32b   :  { %v922_v36 = vadd.f32 %v921_v11, %v279_v19  ;;  %v965_v37 = vadd.f32 %v964_v34, %v287_v26  ;;  %v923_v38 = vpop.f32.mrb[14].mxu1  ;;  %v966_v39 = vpop.f32.mrb[18].mxu0  ;;  %5785 = vmatprep.subr.bf16.mxu0 %v6152_v28  ;;  %v6174_v28 = vld [vmem:[%s7945_s5 + $0x2b8] sm:$0xff]   ;;  %v6176_v30 = vld [vmem:[%s7945_s5 + $0x3c0] sm:$0xff]   ;;  %v6180_v11 = vld [vmem:[%s7945_s5 + $0x3c8] sm:$0xff]  }
 0x32c   :  { %v924_v43 = vadd.f32 %v923_v38, %v275_v16  ;;  %v967_v41 = vadd.f32 %v966_v39, %v283_v17  ;;  %v925_v44 = vpop.f32.mrb[15].mxu1  ;;  %v968_v45 = vpop.f32.mrb[19].mxu0  ;;  %v983_v49 = vmax.f32 %v920_v31, 0.0  ;;  %v985_v50 = vmax.f32 %v963_v23, 0.0  ;;  %v6168_v16 = vld [vmem:[%s7945_s5 + $0x2f0] sm:$0xff]   ;;  %v6178_v31 = vld [vmem:[%s7945_s5 + $0x380] sm:$0xff]  }
 0x32d   :  { %v926_v46 = vadd.f32 %v925_v44, %v279_v19  ;;  %v969_v47 = vadd.f32 %v968_v45, %v287_v26  ;;  %5764 = vmatpush3.bf16.msra.mxu1 %v6153_v9  ;;  %v984_v55 = vmax.f32 %v922_v36, 0.0  ;;  %v986_v56 = vmax.f32 %v965_v37, 0.0  ;;  %v6169_v17 = vld [vmem:[%s7945_s5 + $0x230] sm:$0xff]   ;;  %v6172_v19 = vld [vmem:[%s7945_s5 + $0x2f8] sm:$0xff]   ;;  %v6177_v9 = vld [vmem:[%s7945_s5 + $0x300] sm:$0xff]  }
 0x32e   :  { %v999_v51 = vmax.f32 %v924_v43, 0.0  ;;  %v1001_v52 = vmax.f32 %v967_v41, 0.0  ;;  %5786 = vmatpush3.bf16.msra.mxu0 %v6154_v15  ;;  %5765 = vmatprep.subr.bf16.mxu1 %v6155_v35  ;;  %v6173_v26 = vld [vmem:[%s7945_s5 + $0x238] sm:$0xff]   ;;  %v6179_v23 = vld [vmem:[%s7945_s5 + $0x348] sm:$0xff]   ;;  %v6185_v35 = vld [vmem:[%s7945_s5 + $0x310] sm:$0xff]  }
 0x32f   :  { %v1000_v57 = vmax.f32 %v926_v46, 0.0  ;;  %v1002_v58 = vmax.f32 %v969_v47, 0.0  ;;  %5787 = vmatprep.subr.bf16.mxu0 %v6156_v40  ;;  %v6181_v34 = vld [vmem:[%s7945_s5 + $0x308] sm:$0xff]   ;;  %v6186_v36 = vld [vmem:[%s7945_s5 + $0x390] sm:$0xff]   ;;  %v6187_v37 = vld [vmem:[%s7945_s5 + $0x358] sm:$0xff]  }
 0x330   :  { %v7024_v60 = vpack.c.bf16 %v999_v51, %v983_v49  ;;  %v7026_v61 = vpack.c.bf16 %v1001_v52, %v985_v50  ;;  %v6182_v15 = vld [vmem:[%s7945_s5 + $0x388] sm:$0xff]   ;;  %v6188_v38 = vld [vmem:[%s7945_s5 + $0x3d8] sm:$0xff]   ;;  %v6191_v43 = vld [vmem:[%s7945_s5 + $0x360] sm:$0xff]  }
 0x331   :  { %v1016_v62 = vpack.c.bf16 %v1000_v57, %v984_v55  ;;  %v1018_v63 = vpack.c.bf16 %v1002_v58, %v986_v56  ;;  %5766 = vmatpush3.bf16.msra.mxu1 %v6157_v48  ;;  %v6189_v39 = vld [vmem:[%s7945_s5 + $0x318] sm:$0xff]   ;;  %v6192_v41 = vld [vmem:[%s7945_s5 + $0x3e0] sm:$0xff]   ;;  %v6195_v46 = vld [vmem:[%s7945_s5 + $0x368] sm:$0xff]  }
 0x332   :  { %5788 = vmatpush3.bf16.msra.mxu0 %v6158_v53  ;;  %5767 = vmatprep.subr.bf16.mxu1 %v6159_v54  ;;  %v6190_v40 = vld [vmem:[%s7945_s5 + $0x398] sm:$0xff]   ;;  %v6193_v44 = vld [vmem:[%s7945_s5 + $0x320] sm:$0xff]   ;;  %v6196_v47 = vld [vmem:[%s7945_s5 + $0x3e8] sm:$0xff]  }
 0x333   :  { %5789 = vmatprep.subr.bf16.mxu0 %v6160_v59  ;;  %v6194_v45 = vld [vmem:[%s7945_s5 + $0x3a0] sm:$0xff]   ;;  %v6197_v48 = vld [vmem:[%s7945_s5 + $0x328] sm:$0xff]   ;;  %v6199_v50 = vld [vmem:[%s7945_s5 + $0x370] sm:$0xff]  }
 0x334   :  { %v6198_v49 = vld [vmem:[%s7945_s5 + $0x3a8] sm:$0xff]   ;;  %v6200_v51 = vld [vmem:[%s7945_s5 + $0x3f0] sm:$0xff]   ;;  %v6203_v54 = vld [vmem:[%s7945_s5 + $0x378] sm:$0xff]  }
 0x335   :  { %5768 = vmatpush3.bf16.msra.mxu1 %v6161_v3  ;;  %v6201_v52 = vld [vmem:[%s7945_s5 + $0x330] sm:$0xff]   ;;  %v6204_v55 = vld [vmem:[%s7945_s5 + $0x3f8] sm:$0xff]  }
 0x336   :  { %5790 = vmatpush3.bf16.msra.mxu0 %v6162_v6  ;;  %5769 = vmatprep.subr.bf16.mxu1 %v6163_v7  ;;  %v6202_v53 = vld [vmem:[%s7945_s5 + $0x3b0] sm:$0xff]   ;;  %v6205_v56 = vld [vmem:[%s7945_s5 + $0x338] sm:$0xff]  }
 0x337   :  { %5791 = vmatprep.subr.bf16.mxu0 %v6164_v12  ;;  %v6206_v57 = vld [vmem:[%s7945_s5 + $0x3b8] sm:$0xff]  }
 0x339   :  { %5770 = vmatpush3.bf16.msra.mxu1 %v6165_v33 }
 0x33a   :  { %5792 = vmatpush3.bf16.msra.mxu0 %v6166_v13  ;;  %5771 = vmatprep.subr.bf16.mxu1 %v6167_v14 }
 0x33b   :  { %5793 = vmatprep.subr.bf16.mxu0 %v6168_v16 }
 0x33d   :  { %5772 = vmatpush3.bf16.msra.mxu1 %v6169_v17 }
 0x33e   :  { %5794 = vmatpush3.bf16.msra.mxu0 %v6170_v4  ;;  %5773 = vmatprep.subr.bf16.mxu1 %v6171_v5 }
 0x33f   :  { %5795 = vmatprep.subr.bf16.mxu0 %v6172_v19 }
 0x341   :  { %5774 = vmatpush3.bf16.msra.mxu1 %v6173_v26 }
 0x342   :  { %5796 = vmatpush3.bf16.msra.mxu0 %v6174_v28  ;;  %5803 = vmatprep.subr.bf16.mxu1 %v6175_v29 }
 0x343   :  { %5825 = vmatprep.subr.bf16.mxu0 %v6176_v30 }
 0x344   :  { %2244 = vmatmul.mubr.bf16.vlgmr.msra.gmra.mrb[24].mxu1 %v6962_v0  ;;  %v6183_v0 = vld [vmem:[%s7945_s5 + $0x350] sm:$0xff]  }
 0x345   :  { %2285 = vmatmul.mubr.bf16.vlgmr.msra.gmra.mrb[28].mxu0 %v6964_v2  ;;  %5804 = vmatpush3.bf16.msra.mxu1 %v6177_v9  ;;  %v6184_v2 = vld [vmem:[%s7945_s5 + $0x3d0] sm:$0xff]  }
 0x346   :  { %2325 = vmatprep.mubr.bf16.mxu1 %v1016_v62  ;;  %5826 = vmatpush3.bf16.msra.mxu0 %v6178_v31  ;;  %v7177_v62 = vld [vmem:[%s7942_s2] sm:$0xff] }
 0x347   :  { %2366 = vmatprep.mubr.bf16.mxu0 %v1018_v63  ;;  %5805 = vmatprep.subr.bf16.mxu1 %v6179_v23  ;;  %v1278_v63 = vrot.slane %v7177_v62, %v6827_v42 }
 0x348   :  { %5827 = vmatprep.subr.bf16.mxu0 %v6180_v11 }
 0x349   :  { %5806 = vmatpush3.bf16.msra.mxu1 %v6181_v34 }
 0x34a   :  { %5828 = vmatpush3.bf16.msra.mxu0 %v6182_v15  ;;  %5807 = vmatprep.subr.bf16.mxu1 %v6183_v0 }
 0x34b   :  { %5829 = vmatprep.subr.bf16.mxu0 %v6184_v2 }
 0x34d   :  { %5808 = vmatpush3.bf16.msra.mxu1 %v6185_v35 }
 0x34e   :  { %5830 = vmatpush3.bf16.msra.mxu0 %v6186_v36  ;;  %5809 = vmatprep.subr.bf16.mxu1 %v6187_v37 }
 0x34f   :  { %5831 = vmatprep.subr.bf16.mxu0 %v6188_v38 }
 0x351   :  { %5810 = vmatpush3.bf16.msra.mxu1 %v6189_v39 }
 0x352   :  { %5832 = vmatpush3.bf16.msra.mxu0 %v6190_v40  ;;  %5811 = vmatprep.subr.bf16.mxu1 %v6191_v43 }
 0x353   :  { %5833 = vmatprep.subr.bf16.mxu0 %v6192_v41 }
 0x355   :  { %5812 = vmatpush3.bf16.msra.mxu1 %v6193_v44 }
 0x356   :  { %5834 = vmatpush3.bf16.msra.mxu0 %v6194_v45  ;;  %5813 = vmatprep.subr.bf16.mxu1 %v6195_v46 }
 0x357   :  { %5835 = vmatprep.subr.bf16.mxu0 %v6196_v47 }
 0x359   :  { %5814 = vmatpush3.bf16.msra.mxu1 %v6197_v48 }
 0x35a   :  { %5836 = vmatpush3.bf16.msra.mxu0 %v6198_v49  ;;  %5815 = vmatprep.subr.bf16.mxu1 %v6199_v50 }
 0x35b   :  { %5837 = vmatprep.subr.bf16.mxu0 %v6200_v51 }
 0x35d   :  { %5816 = vmatpush3.bf16.msra.mxu1 %v6201_v52 }
 0x35e   :  { %5838 = vmatpush3.bf16.msra.mxu0 %v6202_v53  ;;  %5817 = vmatprep.subr.bf16.mxu1 %v6203_v54 }
 0x35f   :  { %5839 = vmatprep.subr.bf16.mxu0 %v6204_v55 }
 0x361   :  { %5818 = vmatpush3.bf16.msra.mxu1 %v6205_v56 }
 0x362   :  { %5840 = vmatpush3.bf16.msra.mxu0 %v6206_v57  ;;  %6045 = vmatprep.subr.bf16.mxu1 %v6385_v1 }
 0x364   :  { %2326 = vmatmul.mubr.bf16.vlgmr.msra.gmra.mrb[28].mxu1 %v7024_v60 }
 0x365   :  { %2367 = vmatmul.mubr.bf16.vlgmr.msra.gmra.mrb[32].mxu0 %v7026_v61  ;;  %6053 = vmatprep.mubr.msk.bf16.mxu1 %vm6386_vm0, %v6385_v1 }
 0x366   :  { %3043 = vmatprep.mubr.bf16.mxu0 %v6387_v8 }
 0x3d7   :  { %v5687_v58 = vpop.f32.mrb[16].mxu1  ;;  %v5709_v59 = vpop.f32.mrb[20].mxu0 }
 0x3d8   :  { %v5688_v3 = vpop.f32.mrb[17].mxu1  ;;  %v5710_v6 = vpop.f32.mrb[21].mxu0 }
 0x3d9   :  { %v5689_v60 = vadd.f32 %v5688_v3, %v5687_v58  ;;  %v5711_v7 = vadd.f32 %v5710_v6, %v5709_v59  ;;  %v5690_v61 = vpop.f32.mrb[18].mxu1  ;;  %v5712_v12 = vpop.f32.mrb[22].mxu0 }
 0x3da   :  { %v5691_v33 = vpop.f32.mrb[19].mxu1  ;;  %v5713_v13 = vpop.f32.mrb[23].mxu0 }
 0x3db   :  { %v2082_v14 = vadd.f32 %v5689_v60, %v1278_v63  ;;  %v5692_v16 = vadd.f32 %v5691_v33, %v5690_v61  ;;  %v5714_v17 = vadd.f32 %v5713_v13, %v5712_v12 }
 0x3dd   :  { %v2123_v4 = vadd.f32 %v5711_v7, %v2082_v14  ;;  %v2085_v5 = vadd.f32 %v5692_v16, %v1278_v63 }
 0x3df   :  { %v2126_v19 = vadd.f32 %v5714_v17, %v2085_v5 }
 0x3f7   :  { %v5731_v26 = vpop.f32.mrb[20].mxu1  ;;  %v5753_v28 = vpop.f32.mrb[24].mxu0 }
 0x3f8   :  { %v5732_v29 = vpop.f32.mrb[21].mxu1  ;;  %v5754_v30 = vpop.f32.mrb[25].mxu0 }
 0x3f9   :  { %v5733_v9 = vadd.f32 %v5732_v29, %v5731_v26  ;;  %v5755_v31 = vadd.f32 %v5754_v30, %v5753_v28  ;;  %v5734_v23 = vpop.f32.mrb[22].mxu1  ;;  %v5756_v11 = vpop.f32.mrb[26].mxu0 }
 0x3fa   :  { %v5735_v34 = vpop.f32.mrb[23].mxu1  ;;  %v5757_v15 = vpop.f32.mrb[27].mxu0 }
 0x3fb   :  { %v2164_v0 = vadd.f32 %v5733_v9, %v2123_v4  ;;  %v5736_v2 = vadd.f32 %v5735_v34, %v5734_v23  ;;  %v5758_v35 = vadd.f32 %v5757_v15, %v5756_v11 }
 0x3fd   :  { %v2205_v36 = vadd.f32 %v5755_v31, %v2164_v0  ;;  %v2167_v37 = vadd.f32 %v5736_v2, %v2126_v19  ;;  %v6208_v0 = vld [vmem:[%s7941_s1 + $0x28] sm:$0xff]   ;;  %v6209_v2 = vld [vmem:[%s7941_s1 + $0x30] sm:$0xff]  }
 0x3ff   :  { %v2208_v38 = vadd.f32 %v5758_v35, %v2167_v37  ;;  %v6210_v35 = vld [vmem:[%s7941_s1 + $0x38] sm:$0xff]  }
 0x417   :  { %v5775_v39 = vpop.f32.mrb[24].mxu1 }
 0x418   :  { %v5797_v40 = vpop.f32.mrb[28].mxu0  ;;  %v5776_v43 = vpop.f32.mrb[25].mxu1 }
 0x419   :  { %v5777_v41 = vadd.f32 %v5776_v43, %v5775_v39  ;;  %v5798_v44 = vpop.f32.mrb[29].mxu0  ;;  %v5778_v45 = vpop.f32.mrb[26].mxu1 }
 0x41a   :  { %v5799_v46 = vadd.f32 %v5798_v44, %v5797_v40  ;;  %v5800_v47 = vpop.f32.mrb[30].mxu0  ;;  %v5779_v48 = vpop.f32.mrb[27].mxu1 }
 0x41b   :  { %v2246_v49 = vadd.f32 %v5777_v41, %v2205_v36  ;;  %v5780_v50 = vadd.f32 %v5779_v48, %v5778_v45  ;;  %v5801_v51 = vpop.f32.mrb[31].mxu0  ;;  %v2406_v41 = vrot.slane %v7177_v62, %v6846_v20 }
 0x41c   :  { %v5802_v52 = vadd.f32 %v5801_v51, %v5800_v47 }
 0x41d   :  { %v2287_v53 = vadd.f32 %v5799_v46, %v2246_v49  ;;  %v2249_v54 = vadd.f32 %v5780_v50, %v2208_v38  ;;  %v2412_v49 = vrot.slane %v7177_v62, %v6852_v24 }
 0x41f   :  { %v2290_v55 = vadd.f32 %v5802_v52, %v2249_v54  ;;  %v7211_v54 = vld [vmem:[%s7942_s2 + $0x8] sm:$0xff] }
 0x437   :  { %v5819_v56 = vpop.f32.mrb[28].mxu1 }
 0x438   :  { %v5841_v57 = vpop.f32.mrb[32].mxu0  ;;  %v5820_v58 = vpop.f32.mrb[29].mxu1 }
 0x439   :  { %v5821_v59 = vadd.f32 %v5820_v58, %v5819_v56  ;;  %v5842_v63 = vpop.f32.mrb[33].mxu0  ;;  %v5822_v3 = vpop.f32.mrb[30].mxu1 }
 0x43a   :  { %v5843_v6 = vadd.f32 %v5842_v63, %v5841_v57  ;;  %v5844_v60 = vpop.f32.mrb[34].mxu0  ;;  %v5823_v7 = vpop.f32.mrb[31].mxu1 }
 0x43b   :  { %v2328_v61 = vadd.f32 %v5821_v59, %v2287_v53  ;;  %v5824_v12 = vadd.f32 %v5823_v7, %v5822_v3  ;;  %v5845_v33 = vpop.f32.mrb[35].mxu0 }
 0x43c   :  { %v5846_v13 = vadd.f32 %v5845_v33, %v5844_v60 }
 0x43d   :  { %v2369_v14 = vadd.f32 %v5843_v6, %v2328_v61  ;;  %v2331_v16 = vadd.f32 %v5824_v12, %v2290_v55  ;;  %v2430_v55 = vrot.slane %v7211_v54, %v6464_v10 }
 0x43f   :  { %v2372_v17 = vadd.f32 %v5846_v13, %v2331_v16  ;;  %v2375_v4 = vadd.f32 %v2369_v14, %v6571_v32 }
 0x441   :  { %v2377_v5 = vsel %vm71_vm1, %v2375_v4, 0.0  ;;  %v2376_v19 = vadd.f32 %v2372_v17, %v6573_v27  ;;  %v6207_v27 = vld [vmem:[%s7941_s1 + $0x20] sm:$0xff]   ;;  %s6361_s1 = scalar_lea.vmem %s4900_s24, 128 }
 0x442   :  { %2378 = vadd.xlane.f32.xlu0 %v2377_v5  ;;  %6046 = vmatpush3.bf16.msra.mxu1 %v6207_v27  ;;  %v5129_v5 = vld [vmem:[%s7943_s3 + $0x200] sm:$0xff]  ;;  %p6362_p0 = scmp.ne.s32.totalorder %s4900_s24, %s6361_s1  ;;  %p6367_p2 = scmp.lt.s32.totalorder %s6361_s1, %s6361_s1 }
 0x443   :  { %v2380_v26 = vsel %vm71_vm1, %v2376_v19, 0.0  ;;  %6047 = vmatprep.subr.bf16.mxu1 %v6385_v1 }
 0x444   :  { %2381 = vadd.xlane.f32.xlu1 %v2380_v26  ;;  %v5130_v26 = vld [vmem:[%s7943_s3 + $0x208] sm:$0xff]  ;;  %p6368_p3 = por %p6367_p2, %p6366_p1 }
 0x446   :  { %6048 = vmatpush3.bf16.msra.mxu1 %v6208_v0  ;;  %p6369_p4 = pnand %p6368_p3, %p6362_p0 }
 0x447   :  { %6049 = vmatprep.subr.bf16.mxu1 %v6385_v1 }
 0x44a   :  { %6050 = vmatpush3.bf16.msra.mxu1 %v6209_v2 }
 0x44b   :  { %6051 = vmatprep.subr.bf16.mxu1 %v6385_v1 }
 0x44e   :  { %6052 = vmatpush3.bf16.msra.mxu1 %v6210_v35  ;;  %v5161_v35 = vld [vmem:[%s7943_s3 + $0x300] sm:$0xff] }
 0x4cf   :  { %v2379_v28 = vpop.xlane.xlu0 %2378 }
 0x4d0   :  { %v2383_v29 = vmul.f32 0.015625, %v2379_v28 }
 0x4d1   :  { %v2382_v30 = vpop.xlane.xlu1 %2381 }
 0x4d2   :  { %v2385_v9 = vsub.f32 %v2375_v4, %v2383_v29  ;;  %v2384_v31 = vmul.f32 0.015625, %v2382_v30  ;;  %v5138_v29 = vld [vmem:[%s7943_s3 + $0x248] sm:$0xff] }
 0x4d4   :  { %v2386_v23 = vsub.f32 %v2376_v19, %v2384_v31  ;;  %v2387_v11 = vmul.f32 %v2385_v9, %v2385_v9  ;;  %v5137_v19 = vld [vmem:[%s7943_s3 + $0x240] sm:$0xff]  ;;  %v5198_v31 = vcombine.high %v5130_v26, %v5138_v29 }
 0x4d5   :  { %v5196_v28 = vcombine.high %v5129_v5, %v5137_v19  ;;  %v5195_v30 = vcombine.low %v5129_v5, %v5137_v19 }
 0x4d6   :  { %v2389_v34 = vsel %vm71_vm1, %v2387_v11, 0.0  ;;  %v2388_v15 = vmul.f32 %v2386_v23, %v2386_v23  ;;  %3054 = vmatprep.subr.bf16.mxu1 %v5198_v31  ;;  %v5153_v11 = vld [vmem:[%s7943_s3 + $0x2c0] sm:$0xff] }
 0x4d7   :  { %2390 = vadd.xlane.f32.xlu0 %v2389_v34  ;;  %3011 = vmatprep.subr.bf16.mxu0 %v5196_v28  ;;  %v5146_v34 = vld [vmem:[%s7943_s3 + $0x288] sm:$0xff]  ;;  %v5147_v28 = vld [vmem:[%s7943_s3 + $0x290] sm:$0xff] }
 0x4d8   :  { %v2392_v32 = vsel %vm71_vm1, %v2388_v15, 0.0  ;;  %3012 = vmatpush1.bf16.msra.mxu0 %v5195_v30 }
 0x4d9   :  { %2393 = vadd.xlane.f32.xlu1 %v2392_v32  ;;  %v5154_v32 = vld [vmem:[%s7943_s3 + $0x2c8] sm:$0xff] }
 0x4da   :  { %v5213_v0 = vcombine.low %v5146_v34, %v5154_v32  ;;  %v5214_v2 = vcombine.high %v5146_v34, %v5154_v32  ;;  %v5171_v34 = vld [vmem:[%s7943_s3 + $0x350] sm:$0xff]  ;;  %v5172_v32 = vld [vmem:[%s7943_s3 + $0x358] sm:$0xff] }
 0x564   :  { %v2391_v36 = vpop.xlane.xlu0 %2390 }
 0x565   :  { %v2395_v37 = vmul.f32 0.015625, %v2391_v36  ;;  %v5169_v36 = vld [vmem:[%s7943_s3 + $0x340] sm:$0xff] }
 0x566   :  { %v2394_v38 = vpop.xlane.xlu1 %2393 }
 0x567   :  { %v2397_v39 = vadd.f32 1e-05, %v2395_v37  ;;  %v2396_v40 = vmul.f32 0.015625, %v2394_v38  ;;  %v5162_v37 = vld [vmem:[%s7943_s3 + $0x308] sm:$0xff]  ;;  %v5228_v38 = vcombine.high %v5161_v35, %v5169_v36 }
 0x569   :  { %6347 = vrsqrt.f32 %v2397_v39  ;;  %v2398_v43 = vadd.f32 1e-05, %v2396_v40  ;;  %v5170_v39 = vld [vmem:[%s7943_s3 + $0x348] sm:$0xff]  ;;  %v5227_v40 = vcombine.low %v5161_v35, %v5169_v36  ;;  %v5179_v36 = vld [vmem:[%s7943_s3 + $0x390] sm:$0xff] }
 0x56b   :  { %6349 = vrsqrt.f32 %v2398_v43  ;;  %v5229_v43 = vcombine.low %v5162_v37, %v5170_v39 }
 0x573   :  { %v6348_v44 = vpop.eup %6347 }
 0x574   :  { %v2401_v45 = vmul.f32 %v6348_v44, %v2385_v9  ;;  %v5197_v9 = vcombine.low %v5130_v26, %v5138_v29  ;;  %v5177_v44 = vld [vmem:[%s7943_s3 + $0x380] sm:$0xff]  ;;  %v5155_v29 = vld [vmem:[%s7943_s3 + $0x2d0] sm:$0xff] }
 0x575   :  { %v6350_v46 = vpop.eup %6349  ;;  %v5216_v31 = vcombine.high %v5147_v28, %v5155_v29 }
 0x576   :  { %v2407_v47 = vmul.f32 %v2406_v41, %v2401_v45  ;;  %v2402_v48 = vmul.f32 %v6350_v46, %v2386_v23  ;;  %v5145_v23 = vld [vmem:[%s7943_s3 + $0x280] sm:$0xff]  ;;  %v5178_v46 = vld [vmem:[%s7943_s3 + $0x388] sm:$0xff] }
 0x577   :  { %v5212_v15 = vcombine.high %v5145_v23, %v5153_v11  ;;  %v5211_v27 = vcombine.low %v5145_v23, %v5153_v11  ;;  %v5185_v45 = vld [vmem:[%s7943_s3 + $0x3c0] sm:$0xff]  ;;  %v5163_v11 = vld [vmem:[%s7943_s3 + $0x310] sm:$0xff] }
 0x578   :  { %v2408_v50 = vmul.f32 %v2406_v41, %v2402_v48  ;;  %v2413_v51 = vadd.f32 %v2412_v49, %v2407_v47  ;;  %v5230_v41 = vcombine.high %v5162_v37, %v5170_v39  ;;  %v5244_v47 = vcombine.high %v5177_v44, %v5185_v45  ;;  %v5186_v48 = vld [vmem:[%s7943_s3 + $0x3c8] sm:$0xff]  ;;  %v5187_v37 = vld [vmem:[%s7943_s3 + $0x3d0] sm:$0xff]  ;;  %v5188_v39 = vld [vmem:[%s7943_s3 + $0x3d8] sm:$0xff] }
 0x579   :  { %3013 = vmatprep.subr.bf16.mxu0 %v5212_v15  ;;  %v5164_v15 = vld [vmem:[%s7943_s3 + $0x318] sm:$0xff] }
 0x57a   :  { %v2414_v52 = vadd.f32 %v2412_v49, %v2408_v50  ;;  %3014 = vmatpush1.bf16.msra.mxu0 %v5211_v27  ;;  %v5243_v49 = vcombine.low %v5177_v44, %v5185_v45  ;;  %v5245_v50 = vcombine.low %v5178_v46, %v5186_v48  ;;  %v5215_v27 = vcombine.low %v5147_v28, %v5155_v29  ;;  %v5133_v45 = vld [vmem:[%s7943_s3 + $0x220] sm:$0xff] }
 0x57b   :  { %3015 = vmatprep.subr.bf16.mxu0 %v5228_v38  ;;  %v5234_v35 = vcombine.high %v5164_v15, %v5172_v32  ;;  %v5180_v38 = vld [vmem:[%s7943_s3 + $0x398] sm:$0xff] }
 0x57c   :  { %v2417_v53 = vpack.c.bf16 %v2414_v52, %v2413_v51  ;;  %v5246_v51 = vcombine.high %v5178_v46, %v5186_v48  ;;  %v5131_v52 = vld [vmem:[%s7943_s3 + $0x210] sm:$0xff]  ;;  %v5250_v44 = vcombine.high %v5180_v38, %v5188_v39  ;;  %v5141_v46 = vld [vmem:[%s7943_s3 + $0x260] sm:$0xff]  ;;  %v5142_v48 = vld [vmem:[%s7943_s3 + $0x268] sm:$0xff] }
 0x57e   :  { %6054 = vmatmul.mubr.msk.bf16.vlgmr.msra.gmra.mrb[32].mxu1 %vm71_vm1, %v2417_v53  ;;  %3016 = vmatpush1.bf16.msra.mxu0 %v5227_v40  ;;  %v5139_v53 = vld [vmem:[%s7943_s3 + $0x250] sm:$0xff]  ;;  %v5231_v40 = vcombine.low %v5163_v11, %v5171_v34 }
 0x57f   :  { %3086 = vmatprep.mubr.bf16.mxu1 %v6387_v8  ;;  %3055 = vmatpush1.bf16.msra.mxu1 %v5197_v9 }
 0x580   :  { %3056 = vmatprep.subr.bf16.mxu1 %v5214_v2  ;;  %3017 = vmatprep.subr.bf16.mxu0 %v5244_v47  ;;  %v5232_v2 = vcombine.high %v5163_v11, %v5171_v34  ;;  %v5134_v47 = vld [vmem:[%s7943_s3 + $0x228] sm:$0xff]  ;;  %v5144_v11 = vld [vmem:[%s7943_s3 + $0x278] sm:$0xff] }
 0x582   :  { %3018 = vmatpush1.bf16.msra.mxu0 %v5243_v49  ;;  %v5247_v49 = vcombine.low %v5179_v36, %v5187_v37 }
 0x583   :  { %3057 = vmatpush1.bf16.msra.mxu1 %v5213_v0 }
 0x584   :  { %3058 = vmatprep.subr.bf16.mxu1 %v5230_v41  ;;  %v5248_v41 = vcombine.high %v5179_v36, %v5187_v37  ;;  %v5160_v36 = vld [vmem:[%s7943_s3 + $0x2f8] sm:$0xff] }
 0x587   :  { %3059 = vmatpush1.bf16.msra.mxu1 %v5229_v43  ;;  %v5233_v43 = vcombine.low %v5164_v15, %v5172_v32 }
 0x588   :  { %3060 = vmatprep.subr.bf16.mxu1 %v5246_v51  ;;  %v5204_v51 = vcombine.high %v5133_v45, %v5141_v46 }
 0x58b   :  { %3061 = vmatpush1.bf16.msra.mxu1 %v5245_v50  ;;  %v5249_v50 = vcombine.low %v5180_v38, %v5188_v39 }
 0x651   :  { %v2492_v56 = vpop.f32.mrb[32].mxu1 }
 0x652   :  { %v2493_v57 = vadd.f32 %v2492_v56, %v2430_v55  ;;  %v6055_v58 = vpop.f32.mrb[33].mxu1  ;;  %v5199_v56 = vcombine.low %v5131_v52, %v5139_v53 }
 0x653   :  { %v2495_v62 = vpop.f32.mrb[34].mxu1  ;;  %v5140_v58 = vld [vmem:[%s7943_s3 + $0x258] sm:$0xff] }
 0x654   :  { %v2496_v59 = vadd.f32 %v2495_v62, %v2430_v55  ;;  %v6056_v63 = vpop.f32.mrb[35].mxu1  ;;  %v2499_v3 = vsel %vm71_vm1, %v2493_v57, 0.0  ;;  %v5132_v55 = vld [vmem:[%s7943_s3 + $0x218] sm:$0xff] }
 0x655   :  { %2500 = vadd.xlane.f32.xlu0 %v2499_v3  ;;  %v5201_v62 = vcombine.low %v5132_v55, %v5140_v58 }
 0x656   :  { %v2502_v6 = vsel %vm71_vm1, %v2496_v59, 0.0 }
 0x657   :  { %2503 = vadd.xlane.f32.xlu1 %v2502_v6 }
 0x6e2   :  { %v2501_v60 = vpop.xlane.xlu0 %2500 }
 0x6e3   :  { %v2505_v7 = vmul.f32 0.015625, %v2501_v60 }
 0x6e4   :  { %v2504_v61 = vpop.xlane.xlu1 %2503 }
 0x6e5   :  { %v7217_v12 = vsub.f32 %v2493_v57, %v2505_v7  ;;  %v2506_v33 = vmul.f32 0.015625, %v2504_v61  ;;  %v5200_v57 = vcombine.high %v5131_v52, %v5139_v53  ;;  %v5206_v52 = vcombine.high %v5134_v47, %v5142_v48  ;;  %v5149_v53 = vld [vmem:[%s7943_s3 + $0x2a0] sm:$0xff] }
 0x6e7   :  { %v7219_v13 = vsub.f32 %v2496_v59, %v2506_v33  ;;  %v2509_v14 = vmul.f32 %v7217_v12, %v7217_v12  ;;  %v5202_v59 = vcombine.high %v5132_v55, %v5140_v58  ;;  %3097 = vmatprep.subr.bf16.mxu0 %v5200_v57  ;;  %v2528_v33 = vrot.slane %v7211_v54, %v6548_v18  ;;  %v5157_v55 = vld [vmem:[%s7943_s3 + $0x2e0] sm:$0xff]  ;;  %v5158_v57 = vld [vmem:[%s7943_s3 + $0x2e8] sm:$0xff] }
 0x6e8   :  { %v5203_v58 = vcombine.low %v5133_v45, %v5141_v46  ;;  %v5176_v45 = vld [vmem:[%s7943_s3 + $0x378] sm:$0xff] }
 0x6e9   :  { %v2511_v16 = vsel %vm71_vm1, %v2509_v14, 0.0  ;;  %v2510_v17 = vmul.f32 %v7219_v13, %v7219_v13  ;;  %3140 = vmatprep.subr.bf16.mxu1 %v5202_v59  ;;  %v5220_v59 = vcombine.high %v5149_v53, %v5157_v55 }
 0x6ea   :  { %2512 = vadd.xlane.f32.xlu0 %v2511_v16 }
 0x6eb   :  { %v2514_v4 = vsel %vm71_vm1, %v2510_v17, 0.0 }
 0x6ec   :  { %2515 = vadd.xlane.f32.xlu1 %v2514_v4  ;;  %v2534_v4 = vrot.slane %v7211_v54, %v6553_v21  ;;  %v5156_v54 = vld [vmem:[%s7943_s3 + $0x2d8] sm:$0xff] }
 0x777   :  { %v2513_v63 = vpop.xlane.xlu0 %2512 }
 0x778   :  { %v2517_v3 = vmul.f32 0.015625, %v2513_v63 }
 0x779   :  { %v2516_v6 = vpop.xlane.xlu1 %2515 }
 0x77a   :  { %v2519_v60 = vadd.f32 1e-05, %v2517_v3  ;;  %v2518_v7 = vmul.f32 0.015625, %v2516_v6  ;;  %v5165_v3 = vld [vmem:[%s7943_s3 + $0x320] sm:$0xff] }
 0x77b   :  { %v5173_v6 = vld [vmem:[%s7943_s3 + $0x360] sm:$0xff] }
 0x77c   :  { %6351 = vrsqrt.f32 %v2519_v60  ;;  %v2520_v61 = vadd.f32 1e-05, %v2518_v7  ;;  %v5166_v60 = vld [vmem:[%s7943_s3 + $0x328] sm:$0xff] }
 0x77d   :  { %v5174_v7 = vld [vmem:[%s7943_s3 + $0x368] sm:$0xff] }
 0x77e   :  { %6353 = vrsqrt.f32 %v2520_v61  ;;  %v5219_v61 = vcombine.low %v5149_v53, %v5157_v55  ;;  %v5237_v28 = vcombine.low %v5166_v60, %v5174_v7  ;;  %v5192_v53 = vld [vmem:[%s7943_s3 + $0x3f8] sm:$0xff] }
 0x786   :  { %v6352_v14 = vpop.eup %6351 }
 0x787   :  { %v2523_v16 = vmul.f32 %v6352_v14, %v7217_v12  ;;  %v5148_v12 = vld [vmem:[%s7943_s3 + $0x298] sm:$0xff]  ;;  %v5236_v14 = vcombine.high %v5165_v3, %v5173_v6 }
 0x788   :  { %v6354_v17 = vpop.eup %6353  ;;  %v5218_v23 = vcombine.high %v5148_v12, %v5156_v54  ;;  %v5217_v0 = vcombine.low %v5148_v12, %v5156_v54  ;;  %v5135_v54 = vld [vmem:[%s7943_s3 + $0x230] sm:$0xff] }
 0x789   :  { %v2529_v5 = vmul.f32 %v2528_v33, %v2523_v16  ;;  %v2524_v19 = vmul.f32 %v6354_v17, %v7219_v13  ;;  %v5238_v16 = vcombine.high %v5166_v60, %v5174_v7  ;;  %v5181_v17 = vld [vmem:[%s7943_s3 + $0x3a0] sm:$0xff]  ;;  %v6215_v60 = vld [vmem:[%s7945_s5 + $0x448] sm:$0xff]  }
 0x78a   :  { %v6216_v7 = vld [vmem:[%s7945_s5 + $0x4c8] sm:$0xff]  }
 0x78b   :  { %v2530_v26 = vmul.f32 %v2528_v33, %v2524_v19  ;;  %v7305_v30 = vadd.f32 %v2534_v4, %v2529_v5  ;;  %v5182_v5 = vld [vmem:[%s7943_s3 + $0x3a8] sm:$0xff] }
 0x78c   :  { %v5190_v19 = vld [vmem:[%s7943_s3 + $0x3e8] sm:$0xff] }
 0x78d   :  { %v7307_v13 = vadd.f32 %v2534_v4, %v2530_v26  ;;  %v5189_v4 = vld [vmem:[%s7943_s3 + $0x3e0] sm:$0xff]  ;;  %v5235_v26 = vcombine.low %v5165_v3, %v5173_v6  ;;  %v5254_v12 = vcombine.high %v5182_v5, %v5190_v19  ;;  %v5253_v15 = vcombine.low %v5182_v5, %v5190_v19  ;;  %v6224_v5 = vld [vmem:[%s7945_s5 + $0x4d8] sm:$0xff]  }
 0x78e   :  { %v5252_v29 = vcombine.high %v5181_v17, %v5189_v4  ;;  %v5251_v34 = vcombine.low %v5181_v17, %v5189_v4  ;;  %v6213_v3 = vld [vmem:[%s7945_s5 + $0x400] sm:$0xff]   ;;  %v6222_v17 = vld [vmem:[%s7945_s5 + $0x490] sm:$0xff]   ;;  %v6223_v4 = vld [vmem:[%s7945_s5 + $0x458] sm:$0xff]  }
 0x78f   :  { %v7311_v9 = vpack.c.bf16 %v7307_v13, %v7305_v30  ;;  %v6214_v6 = vld [vmem:[%s7945_s5 + $0x480] sm:$0xff]   ;;  %v6225_v19 = vld [vmem:[%s7945_s5 + $0x418] sm:$0xff]  }
 0x791   :  { %5259 = vmatmul.mubr.msk.bf16.vlgmr.msra.gmra.mrb[36].mxu0 %vm71_vm1, %v7311_v9  ;;  %5260 = vmatmul.mubr.msk.bf16.vlgmr.msra.gmra.mrb[36].mxu1 %vm71_vm1, %v7311_v9 }
 0x792   :  { %3098 = vmatpush1.bf16.msra.mxu0 %v5199_v56  ;;  %3141 = vmatpush1.bf16.msra.mxu1 %v5201_v62  ;;  %v5150_v56 = vld [vmem:[%s7943_s3 + $0x2a8] sm:$0xff]  ;;  %v5205_v62 = vcombine.low %v5134_v47, %v5142_v48 }
 0x793   :  { %3099 = vmatprep.subr.bf16.mxu0 %v5216_v31  ;;  %3142 = vmatprep.subr.bf16.mxu1 %v5218_v23  ;;  %v5222_v63 = vcombine.high %v5150_v56, %v5158_v57  ;;  %v5221_v33 = vcombine.low %v5150_v56, %v5158_v57  ;;  %v5143_v31 = vld [vmem:[%s7943_s3 + $0x270] sm:$0xff]  ;;  %v5136_v23 = vld [vmem:[%s7943_s3 + $0x238] sm:$0xff] }
 0x794   :  { %3129 = vmatprep.mubr.bf16.mxu0 %v6387_v8  ;;  %3172 = vmatprep.mubr.bf16.mxu1 %v6387_v8  ;;  %v5208_v32 = vcombine.high %v5135_v54, %v5143_v31  ;;  %v5207_v37 = vcombine.low %v5135_v54, %v5143_v31  ;;  %v5209_v38 = vcombine.low %v5136_v23, %v5144_v11  ;;  %v6230_v54 = vld [vmem:[%s7945_s5 + $0x4a0] sm:$0xff]   ;;  %v6231_v31 = vld [vmem:[%s7945_s5 + $0x468] sm:$0xff]  }
 0x796   :  { %3100 = vmatpush1.bf16.msra.mxu0 %v5215_v27  ;;  %3143 = vmatpush1.bf16.msra.mxu1 %v5217_v0  ;;  %v5210_v27 = vcombine.high %v5136_v23, %v5144_v11  ;;  %v5151_v0 = vld [vmem:[%s7943_s3 + $0x2b0] sm:$0xff]  ;;  %v6232_v23 = vld [vmem:[%s7945_s5 + $0x4e8] sm:$0xff]  }
 0x797   :  { %3101 = vmatprep.subr.bf16.mxu0 %v5232_v2  ;;  %3144 = vmatprep.subr.bf16.mxu1 %v5234_v35  ;;  %v5159_v2 = vld [vmem:[%s7943_s3 + $0x2f0] sm:$0xff]  ;;  %v5152_v35 = vld [vmem:[%s7943_s3 + $0x2b8] sm:$0xff]  ;;  %v6233_v11 = vld [vmem:[%s7945_s5 + $0x428] sm:$0xff]  }
 0x798   :  { %v5224_v39 = vcombine.high %v5151_v0, %v5159_v2  ;;  %v5223_v46 = vcombine.low %v5151_v0, %v5159_v2  ;;  %v5225_v47 = vcombine.low %v5152_v35, %v5160_v36  ;;  %v6238_v0 = vld [vmem:[%s7945_s5 + $0x4b0] sm:$0xff]   ;;  %v6239_v2 = vld [vmem:[%s7945_s5 + $0x478] sm:$0xff]  }
 0x79a   :  { %3102 = vmatpush1.bf16.msra.mxu0 %v5231_v40  ;;  %3145 = vmatpush1.bf16.msra.mxu1 %v5233_v43  ;;  %v5226_v40 = vcombine.high %v5152_v35, %v5160_v36  ;;  %v5167_v43 = vld [vmem:[%s7943_s3 + $0x330] sm:$0xff]  ;;  %v6240_v35 = vld [vmem:[%s7945_s5 + $0x4f8] sm:$0xff]  }
 0x79b   :  { %3103 = vmatprep.subr.bf16.mxu0 %v5248_v41  ;;  %3146 = vmatprep.subr.bf16.mxu1 %v5250_v44  ;;  %v5175_v41 = vld [vmem:[%s7943_s3 + $0x370] sm:$0xff]  ;;  %v5168_v44 = vld [vmem:[%s7943_s3 + $0x338] sm:$0xff] }
 0x79c   :  { %v5240_v48 = vcombine.high %v5167_v43, %v5175_v41  ;;  %v5239_v55 = vcombine.low %v5167_v43, %v5175_v41  ;;  %v5241_v56 = vcombine.low %v5168_v44, %v5176_v45  ;;  %v6241_v36 = vld [vmem:[%s7945_s5 + $0x438] sm:$0xff]  }
 0x79e   :  { %3104 = vmatpush1.bf16.msra.mxu0 %v5247_v49  ;;  %3147 = vmatpush1.bf16.msra.mxu1 %v5249_v50  ;;  %v5242_v49 = vcombine.high %v5168_v44, %v5176_v45  ;;  %v5183_v50 = vld [vmem:[%s7943_s3 + $0x3b0] sm:$0xff] }
 0x79f   :  { %3183 = vmatprep.subr.bf16.mxu0 %v5204_v51  ;;  %3226 = vmatprep.subr.bf16.mxu1 %v5206_v52  ;;  %v5191_v51 = vld [vmem:[%s7943_s3 + $0x3f0] sm:$0xff]  ;;  %v5184_v52 = vld [vmem:[%s7943_s3 + $0x3b8] sm:$0xff] }
 0x7a0   :  { %v5256_v57 = vcombine.high %v5183_v50, %v5191_v51 }
 0x7a1   :  { %5261 = vmatmul.mubr.msk.bf16.vlgmr.msra.gmra.mrb[40].mxu0 %vm71_vm1, %v7311_v9  ;;  %5262 = vmatmul.mubr.msk.bf16.vlgmr.msra.gmra.mrb[40].mxu1 %vm71_vm1, %v7311_v9 }
 0x7a2   :  { %3184 = vmatpush1.bf16.msra.mxu0 %v5203_v58  ;;  %3227 = vmatpush1.bf16.msra.mxu1 %v5205_v62  ;;  %v5258_v58 = vcombine.high %v5184_v52, %v5192_v53  ;;  %v5255_v62 = vcombine.low %v5183_v50, %v5191_v51 }
 0x7a3   :  { %3185 = vmatprep.subr.bf16.mxu0 %v5220_v59  ;;  %3228 = vmatprep.subr.bf16.mxu1 %v5222_v63  ;;  %v5257_v59 = vcombine.low %v5184_v52, %v5192_v53  ;;  %v6211_v63 = vld [vmem:[%s7945_s5 + $0x440] sm:$0xff]  }
 0x7a4   :  { %3215 = vmatprep.mubr.bf16.mxu0 %v6387_v8  ;;  %3258 = vmatprep.mubr.bf16.mxu1 %v6387_v8 }
 0x7a6   :  { %3186 = vmatpush1.bf16.msra.mxu0 %v5219_v61  ;;  %3229 = vmatpush1.bf16.msra.mxu1 %v5221_v33  ;;  %v6217_v61 = vld [vmem:[%s7945_s5 + $0x408] sm:$0xff]  }
 0x7a7   :  { %3187 = vmatprep.subr.bf16.mxu0 %v5236_v14  ;;  %3230 = vmatprep.subr.bf16.mxu1 %v5238_v16  ;;  %v6218_v33 = vld [vmem:[%s7945_s5 + $0x488] sm:$0xff]   ;;  %v6219_v14 = vld [vmem:[%s7945_s5 + $0x450] sm:$0xff]  }
 0x7a8   :  { %v6221_v16 = vld [vmem:[%s7945_s5 + $0x410] sm:$0xff]  }
 0x7aa   :  { %3188 = vmatpush1.bf16.msra.mxu0 %v5235_v26  ;;  %3231 = vmatpush1.bf16.msra.mxu1 %v5237_v28  ;;  %v6226_v26 = vld [vmem:[%s7945_s5 + $0x498] sm:$0xff]   ;;  %v6227_v28 = vld [vmem:[%s7945_s5 + $0x460] sm:$0xff]  }
 0x7ab   :  { %3189 = vmatprep.subr.bf16.mxu0 %v5252_v29  ;;  %3232 = vmatprep.subr.bf16.mxu1 %v5254_v12  ;;  %v6228_v29 = vld [vmem:[%s7945_s5 + $0x4e0] sm:$0xff]  }
 0x7ac   :  { %v6229_v12 = vld [vmem:[%s7945_s5 + $0x420] sm:$0xff]  }
 0x7ae   :  { %3190 = vmatpush1.bf16.msra.mxu0 %v5251_v34  ;;  %3233 = vmatpush1.bf16.msra.mxu1 %v5253_v15  ;;  %v6234_v34 = vld [vmem:[%s7945_s5 + $0x4a8] sm:$0xff]   ;;  %v6235_v15 = vld [vmem:[%s7945_s5 + $0x470] sm:$0xff]  }
 0x7af   :  { %3269 = vmatprep.subr.bf16.mxu0 %v5208_v32  ;;  %3312 = vmatprep.subr.bf16.mxu1 %v5210_v27  ;;  %v6236_v32 = vld [vmem:[%s7945_s5 + $0x4f0] sm:$0xff]  }
 0x7b0   :  { %v6237_v27 = vld [vmem:[%s7945_s5 + $0x430] sm:$0xff]  }
 0x7b1   :  { %5263 = vmatmul.mubr.msk.bf16.vlgmr.msra.gmra.mrb[44].mxu0 %vm71_vm1, %v7311_v9  ;;  %5264 = vmatmul.mubr.msk.bf16.vlgmr.msra.gmra.mrb[44].mxu1 %vm71_vm1, %v7311_v9 }
 0x7b2   :  { %3270 = vmatpush1.bf16.msra.mxu0 %v5207_v37  ;;  %3313 = vmatpush1.bf16.msra.mxu1 %v5209_v38  ;;  %v6242_v37 = vld [vmem:[%s7945_s5 + $0x4b8] sm:$0xff]   ;;  %v6243_v38 = vld [vmem:[%s7945_s5 + $0x540] sm:$0xff]  }
 0x7b3   :  { %3271 = vmatprep.subr.bf16.mxu0 %v5224_v39  ;;  %3314 = vmatprep.subr.bf16.mxu1 %v5226_v40  ;;  %v6244_v39 = vld [vmem:[%s7945_s5 + $0x5c0] sm:$0xff]   ;;  %v5193_v40 = vld [vmem:[%s7944_s4 + $0x10] sm:$0xff] }
 0x7b4   :  { %3301 = vmatprep.mubr.bf16.mxu0 %v6387_v8  ;;  %3344 = vmatprep.mubr.bf16.mxu1 %v6387_v8  ;;  %v6212_v8 = vld [vmem:[%s7945_s5 + $0x4c0] sm:$0xff]   ;;  %v2611_v43 = vrot.slane %v5193_v40, %v6464_v10  ;;  %v2619_v41 = vrot.slane %v5193_v40, %v6553_v21  ;;  %v2615_v44 = vrot.slane %v5193_v40, %v6548_v18 }
 0x7b5   :  { %v2623_v45 = vrot.slane %v5193_v40, %v6827_v42 }
 0x7b6   :  { %3272 = vmatpush1.bf16.msra.mxu0 %v5223_v46  ;;  %3315 = vmatpush1.bf16.msra.mxu1 %v5225_v47 }
 0x7b7   :  { %3273 = vmatprep.subr.bf16.mxu0 %v5240_v48  ;;  %3316 = vmatprep.subr.bf16.mxu1 %v5242_v49 }
 0x7ba   :  { %3274 = vmatpush1.bf16.msra.mxu0 %v5239_v55  ;;  %3317 = vmatpush1.bf16.msra.mxu1 %v5241_v56 }
 0x7bb   :  { %3275 = vmatprep.subr.bf16.mxu0 %v5256_v57  ;;  %3318 = vmatprep.subr.bf16.mxu1 %v5258_v58 }
 0x7be   :  { %3276 = vmatpush1.bf16.msra.mxu0 %v5255_v62  ;;  %3319 = vmatpush1.bf16.msra.mxu1 %v5257_v59 }
 0x7bf   :  { %5852 = vmatprep.subr.bf16.mxu0 %v6211_v63  ;;  %5874 = vmatprep.subr.bf16.mxu1 %v6212_v8 }
 0x7c1   :  { %5265 = vmatmul.mubr.msk.bf16.vlgmr.msra.gmra.mrb[48].mxu0 %vm71_vm1, %v7311_v9  ;;  %5266 = vmatmul.mubr.msk.bf16.vlgmr.msra.gmra.mrb[48].mxu1 %vm71_vm1, %v7311_v9  ;;  %v6220_v9 = vld [vmem:[%s7945_s5 + $0x4d0] sm:$0xff]  }
 0x7c2   :  { %5853 = vmatpush3.bf16.msra.mxu0 %v6213_v3  ;;  %5875 = vmatpush3.bf16.msra.mxu1 %v6214_v6 }
 0x7c3   :  { %5854 = vmatprep.subr.bf16.mxu0 %v6215_v60  ;;  %5876 = vmatprep.subr.bf16.mxu1 %v6216_v7 }
 0x7c6   :  { %5855 = vmatpush3.bf16.msra.mxu0 %v6217_v61  ;;  %5877 = vmatpush3.bf16.msra.mxu1 %v6218_v33 }
 0x7c7   :  { %5856 = vmatprep.subr.bf16.mxu0 %v6219_v14  ;;  %5878 = vmatprep.subr.bf16.mxu1 %v6220_v9 }
 0x7ca   :  { %5857 = vmatpush3.bf16.msra.mxu0 %v6221_v16  ;;  %5879 = vmatpush3.bf16.msra.mxu1 %v6222_v17 }
 0x7cb   :  { %5858 = vmatprep.subr.bf16.mxu0 %v6223_v4  ;;  %5880 = vmatprep.subr.bf16.mxu1 %v6224_v5 }
 0x7ce   :  { %5859 = vmatpush3.bf16.msra.mxu0 %v6225_v19  ;;  %5881 = vmatpush3.bf16.msra.mxu1 %v6226_v26  ;;  %v6245_v19 = vld [vmem:[%s7945_s5 + $0x500] sm:$0xff]  }
 0x7cf   :  { %5860 = vmatprep.subr.bf16.mxu0 %v6227_v28  ;;  %5882 = vmatprep.subr.bf16.mxu1 %v6228_v29  ;;  %v6246_v26 = vld [vmem:[%s7945_s5 + $0x580] sm:$0xff]   ;;  %v6247_v28 = vld [vmem:[%s7945_s5 + $0x548] sm:$0xff]  }
 0x7d0   :  { %v6248_v29 = vld [vmem:[%s7945_s5 + $0x5c8] sm:$0xff]  }
 0x7d2   :  { %5861 = vmatpush3.bf16.msra.mxu0 %v6229_v12  ;;  %5883 = vmatpush3.bf16.msra.mxu1 %v6230_v54  ;;  %v6249_v12 = vld [vmem:[%s7945_s5 + $0x508] sm:$0xff]  }
 0x7d3   :  { %5862 = vmatprep.subr.bf16.mxu0 %v6231_v31  ;;  %5884 = vmatprep.subr.bf16.mxu1 %v6232_v23  ;;  %v6250_v54 = vld [vmem:[%s7945_s5 + $0x588] sm:$0xff]   ;;  %v2627_v31 = vrot.slane %v5193_v40, %v6846_v20  ;;  %v2635_v23 = vrot.slane %v5193_v40, %v6849_v22 }
 0x7d6   :  { %5863 = vmatpush3.bf16.msra.mxu0 %v6233_v11  ;;  %5885 = vmatpush3.bf16.msra.mxu1 %v6234_v34  ;;  %v6251_v11 = vld [vmem:[%s7945_s5 + $0x550] sm:$0xff]  }
 0x7d7   :  { %5864 = vmatprep.subr.bf16.mxu0 %v6235_v15  ;;  %5886 = vmatprep.subr.bf16.mxu1 %v6236_v32  ;;  %v6252_v34 = vld [vmem:[%s7945_s5 + $0x5d0] sm:$0xff]   ;;  %v2631_v15 = vrot.slane %v5193_v40, %v6852_v24  ;;  %v2639_v32 = vrot.slane %v5193_v40, %v6855_v25  ;;  %v6255_v40 = vld [vmem:[%s7945_s5 + $0x558] sm:$0xff]  }
 0x7da   :  { %5865 = vmatpush3.bf16.msra.mxu0 %v6237_v27  ;;  %5887 = vmatpush3.bf16.msra.mxu1 %v6238_v0 }
 0x7db   :  { %5866 = vmatprep.subr.bf16.mxu0 %v6239_v2  ;;  %5888 = vmatprep.subr.bf16.mxu1 %v6240_v35  ;;  %v6253_v2 = vld [vmem:[%s7945_s5 + $0x510] sm:$0xff]  }
 0x7dc   :  { %v6254_v35 = vld [vmem:[%s7945_s5 + $0x590] sm:$0xff]  }
 0x7de   :  { %5867 = vmatpush3.bf16.msra.mxu0 %v6241_v36  ;;  %5889 = vmatpush3.bf16.msra.mxu1 %v6242_v37 }
 0x7df   :  { %5896 = vmatprep.subr.bf16.mxu0 %v6243_v38  ;;  %5918 = vmatprep.subr.bf16.mxu1 %v6244_v39 }
 0x864   :  { %v3045_v46 = vpop.f32.mrb[36].mxu0  ;;  %v3088_v47 = vpop.f32.mrb[36].mxu1 }
 0x865   :  { %v3046_v48 = vadd.f32 %v3045_v46, %v2611_v43  ;;  %v3089_v49 = vadd.f32 %v3088_v47, %v2619_v41  ;;  %v3047_v50 = vpop.f32.mrb[37].mxu0  ;;  %v3090_v51 = vpop.f32.mrb[37].mxu1 }
 0x866   :  { %v3048_v52 = vadd.f32 %v3047_v50, %v2615_v44  ;;  %v3091_v53 = vadd.f32 %v3090_v51, %v2623_v45  ;;  %v3049_v55 = vpop.f32.mrb[38].mxu0  ;;  %v3092_v56 = vpop.f32.mrb[38].mxu1 }
 0x867   :  { %v3050_v57 = vadd.f32 %v3049_v55, %v2611_v43  ;;  %v3093_v58 = vadd.f32 %v3092_v56, %v2619_v41  ;;  %v3051_v62 = vpop.f32.mrb[39].mxu0  ;;  %v3094_v59 = vpop.f32.mrb[39].mxu1  ;;  %v3355_v3 = vmax.f32 %v3046_v48, 0.0  ;;  %v3357_v6 = vmax.f32 %v3089_v49, 0.0  ;;  %v6256_v43 = vld [vmem:[%s7945_s5 + $0x5d8] sm:$0xff]  }
 0x868   :  { %v3052_v63 = vadd.f32 %v3051_v62, %v2615_v44  ;;  %v3095_v8 = vadd.f32 %v3094_v59, %v2623_v45  ;;  %v3356_v61 = vmax.f32 %v3048_v52, 0.0  ;;  %v3358_v33 = vmax.f32 %v3091_v53, 0.0  ;;  %v6257_v53 = vld [vmem:[%s7945_s5 + $0x518] sm:$0xff]   ;;  %v6259_v59 = vld [vmem:[%s7945_s5 + $0x560] sm:$0xff]  }
 0x869   :  { %v3371_v60 = vmax.f32 %v3050_v57, 0.0  ;;  %v3373_v7 = vmax.f32 %v3093_v58, 0.0  ;;  %v6258_v55 = vld [vmem:[%s7945_s5 + $0x598] sm:$0xff]  }
 0x86a   :  { %v3372_v14 = vmax.f32 %v3052_v63, 0.0  ;;  %v3374_v9 = vmax.f32 %v3095_v8, 0.0  ;;  %v6260_v63 = vld [vmem:[%s7945_s5 + $0x5e0] sm:$0xff]  }
 0x86b   :  { %v3387_v16 = vpack.c.bf16 %v3371_v60, %v3355_v3  ;;  %v3389_v17 = vpack.c.bf16 %v3373_v7, %v3357_v6 }
 0x86c   :  { %v3388_v4 = vpack.c.bf16 %v3372_v14, %v3356_v61  ;;  %v3390_v5 = vpack.c.bf16 %v3374_v9, %v3358_v33  ;;  %v6261_v9 = vld [vmem:[%s7945_s5 + $0x520] sm:$0xff]  }
 0x86e   :  { %4464 = vmatprep.mubr.bf16.mxu0 %v3388_v4  ;;  %4505 = vmatprep.mubr.bf16.mxu1 %v3390_v5  ;;  %v6264_v4 = vld [vmem:[%s7945_s5 + $0x5e8] sm:$0xff]   ;;  %v7635_v5 = vld [vmem:[%s7944_s4 + $0x18] sm:$0xff] }
 0x86f   :  { %4465 = vmatmul.mubr.bf16.vlgmr.msra.gmra.mrb[52].mxu0 %v3387_v16  ;;  %4506 = vmatmul.mubr.bf16.vlgmr.msra.gmra.mrb[52].mxu1 %v3389_v17  ;;  %v6262_v16 = vld [vmem:[%s7945_s5 + $0x5a0] sm:$0xff]   ;;  %v6263_v17 = vld [vmem:[%s7945_s5 + $0x568] sm:$0xff]  }
 0x870   :  { %5897 = vmatpush3.bf16.msra.mxu0 %v6245_v19  ;;  %5919 = vmatpush3.bf16.msra.mxu1 %v6246_v26  ;;  %v6265_v19 = vld [vmem:[%s7945_s5 + $0x528] sm:$0xff]  }
 0x871   :  { %5898 = vmatprep.subr.bf16.mxu0 %v6247_v28  ;;  %5920 = vmatprep.subr.bf16.mxu1 %v6248_v29  ;;  %v6266_v26 = vld [vmem:[%s7945_s5 + $0x5a8] sm:$0xff]   ;;  %v2643_v28 = vrot.slane %v7635_v5, %v6464_v10  ;;  %v2651_v29 = vrot.slane %v7635_v5, %v6553_v21  ;;  %v6269_v10 = vld [vmem:[%s7945_s5 + $0x530] sm:$0xff]  }
 0x872   :  { %v6270_v21 = vld [vmem:[%s7945_s5 + $0x5b0] sm:$0xff]  }
 0x874   :  { %v3131_v27 = vpop.f32.mrb[40].mxu0  ;;  %v3174_v0 = vpop.f32.mrb[40].mxu1  ;;  %5899 = vmatpush3.bf16.msra.mxu0 %v6249_v12  ;;  %5921 = vmatpush3.bf16.msra.mxu1 %v6250_v54  ;;  %v6267_v12 = vld [vmem:[%s7945_s5 + $0x570] sm:$0xff]  }
 0x875   :  { %v3132_v36 = vadd.f32 %v3131_v27, %v2627_v31  ;;  %v3175_v37 = vadd.f32 %v3174_v0, %v2635_v23  ;;  %v3133_v38 = vpop.f32.mrb[41].mxu0  ;;  %v3176_v39 = vpop.f32.mrb[41].mxu1  ;;  %5900 = vmatprep.subr.bf16.mxu0 %v6251_v11  ;;  %5922 = vmatprep.subr.bf16.mxu1 %v6252_v34  ;;  %v6268_v54 = vld [vmem:[%s7945_s5 + $0x5f0] sm:$0xff]  }
 0x876   :  { %v3134_v41 = vadd.f32 %v3133_v38, %v2631_v15  ;;  %v3177_v44 = vadd.f32 %v3176_v39, %v2639_v32  ;;  %v3135_v45 = vpop.f32.mrb[42].mxu0  ;;  %v3178_v46 = vpop.f32.mrb[42].mxu1 }
 0x877   :  { %v3136_v47 = vadd.f32 %v3135_v45, %v2627_v31  ;;  %v3179_v48 = vadd.f32 %v3178_v46, %v2635_v23  ;;  %v3137_v49 = vpop.f32.mrb[43].mxu0  ;;  %v3180_v50 = vpop.f32.mrb[43].mxu1  ;;  %v3359_v56 = vmax.f32 %v3132_v36, 0.0  ;;  %v3361_v57 = vmax.f32 %v3175_v37, 0.0  ;;  %v6273_v46 = vld [vmem:[%s7945_s5 + $0x538] sm:$0xff]  }
 0x878   :  { %v3138_v51 = vadd.f32 %v3137_v49, %v2631_v15  ;;  %v3181_v52 = vadd.f32 %v3180_v50, %v2639_v32  ;;  %5901 = vmatpush3.bf16.msra.mxu0 %v6253_v2  ;;  %5923 = vmatpush3.bf16.msra.mxu1 %v6254_v35  ;;  %v3360_v8 = vmax.f32 %v3134_v41, 0.0  ;;  %v3362_v3 = vmax.f32 %v3177_v44, 0.0  ;;  %v6272_v2 = vld [vmem:[%s7945_s5 + $0x5f8] sm:$0xff]  }
 0x879   :  { %v3375_v58 = vmax.f32 %v3136_v47, 0.0  ;;  %v3377_v62 = vmax.f32 %v3179_v48, 0.0  ;;  %5902 = vmatprep.subr.bf16.mxu0 %v6255_v40  ;;  %5924 = vmatprep.subr.bf16.mxu1 %v6256_v43  ;;  %v2647_v31 = vrot.slane %v7635_v5, %v6548_v18  ;;  %v2655_v23 = vrot.slane %v7635_v5, %v6827_v42  ;;  %v6271_v18 = vld [vmem:[%s7945_s5 + $0x578] sm:$0xff]  }
 0x87a   :  { %v3376_v6 = vmax.f32 %v3138_v51, 0.0  ;;  %v3378_v60 = vmax.f32 %v3181_v52, 0.0  ;;  %v6274_v47 = vld [vmem:[%s7945_s5 + $0x5b8] sm:$0xff]   ;;  %v6275_v52 = vld [vmem:[%s7945_s5 + $0x640] sm:$0xff]  }
 0x87b   :  { %v7616_v7 = vpack.c.bf16 %v3375_v58, %v3359_v56  ;;  %v7618_v61 = vpack.c.bf16 %v3377_v62, %v3361_v57 }
 0x87c   :  { %v3392_v33 = vpack.c.bf16 %v3376_v6, %v3360_v8  ;;  %v3394_v14 = vpack.c.bf16 %v3378_v60, %v3362_v3  ;;  %5903 = vmatpush3.bf16.msra.mxu0 %v6257_v53  ;;  %5925 = vmatpush3.bf16.msra.mxu1 %v6258_v55  ;;  %v6276_v53 = vld [vmem:[%s7945_s5 + $0x6c0] sm:$0xff]   ;;  %v6279_v60 = vld [vmem:[%s7945_s5 + $0x648] sm:$0xff]  }
 0x87d   :  { %5904 = vmatprep.subr.bf16.mxu0 %v6259_v59  ;;  %5926 = vmatprep.subr.bf16.mxu1 %v6260_v63  ;;  %v6277_v3 = vld [vmem:[%s7945_s5 + $0x600] sm:$0xff]  }
 0x87e   :  { %4546 = vmatprep.mubr.bf16.mxu0 %v3392_v33  ;;  %4587 = vmatprep.mubr.bf16.mxu1 %v3394_v14  ;;  %v6278_v6 = vld [vmem:[%s7945_s5 + $0x680] sm:$0xff]   ;;  %v6280_v33 = vld [vmem:[%s7945_s5 + $0x6c8] sm:$0xff]  }
 0x87f   :  { %v6281_v14 = vld [vmem:[%s7945_s5 + $0x608] sm:$0xff]  }
 0x880   :  { %5905 = vmatpush3.bf16.msra.mxu0 %v6261_v9  ;;  %5927 = vmatpush3.bf16.msra.mxu1 %v6262_v16  ;;  %v2659_v9 = vrot.slane %v7635_v5, %v6846_v20  ;;  %v2667_v16 = vrot.slane %v7635_v5, %v6849_v22  ;;  %v6284_v22 = vld [vmem:[%s7945_s5 + $0x6d0] sm:$0xff]  }
 0x881   :  { %5906 = vmatprep.subr.bf16.mxu0 %v6263_v17  ;;  %5928 = vmatprep.subr.bf16.mxu1 %v6264_v4  ;;  %v2663_v17 = vrot.slane %v7635_v5, %v6852_v24  ;;  %v2671_v4 = vrot.slane %v7635_v5, %v6855_v25  ;;  %v6286_v25 = vld [vmem:[%s7945_s5 + $0x690] sm:$0xff]   ;;  %v6287_v5 = vld [vmem:[%s7945_s5 + $0x658] sm:$0xff]  }
 0x884   :  { %v3217_v11 = vpop.f32.mrb[44].mxu0  ;;  %v3260_v34 = vpop.f32.mrb[44].mxu1  ;;  %5907 = vmatpush3.bf16.msra.mxu0 %v6265_v19  ;;  %5929 = vmatpush3.bf16.msra.mxu1 %v6266_v26 }
 0x885   :  { %v3218_v15 = vadd.f32 %v3217_v11, %v2643_v28  ;;  %v3261_v32 = vadd.f32 %v3260_v34, %v2651_v29  ;;  %v3219_v27 = vpop.f32.mrb[45].mxu0  ;;  %v3262_v0 = vpop.f32.mrb[45].mxu1  ;;  %5908 = vmatprep.subr.bf16.mxu0 %v6267_v12  ;;  %5930 = vmatprep.subr.bf16.mxu1 %v6268_v54 }
 0x886   :  { %v3220_v35 = vadd.f32 %v3219_v27, %v2647_v31  ;;  %v3263_v36 = vadd.f32 %v3262_v0, %v2655_v23  ;;  %v3221_v37 = vpop.f32.mrb[46].mxu0  ;;  %v3264_v38 = vpop.f32.mrb[46].mxu1 }
 0x887   :  { %v3222_v39 = vadd.f32 %v3221_v37, %v2643_v28  ;;  %v3265_v40 = vadd.f32 %v3264_v38, %v2651_v29  ;;  %v3223_v43 = vpop.f32.mrb[47].mxu0  ;;  %v3266_v41 = vpop.f32.mrb[47].mxu1  ;;  %v3363_v48 = vmax.f32 %v3218_v15, 0.0  ;;  %v3365_v49 = vmax.f32 %v3261_v32, 0.0  ;;  %v6285_v28 = vld [vmem:[%s7945_s5 + $0x610] sm:$0xff]  }
 0x888   :  { %v3224_v44 = vadd.f32 %v3223_v43, %v2647_v31  ;;  %v3267_v45 = vadd.f32 %v3266_v41, %v2655_v23  ;;  %5909 = vmatpush3.bf16.msra.mxu0 %v6269_v10  ;;  %5931 = vmatpush3.bf16.msra.mxu1 %v6270_v21  ;;  %v3364_v55 = vmax.f32 %v3220_v35, 0.0  ;;  %v3366_v56 = vmax.f32 %v3263_v36, 0.0  ;;  %v6288_v21 = vld [vmem:[%s7945_s5 + $0x6d8] sm:$0xff]   ;;  %v6291_v43 = vld [vmem:[%s7945_s5 + $0x660] sm:$0xff]  }
 0x889   :  { %v3379_v50 = vmax.f32 %v3222_v39, 0.0  ;;  %v3381_v51 = vmax.f32 %v3265_v40, 0.0  ;;  %5910 = vmatprep.subr.bf16.mxu0 %v6271_v18  ;;  %5932 = vmatprep.subr.bf16.mxu1 %v6272_v2  ;;  %v6289_v35 = vld [vmem:[%s7945_s5 + $0x618] sm:$0xff]  }
 0x88a   :  { %v3380_v57 = vmax.f32 %v3224_v44, 0.0  ;;  %v3382_v58 = vmax.f32 %v3267_v45, 0.0  ;;  %v6290_v40 = vld [vmem:[%s7945_s5 + $0x698] sm:$0xff]  }
 0x88b   :  { %v7681_v62 = vpack.c.bf16 %v3379_v50, %v3363_v48  ;;  %v7683_v59 = vpack.c.bf16 %v3381_v51, %v3365_v49 }
 0x88c   :  { %v3396_v63 = vpack.c.bf16 %v3380_v57, %v3364_v55  ;;  %v3398_v8 = vpack.c.bf16 %v3382_v58, %v3366_v56  ;;  %5911 = vmatpush3.bf16.msra.mxu0 %v6273_v46  ;;  %5933 = vmatpush3.bf16.msra.mxu1 %v6274_v47  ;;  %v6292_v47 = vld [vmem:[%s7945_s5 + $0x6e0] sm:$0xff]   ;;  %v6295_v55 = vld [vmem:[%s7945_s5 + $0x668] sm:$0xff]  }
 0x88d   :  { %5940 = vmatprep.subr.bf16.mxu0 %v6275_v52  ;;  %5962 = vmatprep.subr.bf16.mxu1 %v6276_v53  ;;  %v6293_v52 = vld [vmem:[%s7945_s5 + $0x620] sm:$0xff]   ;;  %v6296_v56 = vld [vmem:[%s7945_s5 + $0x6e8] sm:$0xff]  }
 0x88e   :  { %v6294_v53 = vld [vmem:[%s7945_s5 + $0x6a0] sm:$0xff]   ;;  %v6297_v57 = vld [vmem:[%s7945_s5 + $0x628] sm:$0xff]  }
 0x88f   :  { %4547 = vmatmul.mubr.bf16.vlgmr.msra.gmra.mrb[56].mxu0 %v7616_v7  ;;  %4588 = vmatmul.mubr.bf16.vlgmr.msra.gmra.mrb[56].mxu1 %v7618_v61  ;;  %v6282_v7 = vld [vmem:[%s7945_s5 + $0x688] sm:$0xff]   ;;  %v6283_v61 = vld [vmem:[%s7945_s5 + $0x650] sm:$0xff]  }
 0x890   :  { %5941 = vmatpush3.bf16.msra.mxu0 %v6277_v3  ;;  %4628 = vmatprep.mubr.bf16.mxu0 %v3396_v63  ;;  %v6298_v58 = vld [vmem:[%s7945_s5 + $0x6a8] sm:$0xff]   ;;  %v6299_v63 = vld [vmem:[%s7945_s5 + $0x670] sm:$0xff]  }
 0x891   :  { %5963 = vmatpush3.bf16.msra.mxu1 %v6278_v6  ;;  %4669 = vmatprep.mubr.bf16.mxu1 %v3398_v8  ;;  %v6300_v8 = vld [vmem:[%s7945_s5 + $0x6f0] sm:$0xff]  }
 0x892   :  { %5942 = vmatprep.subr.bf16.mxu0 %v6279_v60  ;;  %5964 = vmatprep.subr.bf16.mxu1 %v6280_v33  ;;  %v6301_v3 = vld [vmem:[%s7945_s5 + $0x630] sm:$0xff]   ;;  %v6303_v60 = vld [vmem:[%s7945_s5 + $0x678] sm:$0xff]  }
 0x893   :  { %v6302_v6 = vld [vmem:[%s7945_s5 + $0x6b0] sm:$0xff]   ;;  %v6304_v33 = vld [vmem:[%s7945_s5 + $0x6f8] sm:$0xff]  }
 0x894   :  { %v3303_v19 = vpop.f32.mrb[48].mxu0  ;;  %v3346_v26 = vpop.f32.mrb[48].mxu1  ;;  %5943 = vmatpush3.bf16.msra.mxu0 %v6281_v14  ;;  %v6305_v14 = vld [vmem:[%s7945_s5 + $0x638] sm:$0xff]  }
 0x895   :  { %v3304_v29 = vadd.f32 %v3303_v19, %v2659_v9  ;;  %v3347_v12 = vadd.f32 %v3346_v26, %v2667_v16  ;;  %5965 = vmatpush3.bf16.msra.mxu1 %v6282_v7  ;;  %v3305_v54 = vpop.f32.mrb[49].mxu0  ;;  %v3348_v31 = vpop.f32.mrb[49].mxu1  ;;  %5944 = vmatprep.subr.bf16.mxu0 %v6283_v61  ;;  %v6308_v7 = vld [vmem:[%s7945_s5 + $0x7c0] sm:$0xff]   ;;  %v6313_v19 = vld [vmem:[%s7945_s5 + $0x708] sm:$0xff]  }
 0x896   :  { %v3306_v23 = vadd.f32 %v3305_v54, %v2663_v17  ;;  %v3349_v11 = vadd.f32 %v3348_v31, %v2671_v4  ;;  %v3307_v34 = vpop.f32.mrb[50].mxu0  ;;  %v3350_v10 = vpop.f32.mrb[50].mxu1  ;;  %5966 = vmatprep.subr.bf16.mxu1 %v6284_v22  ;;  %v6309_v61 = vld [vmem:[%s7945_s5 + $0x700] sm:$0xff]   ;;  %v6312_v22 = vld [vmem:[%s7945_s5 + $0x7c8] sm:$0xff]   ;;  %v6320_v54 = vld [vmem:[%s7945_s5 + $0x7d8] sm:$0xff]  }
 0x897   :  { %v3308_v15 = vadd.f32 %v3307_v34, %v2659_v9  ;;  %v3351_v32 = vadd.f32 %v3350_v10, %v2667_v16  ;;  %v3309_v27 = vpop.f32.mrb[51].mxu0  ;;  %v3352_v0 = vpop.f32.mrb[51].mxu1  ;;  %v3367_v36 = vmax.f32 %v3304_v29, 0.0  ;;  %v3369_v37 = vmax.f32 %v3347_v12, 0.0  ;;  %v6306_v9 = vld [vmem:[%s7945_s5 + $0x6b8] sm:$0xff]   ;;  %v6307_v16 = vld [vmem:[%s7945_s5 + $0x740] sm:$0xff]  }
 0x898   :  { %v3310_v18 = vadd.f32 %v3309_v27, %v2663_v17  ;;  %v3353_v2 = vadd.f32 %v3352_v0, %v2671_v4  ;;  %5945 = vmatpush3.bf16.msra.mxu0 %v6285_v28  ;;  %v3368_v41 = vmax.f32 %v3306_v23, 0.0  ;;  %v3370_v44 = vmax.f32 %v3349_v11, 0.0  ;;  %v6310_v17 = vld [vmem:[%s7945_s5 + $0x780] sm:$0xff]   ;;  %v6311_v4 = vld [vmem:[%s7945_s5 + $0x748] sm:$0xff]   ;;  %v6317_v28 = vld [vmem:[%s7945_s5 + $0x710] sm:$0xff]  }
 0x899   :  { %v3383_v38 = vmax.f32 %v3308_v15, 0.0  ;;  %v3385_v39 = vmax.f32 %v3351_v32, 0.0  ;;  %5967 = vmatpush3.bf16.msra.mxu1 %v6286_v25  ;;  %5946 = vmatprep.subr.bf16.mxu0 %v6287_v5  ;;  %v6314_v26 = vld [vmem:[%s7945_s5 + $0x788] sm:$0xff]   ;;  %v6318_v29 = vld [vmem:[%s7945_s5 + $0x790] sm:$0xff]   ;;  %v6319_v12 = vld [vmem:[%s7945_s5 + $0x758] sm:$0xff]  }
 0x89a   :  { %v3384_v45 = vmax.f32 %v3310_v18, 0.0  ;;  %v3386_v46 = vmax.f32 %v3353_v2, 0.0  ;;  %5968 = vmatprep.subr.bf16.mxu1 %v6288_v21  ;;  %v6321_v31 = vld [vmem:[%s7945_s5 + $0x718] sm:$0xff]   ;;  %v6323_v5 = vld [vmem:[%s7945_s5 + $0x760] sm:$0xff]   ;;  %v6327_v10 = vld [vmem:[%s7945_s5 + $0x768] sm:$0xff]  }
 0x89b   :  { %v7743_v48 = vpack.c.bf16 %v3383_v38, %v3367_v36  ;;  %v7745_v49 = vpack.c.bf16 %v3385_v39, %v3369_v37  ;;  %v6322_v25 = vld [vmem:[%s7945_s5 + $0x798] sm:$0xff]   ;;  %v6324_v23 = vld [vmem:[%s7945_s5 + $0x7e0] sm:$0xff]   ;;  %v6328_v21 = vld [vmem:[%s7945_s5 + $0x7e8] sm:$0xff]  }
 0x89c   :  { %v3400_v50 = vpack.c.bf16 %v3384_v45, %v3368_v41  ;;  %v3402_v51 = vpack.c.bf16 %v3386_v46, %v3370_v44  ;;  %5947 = vmatpush3.bf16.msra.mxu0 %v6289_v35  ;;  %v6325_v11 = vld [vmem:[%s7945_s5 + $0x720] sm:$0xff]   ;;  %v6329_v15 = vld [vmem:[%s7945_s5 + $0x728] sm:$0xff]   ;;  %v6331_v27 = vld [vmem:[%s7945_s5 + $0x770] sm:$0xff]  }
 0x89d   :  { %5969 = vmatpush3.bf16.msra.mxu1 %v6290_v40  ;;  %5948 = vmatprep.subr.bf16.mxu0 %v6291_v43  ;;  %v6326_v34 = vld [vmem:[%s7945_s5 + $0x7a0] sm:$0xff]   ;;  %v6330_v32 = vld [vmem:[%s7945_s5 + $0x7a8] sm:$0xff]   ;;  %v6332_v0 = vld [vmem:[%s7945_s5 + $0x7f0] sm:$0xff]  }
 0x89e   :  { %5970 = vmatprep.subr.bf16.mxu1 %v6292_v47  ;;  %v6333_v18 = vld [vmem:[%s7945_s5 + $0x730] sm:$0xff]   ;;  %v6335_v35 = vld [vmem:[%s7945_s5 + $0x778] sm:$0xff]   ;;  %v7895_v43 = vld [vmem:[%s7942_s2 + $0x8] sm:$0xff] }
 0x89f   :  { %v6334_v2 = vld [vmem:[%s7945_s5 + $0x7b0] sm:$0xff]   ;;  %v6336_v36 = vld [vmem:[%s7945_s5 + $0x7f8] sm:$0xff]   ;;  %v3663_v41 = vrot.slane %v7895_v43, %v6827_v42 }
 0x8a0   :  { %5949 = vmatpush3.bf16.msra.mxu0 %v6293_v52  ;;  %v6337_v37 = vld [vmem:[%s7945_s5 + $0x738] sm:$0xff]  }
 0x8a1   :  { %5971 = vmatpush3.bf16.msra.mxu1 %v6294_v53  ;;  %5950 = vmatprep.subr.bf16.mxu0 %v6295_v55  ;;  %v6338_v38 = vld [vmem:[%s7945_s5 + $0x7b8] sm:$0xff]  }
 0x8a2   :  { %5972 = vmatprep.subr.bf16.mxu1 %v6296_v56 }
 0x8a4   :  { %5951 = vmatpush3.bf16.msra.mxu0 %v6297_v57 }
 0x8a5   :  { %5973 = vmatpush3.bf16.msra.mxu1 %v6298_v58  ;;  %5952 = vmatprep.subr.bf16.mxu0 %v6299_v63 }
 0x8a6   :  { %5974 = vmatprep.subr.bf16.mxu1 %v6300_v8 }
 0x8a8   :  { %5953 = vmatpush3.bf16.msra.mxu0 %v6301_v3 }
 0x8a9   :  { %5975 = vmatpush3.bf16.msra.mxu1 %v6302_v6  ;;  %5954 = vmatprep.subr.bf16.mxu0 %v6303_v60 }
 0x8aa   :  { %5976 = vmatprep.subr.bf16.mxu1 %v6304_v33 }
 0x8ac   :  { %5955 = vmatpush3.bf16.msra.mxu0 %v6305_v14 }
 0x8ad   :  { %5977 = vmatpush3.bf16.msra.mxu1 %v6306_v9  ;;  %5984 = vmatprep.subr.bf16.mxu0 %v6307_v16 }
 0x8ae   :  { %6006 = vmatprep.subr.bf16.mxu1 %v6308_v7 }
 0x8af   :  { %4629 = vmatmul.mubr.bf16.vlgmr.msra.gmra.mrb[60].mxu0 %v7681_v62  ;;  %v6315_v62 = vld [vmem:[%s7945_s5 + $0x750] sm:$0xff]  }
 0x8b0   :  { %4670 = vmatmul.mubr.bf16.vlgmr.msra.gmra.mrb[60].mxu1 %v7683_v59  ;;  %5985 = vmatpush3.bf16.msra.mxu0 %v6309_v61  ;;  %v6316_v59 = vld [vmem:[%s7945_s5 + $0x7d0] sm:$0xff]  }
 0x8b1   :  { %4710 = vmatprep.mubr.bf16.mxu0 %v3400_v50  ;;  %6007 = vmatpush3.bf16.msra.mxu1 %v6310_v17 }
 0x8b2   :  { %4751 = vmatprep.mubr.bf16.mxu1 %v3402_v51  ;;  %5986 = vmatprep.subr.bf16.mxu0 %v6311_v4 }
 0x8b3   :  { %6008 = vmatprep.subr.bf16.mxu1 %v6312_v22 }
 0x8b4   :  { %5987 = vmatpush3.bf16.msra.mxu0 %v6313_v19 }
 0x8b5   :  { %6009 = vmatpush3.bf16.msra.mxu1 %v6314_v26  ;;  %5988 = vmatprep.subr.bf16.mxu0 %v6315_v62 }
 0x8b6   :  { %6010 = vmatprep.subr.bf16.mxu1 %v6316_v59 }
 0x8b8   :  { %5989 = vmatpush3.bf16.msra.mxu0 %v6317_v28 }
 0x8b9   :  { %6011 = vmatpush3.bf16.msra.mxu1 %v6318_v29  ;;  %5990 = vmatprep.subr.bf16.mxu0 %v6319_v12 }
 0x8ba   :  { %6012 = vmatprep.subr.bf16.mxu1 %v6320_v54 }
 0x8bc   :  { %5991 = vmatpush3.bf16.msra.mxu0 %v6321_v31 }
 0x8bd   :  { %6013 = vmatpush3.bf16.msra.mxu1 %v6322_v25  ;;  %5992 = vmatprep.subr.bf16.mxu0 %v6323_v5 }
 0x8be   :  { %6014 = vmatprep.subr.bf16.mxu1 %v6324_v23 }
 0x8c0   :  { %5993 = vmatpush3.bf16.msra.mxu0 %v6325_v11 }
 0x8c1   :  { %6015 = vmatpush3.bf16.msra.mxu1 %v6326_v34  ;;  %5994 = vmatprep.subr.bf16.mxu0 %v6327_v10 }
 0x8c2   :  { %6016 = vmatprep.subr.bf16.mxu1 %v6328_v21 }
 0x8c4   :  { %5995 = vmatpush3.bf16.msra.mxu0 %v6329_v15 }
 0x8c5   :  { %6017 = vmatpush3.bf16.msra.mxu1 %v6330_v32  ;;  %5996 = vmatprep.subr.bf16.mxu0 %v6331_v27 }
 0x8c6   :  { %6018 = vmatprep.subr.bf16.mxu1 %v6332_v0 }
 0x8c8   :  { %5997 = vmatpush3.bf16.msra.mxu0 %v6333_v18 }
 0x8c9   :  { %6019 = vmatpush3.bf16.msra.mxu1 %v6334_v2  ;;  %5998 = vmatprep.subr.bf16.mxu0 %v6335_v35 }
 0x8ca   :  { %6020 = vmatprep.subr.bf16.mxu1 %v6336_v36 }
 0x8cc   :  { %5999 = vmatpush3.bf16.msra.mxu0 %v6337_v37 }
 0x8cd   :  { %6021 = vmatpush3.bf16.msra.mxu1 %v6338_v38  ;;  %6057 = vmatprep.subr.bf16.mxu0 %v6385_v1 }
 0x8cf   :  { %4711 = vmatmul.mubr.bf16.vlgmr.msra.gmra.mrb[64].mxu0 %v7743_v48 }
 0x8d0   :  { %4752 = vmatmul.mubr.bf16.vlgmr.msra.gmra.mrb[64].mxu1 %v7745_v49  ;;  %6065 = vmatprep.mubr.msk.bf16.mxu0 %vm6386_vm0, %v6385_v1 }
 0x942   :  { %v5868_v39 = vpop.f32.mrb[52].mxu0  ;;  %v5890_v40 = vpop.f32.mrb[52].mxu1 }
 0x943   :  { %v5869_v44 = vpop.f32.mrb[53].mxu0  ;;  %v5891_v45 = vpop.f32.mrb[53].mxu1 }
 0x944   :  { %v5870_v46 = vadd.f32 %v5869_v44, %v5868_v39  ;;  %v5892_v47 = vadd.f32 %v5891_v45, %v5890_v40  ;;  %v5871_v48 = vpop.f32.mrb[54].mxu0  ;;  %v5893_v50 = vpop.f32.mrb[54].mxu1 }
 0x945   :  { %v5872_v49 = vpop.f32.mrb[55].mxu0  ;;  %v5894_v51 = vpop.f32.mrb[55].mxu1 }
 0x946   :  { %v4467_v52 = vadd.f32 %v5870_v46, %v3663_v41  ;;  %v5873_v53 = vadd.f32 %v5872_v49, %v5871_v48  ;;  %v5895_v55 = vadd.f32 %v5894_v51, %v5893_v50 }
 0x948   :  { %v4508_v56 = vadd.f32 %v5892_v47, %v4467_v52  ;;  %v4470_v57 = vadd.f32 %v5873_v53, %v3663_v41 }
 0x94a   :  { %v4511_v58 = vadd.f32 %v5895_v55, %v4470_v57 }
 0x962   :  { %v5912_v63 = vpop.f32.mrb[56].mxu0  ;;  %v5934_v8 = vpop.f32.mrb[56].mxu1 }
 0x963   :  { %v5913_v3 = vpop.f32.mrb[57].mxu0  ;;  %v5935_v6 = vpop.f32.mrb[57].mxu1 }
 0x964   :  { %v5914_v60 = vadd.f32 %v5913_v3, %v5912_v63  ;;  %v5936_v42 = vadd.f32 %v5935_v6, %v5934_v8  ;;  %v5915_v33 = vpop.f32.mrb[58].mxu0  ;;  %v5937_v14 = vpop.f32.mrb[58].mxu1  ;;  %v6340_v6 = vld [vmem:[%s7946_s6 + $0x8] sm:$0xff]  }
 0x965   :  { %v5916_v9 = vpop.f32.mrb[59].mxu0  ;;  %v5938_v16 = vpop.f32.mrb[59].mxu1 }
 0x966   :  { %v4549_v7 = vadd.f32 %v5914_v60, %v4508_v56  ;;  %v5917_v61 = vadd.f32 %v5916_v9, %v5915_v33  ;;  %v5939_v17 = vadd.f32 %v5938_v16, %v5937_v14  ;;  %v6341_v60 = vld [vmem:[%s7946_s6 + $0x10] sm:$0xff]  }
 0x968   :  { %v4590_v4 = vadd.f32 %v5936_v42, %v4549_v7  ;;  %v4552_v22 = vadd.f32 %v5917_v61, %v4511_v58  ;;  %v6342_v42 = vld [vmem:[%s7946_s6 + $0x18] sm:$0xff]  }
 0x96a   :  { %v4593_v19 = vadd.f32 %v5939_v17, %v4552_v22  ;;  %v4791_v17 = vrot.slane %v7895_v43, %v6846_v20 }
 0x982   :  { %v5956_v26 = vpop.f32.mrb[60].mxu0 }
 0x983   :  { %v5978_v62 = vpop.f32.mrb[60].mxu1  ;;  %v5957_v59 = vpop.f32.mrb[61].mxu0 }
 0x984   :  { %v5958_v28 = vadd.f32 %v5957_v59, %v5956_v26  ;;  %v5979_v29 = vpop.f32.mrb[61].mxu1  ;;  %v5959_v12 = vpop.f32.mrb[62].mxu0 }
 0x985   :  { %v5980_v54 = vadd.f32 %v5979_v29, %v5978_v62  ;;  %v5981_v31 = vpop.f32.mrb[62].mxu1  ;;  %v5960_v25 = vpop.f32.mrb[63].mxu0 }
 0x986   :  { %v4631_v5 = vadd.f32 %v5958_v28, %v4590_v4  ;;  %v5961_v23 = vadd.f32 %v5960_v25, %v5959_v12  ;;  %v5982_v11 = vpop.f32.mrb[63].mxu1 }
 0x987   :  { %v5983_v34 = vadd.f32 %v5982_v11, %v5981_v31 }
 0x988   :  { %v4672_v10 = vadd.f32 %v5980_v54, %v4631_v5  ;;  %v4634_v21 = vadd.f32 %v5961_v23, %v4593_v19  ;;  %v5651_v54 = vld [vmem:[%s7947_s7] ss:$0 sm:$0xff] }
 0x98a   :  { %v4675_v15 = vadd.f32 %v5983_v34, %v4634_v21 }
 0x9a2   :  { %v6000_v32 = vpop.f32.mrb[64].mxu0 }
 0x9a3   :  { %v6022_v27 = vpop.f32.mrb[64].mxu1  ;;  %v6001_v0 = vpop.f32.mrb[65].mxu0 }
 0x9a4   :  { %v6002_v18 = vadd.f32 %v6001_v0, %v6000_v32  ;;  %v6023_v2 = vpop.f32.mrb[65].mxu1  ;;  %v6003_v35 = vpop.f32.mrb[66].mxu0 }
 0x9a5   :  { %v6024_v36 = vadd.f32 %v6023_v2, %v6022_v27  ;;  %v6025_v37 = vpop.f32.mrb[66].mxu1  ;;  %v6004_v38 = vpop.f32.mrb[67].mxu0 }
 0x9a6   :  { %v4713_v39 = vadd.f32 %v6002_v18, %v4672_v10  ;;  %v6005_v40 = vadd.f32 %v6004_v38, %v6003_v35  ;;  %v6026_v41 = vpop.f32.mrb[67].mxu1 }
 0x9a7   :  { %v6027_v44 = vadd.f32 %v6026_v41, %v6025_v37 }
 0x9a8   :  { %v4754_v45 = vadd.f32 %v6024_v36, %v4713_v39  ;;  %v4716_v46 = vadd.f32 %v6005_v40, %v4675_v15 }
 0x9aa   :  { %v4757_v47 = vadd.f32 %v6027_v44, %v4716_v46  ;;  %v4760_v48 = vadd.f32 %v4754_v45, %v7305_v30 }
 0x9ac   :  { %v4762_v50 = vsel %vm71_vm1, %v4760_v48, 0.0  ;;  %v4761_v49 = vadd.f32 %v4757_v47, %v7307_v13  ;;  %v6339_v13 = vld [vmem:[%s7946_s6] sm:$0xff]  }
 0x9ad   :  { %4763 = vadd.xlane.f32.xlu0 %v4762_v50  ;;  %6058 = vmatpush3.bf16.msra.mxu0 %v6339_v13 }
 0x9ae   :  { %v4765_v51 = vsel %vm71_vm1, %v4761_v49, 0.0  ;;  %6059 = vmatprep.subr.bf16.mxu0 %v6385_v1 }
 0x9af   :  { %4766 = vadd.xlane.f32.xlu1 %v4765_v51 }
 0x9b1   :  { %6060 = vmatpush3.bf16.msra.mxu0 %v6340_v6 }
 0x9b2   :  { %6061 = vmatprep.subr.bf16.mxu0 %v6385_v1 }
 0x9b5   :  { %6062 = vmatpush3.bf16.msra.mxu0 %v6341_v60 }
 0x9b6   :  { %6063 = vmatprep.subr.bf16.mxu0 %v6385_v1  ;;  %v4797_v1 = vrot.slane %v7895_v43, %v6852_v24 }
 0x9b9   :  { %6064 = vmatpush3.bf16.msra.mxu0 %v6342_v42 }
 0xa3a   :  { %v4764_v52 = vpop.xlane.xlu0 %4763 }
 0xa3b   :  { %v4768_v53 = vmul.f32 0.015625, %v4764_v52 }
 0xa3c   :  { %v4767_v55 = vpop.xlane.xlu1 %4766 }
 0xa3d   :  { %v4770_v56 = vsub.f32 %v4760_v48, %v4768_v53  ;;  %v4769_v57 = vmul.f32 0.015625, %v4767_v55 }
 0xa3f   :  { %v4771_v58 = vsub.f32 %v4761_v49, %v4769_v57  ;;  %v4772_v63 = vmul.f32 %v4770_v56, %v4770_v56 }
 0xa41   :  { %v4774_v8 = vsel %vm71_vm1, %v4772_v63, 0.0  ;;  %v4773_v3 = vmul.f32 %v4771_v58, %v4771_v58 }
 0xa42   :  { %4775 = vadd.xlane.f32.xlu0 %v4774_v8 }
 0xa43   :  { %v4777_v30 = vsel %vm71_vm1, %v4773_v3, 0.0 }
 0xa44   :  { %4778 = vadd.xlane.f32.xlu1 %v4777_v30 }
 0xacf   :  { %v4776_v33 = vpop.xlane.xlu0 %4775 }
 0xad0   :  { %v4780_v14 = vmul.f32 0.015625, %v4776_v33 }
 0xad1   :  { %v4779_v9 = vpop.xlane.xlu1 %4778 }
 0xad2   :  { %v4782_v16 = vadd.f32 1e-05, %v4780_v14  ;;  %v4781_v7 = vmul.f32 0.015625, %v4779_v9 }
 0xad4   :  { %6355 = vrsqrt.f32 %v4782_v16  ;;  %v4783_v61 = vadd.f32 1e-05, %v4781_v7 }
 0xad6   :  { %6357 = vrsqrt.f32 %v4783_v61 }
 0xade   :  { %v6356_v4 = vpop.eup %6355 }
 0xadf   :  { %v4786_v22 = vmul.f32 %v6356_v4, %v4770_v56 }
 0xae0   :  { %v6358_v19 = vpop.eup %6357 }
 0xae1   :  { %v4792_v26 = vmul.f32 %v4791_v17, %v4786_v22  ;;  %v4787_v62 = vmul.f32 %v6358_v19, %v4771_v58 }
 0xae3   :  { %v4793_v59 = vmul.f32 %v4791_v17, %v4787_v62  ;;  %v4798_v28 = vadd.f32 %v4797_v1, %v4792_v26 }
 0xae5   :  { %v4799_v29 = vadd.f32 %v4797_v1, %v4793_v59 }
 0xae7   :  { %v4800_v12 = vpack.c.bf16 %v4799_v29, %v4798_v28 }
 0xae9   :  { %6066 = vmatmul.mubr.msk.bf16.vlgmr.msra.gmra.mrb[68].mxu0 %vm71_vm1, %v4800_v12 }
 0xbbc   :  { %v4877_v31 = vpop.f32.mrb[68].mxu0 }
 0xbbd   :  { %v6067_v20 = vpop.f32.mrb[69].mxu0  ;;  %v4878_v5 = vadd.f32 %v5651_v54, %v4877_v31 }
 0xbbe   :  { %v4880_v25 = vpop.f32.mrb[70].mxu0 }
 0xbbf   :  { %v4881_v23 = vadd.f32 %v5651_v54, %v4880_v25  ;;  %v6068_v11 = vpop.f32.mrb[71].mxu0 }
 0xbc1   :  { %v5664_v34 = vpack.c.bf16 %v4881_v23, %v4878_v5 }
 0xbc3   :  { %5665 = vst [vmem:[#allocation2] sm:$0xff] %v5664_v34  }
 0xbc4   :  { %6372 = shalt.err (!%p6369_p4)
}
 0xbc5   :  { %s6373_s25 = scalar_lea.hbm %s7948_s8, 128 }
 0xbc6   :  { %p6374_p5 = scmp.ne.s32.totalorder %s7948_s8, %s6373_s25  ;;  %p6377_p6 = scmp.lt.u32.totalorder %s6373_s25, %s7948_s8 }
 0xbc8   :  { %p6379_p7 = pnand %p6377_p6, %p6374_p5 }
 0xbca   :  { %6382 = shalt.err (!%p6379_p7)
}
 0xbcb   :  { %s6389_s30 = smov 64   ;;  %s6390_s9 = smov 4  }
 0xbcc   :  { %4905 = dma.vmem_to_hbm [thread:$0]  %s4900_s24, 128, %s7948_s8, [#allocation3], %s6389_s30, %s6389_s30, %s6390_s9  }
 0xbcd   :  { %6383 = dma.done.wait [#allocation3], 128  }
 0xbce   :  { %6384 = vsyncadd [#allocation3], 4294967168 }
 0xbcf   :  { %4909 = vsyncpa [#allocation3], 1 }

</bundles_post_ra>
